<compile_context>
chip_gen: v6e
topology: v6e:2x2x1
jax: 0.10.0
libtpu: 0.0.40
codegen_flags: <defaults>
</compile_context>

<pallas_src>
import functools

import jax
import jax.numpy as jnp
from jax.experimental import pallas as pl
from jax.experimental.pallas import tpu as pltpu


def _round_up(x, m):
    return (x + m - 1) // m * m


def _pad128(n):
    return _round_up(n, 128)


def _largest_tile(dim, cap):
    """Largest multiple of 128 that divides `dim` (itself a 128-multiple) and is <= cap."""
    best = 128
    t = 256
    while t <= cap and t <= dim:
        if dim % t == 0:
            best = t
        t += 128
    return best


# ---------------------------------------------------------------------------
# Pallas kernel 1: tiled matmul with fused bias + optional ReLU.
#   bf16 operands on the MXU, f32 VMEM accumulator, K innermost grid axis.
# ---------------------------------------------------------------------------
def _mm_kernel(x_ref, w_ref, b_ref, o_ref, acc_ref, *, relu):
    k = pl.program_id(2)

    @pl.when(k == 0)
    def _():
        acc_ref[...] = jnp.zeros_like(acc_ref)

    acc_ref[...] += jnp.dot(x_ref[...], w_ref[...],
                            preferred_element_type=jnp.float32)

    @pl.when(k == pl.num_programs(2) - 1)
    def _():
        out = acc_ref[...] + b_ref[...]          # bias + ReLU epilogue in f32
        if relu:
            out = jnp.maximum(out, 0.0)
        o_ref[...] = out.astype(o_ref.dtype)


def matmul_bias_act(x, wp, bp, *, relu, out_dtype):
    """y = relu?(x @ wp + bp).

    x : (M, Kp)  bf16 (already K-padded at the source).
    wp: (Kp, Np) bf16, pre-padded at init.   bp: (1, Np) f32, pre-padded.
    Returns (M, Np) in `out_dtype` (padded columns kept; they are inert zeros
    downstream because padded weight rows / bias entries are zero).
    """
    M, K = x.shape
    Kp, Np = wp.shape
    assert K == Kp, (K, Kp)

    small_m = M <= 32
    if M <= 256:
        tm = min(_round_up(max(M, 1), 16), 256)
    else:
        # pick the M tile that wastes the least padding (tie -> bigger tile)
        tm = 256 if _round_up(M, 256) <= _round_up(M, 128) else 128
    tk = _largest_tile(Kp, 2048 if small_m else 1024)
    tn = _largest_tile(Np, 1024 if small_m else 512)
    # v7x has 2 TensorCores: make sure an FC layer exposes a parallel axis >= 2.
    if small_m and Np // tn < 2 and Np >= 256:
        tn = _largest_tile(Np, Np // 2)

    Mp = _round_up(M, tm)
    xb = x.astype(jnp.bfloat16)
    if Mp != M:
        xb = jnp.pad(xb, ((0, Mp - M), (0, 0)))

    out = pl.pallas_call(
        functools.partial(_mm_kernel, relu=relu),
        out_shape=jax.ShapeDtypeStruct((Mp, Np), out_dtype),
        grid_spec=pltpu.PrefetchScalarGridSpec(
            num_scalar_prefetch=0,
            grid=(Mp // tm, Np // tn, Kp // tk),
            in_specs=[
                pl.BlockSpec((tm, tk), lambda i, j, k: (i, k)),
                pl.BlockSpec((tk, tn), lambda i, j, k: (k, j)),
                pl.BlockSpec((1, tn), lambda i, j, k: (0, j)),
            ],
            out_specs=pl.BlockSpec((tm, tn), lambda i, j, k: (i, j)),
            scratch_shapes=[pltpu.VMEM((tm, tn), jnp.float32)],
        ),
        compiler_params=pltpu.CompilerParams(
            dimension_semantics=("parallel", "parallel", "arbitrary"),
            # <= ~48 MiB keeps v7x (64 MiB/TC) safe; plenty on v5e/v6e.
            vmem_limit_bytes=48 * 1024 * 1024,
        ),
    )(xb, wp, bp)
    if Mp != M:
        out = out[:M]
    return out


# ---------------------------------------------------------------------------
# Pallas kernel 2: MaxPool2d(kernel_size=3, stride=2), NHWC, floor mode.
# Wrapper extracts 4 exactly-sized even/odd de-interleaved views (no padding
# needed); the kernel only uses contiguous slices.  Channels are already a
# multiple of 128 (lane-dense stores), grid = (batch, channel-block).
# ---------------------------------------------------------------------------
def _maxpool_kernel(ee_ref, eo_ref, oe_ref, oo_ref, o_ref, *, OH, OW):
    ee = ee_ref[...]          # (1, OH+1, OW+1, c)
    eo = eo_ref[...]          # (1, OH+1, OW,   c)
    oe = oe_ref[...]          # (1, OH,   OW+1, c)
    oo = oo_ref[...]          # (1, OH,   OW,   c)
    m = ee[:, :OH, :OW, :]
    m = jnp.maximum(m, eo[:, :OH, :, :])
    m = jnp.maximum(m, ee[:, :OH, 1:, :])
    m = jnp.maximum(m, oe[:, :, :OW, :])
    m = jnp.maximum(m, oo)
    m = jnp.maximum(m, oe[:, :, 1:, :])
    m = jnp.maximum(m, ee[:, 1:, :OW, :])
    m = jnp.maximum(m, eo[:, 1:, :, :])
    m = jnp.maximum(m, ee[:, 1:, 1:, :])
    o_ref[...] = m


def maxpool2d_nhwc(x):
    """MaxPool2d(3, 2) on NHWC input (PyTorch floor mode)."""
    N, H, W, C = x.shape
    OH = (H - 3) // 2 + 1
    OW = (W - 3) // 2 + 1
    # Exactly-sized de-interleaved views: always in-bounds (2*OH <= H-1 etc.),
    # so no neg-inf padding pass is needed.
    ee = x[:, 0:2 * OH + 1:2, 0:2 * OW + 1:2, :]   # (N, OH+1, OW+1, C)
    eo = x[:, 0:2 * OH + 1:2, 1:2 * OW:2, :]       # (N, OH+1, OW,   C)
    oe = x[:, 1:2 * OH:2, 0:2 * OW + 1:2, :]       # (N, OH,   OW+1, C)
    oo = x[:, 1:2 * OH:2, 1:2 * OW:2, :]           # (N, OH,   OW,   C)

    cblk = 128 if C % 128 == 0 else C
    grid = (N, C // cblk)

    def spec(h, w_):
        return pl.BlockSpec((1, h, w_, cblk), lambda n, c: (n, 0, 0, c))

    return pl.pallas_call(
        functools.partial(_maxpool_kernel, OH=OH, OW=OW),
        out_shape=jax.ShapeDtypeStruct((N, OH, OW, C), x.dtype),
        grid_spec=pltpu.PrefetchScalarGridSpec(
            num_scalar_prefetch=0,
            grid=grid,
            in_specs=[spec(OH + 1, OW + 1), spec(OH + 1, OW),
                      spec(OH, OW + 1), spec(OH, OW)],
            out_specs=pl.BlockSpec((1, OH, OW, cblk), lambda n, c: (n, 0, 0, c)),
        ),
        compiler_params=pltpu.CompilerParams(
            dimension_semantics=("parallel", "parallel")),
    )(ee, eo, oe, oo)


# ---------------------------------------------------------------------------
# Conv built on the Pallas matmul kernel (NHWC, channel-padded, bf16)
# ---------------------------------------------------------------------------
def conv2d_nhwc(x, wp, bp, kh, kw, stride, pad):
    """Conv2d + ReLU.  x: (B,H,W,Cin_p) bf16; wp: (Kp, Cout_p) bf16 pre-padded."""
    B, H, W, Cin = x.shape
    Kp, Np = wp.shape
    if pad:
        x = jnp.pad(x, ((0, 0), (pad, pad), (pad, pad), (0, 0)))
    OH = (H + 2 * pad - kh) // stride + 1
    OW = (W + 2 * pad - kw) // stride + 1
    cols = []
    for dh in range(kh):
        for dw in range(kw):
            cols.append(x[:, dh:dh + stride * (OH - 1) + 1:stride,
                             dw:dw + stride * (OW - 1) + 1:stride, :])
    K = kh * kw * Cin
    assert K <= Kp
    if Kp > K:
        # K-pad at the source (inside the concat) -> no second pad pass.
        cols.append(jnp.zeros((B, OH, OW, Kp - K), x.dtype))
    # K ordered (kh, kw, c): channels lane-dense, matches weight layout.
    # TODO(synk): conv1 (Cin=3) still builds a narrow-lane im2col; an implicit
    # GEMM (loop over kh,kw in-kernel) would avoid that small materialization.
    patches = jnp.concatenate(cols, axis=-1).reshape(B * OH * OW, Kp)
    y = matmul_bias_act(patches, wp, bp, relu=True, out_dtype=jnp.bfloat16)
    return y.reshape(B, OH, OW, Np)          # channels stay padded (inert zeros)


# ---------------------------------------------------------------------------
# Model: parameter init + forward (mirrors AlexNet_two_part_alone)
# ---------------------------------------------------------------------------
def make_conv_specs(chans):
    c1, c2, c3, c4, c5 = chans
    # (Cout, Cin, KH, KW, stride, pad) -- same kernels/strides/pads as AlexNet.
    return [
        (c1, 3, 11, 11, 4, 2),
        (c2, c1, 5, 5, 1, 2),
        (c3, c2, 3, 3, 1, 1),
        (c4, c3, 3, 3, 1, 1),
        (c5, c4, 3, 3, 1, 1),
    ]


_POOL_AFTER = (0, 1, 4)   # MaxPool(3, 2) after conv1, conv2, conv5


def _feature_hw(h, specs):
    for i, (_, _, kh, _, stride, pad) in enumerate(specs):
        h = (h + 2 * pad - kh) // stride + 1
        if i in _POOL_AFTER:
            h = (h - 3) // 2 + 1
    return h


def init_params(key, cfg):
    specs = make_conv_specs(cfg["conv_channels"])
    params = {}

    # ---- conv weights: stored (KH*KW*Cin_p, Cout_p) bf16, pre-padded once ----
    for prefix in ("f1", "f2"):
        cin_p = 3                       # image channels stay unpadded for conv1
        for i, (co, ci, kh, kw, _, _) in enumerate(specs):
            key, kk = jax.random.split(key)
            fan_in = ci * kh * kw
            co_p = _pad128(co)
            # PyTorch layout (Cout,Cin,KH,KW) -> (KH,KW,Cin_p,Cout_p) once here.
            w = (jax.random.normal(kk, (co, ci, kh, kw), jnp.float32)
                 * jnp.sqrt(2.0 / fan_in))
            w = jnp.transpose(w, (2, 3, 1, 0))
            w = jnp.pad(w, ((0, 0), (0, 0), (0, cin_p - ci), (0, co_p - co)))
            K = kh * kw * cin_p
            Kp = _round_up(K, 128)
            w = w.reshape(K, co_p)
            if Kp != K:
                w = jnp.pad(w, ((0, Kp - K), (0, 0)))
            params[f"{prefix}_w{i}"] = w.astype(jnp.bfloat16)
            params[f"{prefix}_b{i}"] = jnp.zeros((1, co_p), jnp.float32)
            cin_p = co_p

    # ---- classifier weights: (in_p, out_p) bf16; c_w0 rows permuted so the
    #      runtime flatten is plain NHWC (branch, h, w, c) -- no NCHW transpose.
    hw = _feature_hw(cfg["image_hw"], specs)
    c5 = specs[-1][0]
    c5p = _pad128(c5)
    hidden, ncls = cfg["hidden"], cfg["num_classes"]
    hidden_p, ncls_p = _pad128(hidden), _pad128(ncls)

    key, kk = jax.random.split(key)
    w0 = jax.random.normal(kk, (hidden, 2 * c5 * hw * hw), jnp.float32) * 0.01
    # torch flatten order of cat([x1,x2],dim=1): index ((br*C5+c)*hw+i)*hw+j
    w0 = w0.T.reshape(2, c5, hw, hw, hidden)
    w0 = jnp.transpose(w0, (0, 2, 3, 1, 4))            # (br, i, j, c, out)
    w0 = jnp.pad(w0, ((0, 0), (0, 0), (0, 0),
                      (0, c5p - c5), (0, hidden_p - hidden)))
    params["c_w0"] = w0.reshape(2 * hw * hw * c5p, hidden_p).astype(jnp.bfloat16)
    params["c_b0"] = jnp.zeros((1, hidden_p), jnp.float32)

    key, kk = jax.random.split(key)
    w1 = jax.random.normal(kk, (hidden, hidden), jnp.float32) * 0.01
    params["c_w1"] = jnp.pad(
        w1.T, ((0, hidden_p - hidden), (0, hidden_p - hidden))).astype(jnp.bfloat16)
    params["c_b1"] = jnp.zeros((1, hidden_p), jnp.float32)

    key, kk = jax.random.split(key)
    w2 = jax.random.normal(kk, (ncls, hidden), jnp.float32) * 0.01
    params["c_w2"] = jnp.pad(
        w2.T, ((0, hidden_p - hidden), (0, ncls_p - ncls))).astype(jnp.bfloat16)
    params["c_b2"] = jnp.zeros((1, ncls_p), jnp.float32)
    return params, specs


def features(x_nchw, p, prefix, specs):
    x = jnp.transpose(x_nchw, (0, 2, 3, 1)).astype(jnp.bfloat16)  # NCHW -> NHWC
    for i, (_, _, kh, kw, stride, pad) in enumerate(specs):
        x = conv2d_nhwc(x, p[f"{prefix}_w{i}"], p[f"{prefix}_b{i}"],
                        kh, kw, stride, pad)
        if i in _POOL_AFTER:
            x = maxpool2d_nhwc(x)
    return x                                   # (B, h, w, C5_padded) bf16


def forward(specs, num_classes, params, x1, x2):
    f1 = features(x1, params, "f1", specs)
    f2 = features(x2, params, "f2", specs)
    B = f1.shape[0]
    # NHWC flatten per branch, branch-major concat; c_w0 rows were permuted at
    # init to match this order (== torch.cat + torch.flatten semantics).
    x = jnp.concatenate([f1.reshape(B, -1), f2.reshape(B, -1)], axis=1)
    # TODO(synk): reduce_channel=True branch (1x1 conv) not implemented; the
    # module's default constructor (reduce_channel=False) is what is modeled.
    # TODO(synk): nn.Dropout(p=0.5) treated as identity (inference forward).
    x = matmul_bias_act(x, params["c_w0"], params["c_b0"],
                        relu=True, out_dtype=jnp.bfloat16)
    x = matmul_bias_act(x, params["c_w1"], params["c_b1"],
                        relu=True, out_dtype=jnp.bfloat16)
    x = matmul_bias_act(x, params["c_w2"], params["c_b2"],
                        relu=False, out_dtype=jnp.float32)
    return x[:, :num_classes]


if __name__ == "__main__":
    # Scaled-down config (identical layer topology / kernel sizes / strides to
    # AlexNet_two_part_alone) so the demo finishes quickly; the kernels are
    # sized for the full model (224x224, 96/256/384/384/256, 4096-wide FC) too.
    cfg = dict(conv_channels=(32, 64, 96, 96, 64), hidden=256,
               num_classes=64, image_hw=95)

    key = jax.random.PRNGKey(0)
    kp, kx1, kx2 = jax.random.split(key, 3)
    params, specs = init_params(kp, cfg)
    x1 = jax.random.normal(kx1, (2, 3, cfg["image_hw"], cfg["image_hw"]),
                           jnp.float32)
    x2 = jax.random.normal(kx2, (2, 3, cfg["image_hw"], cfg["image_hw"]),
                           jnp.float32)

    fwd = jax.jit(functools.partial(forward, specs, cfg["num_classes"]))
    out = fwd(params, x1, x2)
    jax.block_until_ready(out)
    assert out.shape == (2, cfg["num_classes"]) and out.dtype == jnp.float32
    print("KERNEL_OK")
</pallas_src>

<mosaic_0001>
module attributes {stable_mosaic.version = 11 : i64} {
  func.func @_mm_kernel(%arg0: i32, %arg1: i32, %arg2: i32, %arg3: memref<128x384xbf16, #tpu.memory_space<vmem>>, %arg4: memref<384x128xbf16, #tpu.memory_space<vmem>>, %arg5: memref<1x128xf32, #tpu.memory_space<vmem>>, %arg6: memref<128x128xbf16, #tpu.memory_space<vmem>>, %arg7: memref<128x128xf32, #tpu.memory_space<vmem>>) attributes {dimension_semantics = [#tpu.dimension_semantics<parallel>, #tpu.dimension_semantics<parallel>, #tpu.dimension_semantics<arbitrary>], iteration_bounds = array<i64: 9, 1, 1>, scalar_prefetch = 0 : i64, scratch_operands = 1 : i64, tpu.core_type = #tpu.core_type<tc>, window_params = [{transform_indices = @transform_0, window_bounds = array<i64: 128, 384>}, {transform_indices = @transform_1, window_bounds = array<i64: 384, 128>}, {transform_indices = @transform_2, window_bounds = array<i64: 1, 128>}, {transform_indices = @transform_3, window_bounds = array<i64: 128, 128>}]} {
    %c0_i32 = arith.constant 0 : i32
    %0 = arith.cmpi eq, %arg2, %c0_i32 : i32
    %1 = arith.extui %0 : i1 to i32
    %c0_i32_0 = arith.constant 0 : i32
    %2 = arith.cmpi ne, %1, %c0_i32_0 : i32
    scf.if %2 {
      %cst_10 = arith.constant 0.000000e+00 : f32
      %12 = vector.broadcast %cst_10 : f32 to vector<128x128xf32>
      %c0_11 = arith.constant 0 : index
      %c0_12 = arith.constant 0 : index
      %13 = vector.load %arg7[%c0_11, %c0_12] : memref<128x128xf32, #tpu.memory_space<vmem>>, vector<128x128xf32>
      tpu.vector_store %arg7[%c0_11, %c0_12], %12 {strides = array<i32>} : memref<128x128xf32, #tpu.memory_space<vmem>>, vector<128x128xf32>,
    } else {
    }
    %c0 = arith.constant 0 : index
    %c0_1 = arith.constant 0 : index
    %3 = vector.load %arg7[%c0, %c0_1] : memref<128x128xf32, #tpu.memory_space<vmem>>, vector<128x128xf32>
    %c0_2 = arith.constant 0 : index
    %c0_3 = arith.constant 0 : index
    %4 = vector.load %arg3[%c0_2, %c0_3] : memref<128x384xbf16, #tpu.memory_space<vmem>>, vector<128x384xbf16>
    %c0_4 = arith.constant 0 : index
    %c0_5 = arith.constant 0 : index
    %5 = vector.load %arg4[%c0_4, %c0_5] : memref<384x128xbf16, #tpu.memory_space<vmem>>, vector<384x128xbf16>
    %cst = arith.constant dense<0.000000e+00> : vector<128x128xf32>
    %6 = tpu.matmul %4, %5, %cst {dimension_numbers = #tpu.dot_dimension_numbers<[1], [0], [0], [1], [0, 0, 1, 1], [], []>} : vector<128x384xbf16>, vector<384x128xbf16>, vector<128x128xf32> -> vector<128x128xf32>
    %7 = arith.addf %3, %6 : vector<128x128xf32>
    %c0_6 = arith.constant 0 : index
    %c0_7 = arith.constant 0 : index
    %8 = vector.load %arg7[%c0_6, %c0_7] : memref<128x128xf32, #tpu.memory_space<vmem>>, vector<128x128xf32>
    tpu.vector_store %arg7[%c0_6, %c0_7], %7 {strides = array<i32>} : memref<128x128xf32, #tpu.memory_space<vmem>>, vector<128x128xf32>,
    %c0_i32_8 = arith.constant 0 : i32
    %9 = arith.cmpi eq, %arg2, %c0_i32_8 : i32
    %10 = arith.extui %9 : i1 to i32
    %c0_i32_9 = arith.constant 0 : i32
    %11 = arith.cmpi ne, %10, %c0_i32_9 : i32
    scf.if %11 {
      %c0_10 = arith.constant 0 : index
      %c0_11 = arith.constant 0 : index
      %12 = vector.load %arg7[%c0_10, %c0_11] : memref<128x128xf32, #tpu.memory_space<vmem>>, vector<128x128xf32>
      %c0_12 = arith.constant 0 : index
      %c0_13 = arith.constant 0 : index
      %13 = vector.load %arg5[%c0_12, %c0_13] : memref<1x128xf32, #tpu.memory_space<vmem>>, vector<1x128xf32>
      %14 = vector.broadcast %13 : vector<1x128xf32> to vector<128x128xf32>
      %15 = arith.addf %12, %14 : vector<128x128xf32>
      %cst_14 = arith.constant 0.000000e+00 : f32
      %16 = vector.broadcast %cst_14 : f32 to vector<128x128xf32>
      %17 = arith.maximumf %15, %16 : vector<128x128xf32>
      %18 = arith.truncf %17 : vector<128x128xf32> to vector<128x128xbf16>
      %c0_15 = arith.constant 0 : index
      %c0_16 = arith.constant 0 : index
      %19 = vector.load %arg6[%c0_15, %c0_16] : memref<128x128xbf16, #tpu.memory_space<vmem>>, vector<128x128xbf16>
      tpu.vector_store %arg6[%c0_15, %c0_16], %18 {strides = array<i32>} : memref<128x128xbf16, #tpu.memory_space<vmem>>, vector<128x128xbf16>,
    } else {
    }
    return
  }
  func.func @transform_0(%arg0: i32, %arg1: i32, %arg2: i32) -> (i32, i32) {
    %c0_i32 = arith.constant 0 : i32
    return %arg0, %arg2 : i32, i32
  }
  func.func @transform_1(%arg0: i32, %arg1: i32, %arg2: i32) -> (i32, i32) {
    %c0_i32 = arith.constant 0 : i32
    return %arg2, %arg1 : i32, i32
  }
  func.func @transform_2(%arg0: i32, %arg1: i32, %arg2: i32) -> (i32, i32) {
    %c0_i32 = arith.constant 0 : i32
    %c0_i32_0 = arith.constant 0 : i32
    return %c0_i32, %arg1 : i32, i32
  }
  func.func @transform_3(%arg0: i32, %arg1: i32, %arg2: i32) -> (i32, i32) {
    %c0_i32 = arith.constant 0 : i32
    return %arg0, %arg1 : i32, i32
  }
}

module attributes {stable_mosaic.version = 11 : i64} {
  func.func @_maxpool_kernel(%arg0: i32, %arg1: i32, %arg2: memref<1x12x12x128xbf16, #tpu.memory_space<vmem>>, %arg3: memref<1x12x11x128xbf16, #tpu.memory_space<vmem>>, %arg4: memref<1x11x12x128xbf16, #tpu.memory_space<vmem>>, %arg5: memref<1x11x11x128xbf16, #tpu.memory_space<vmem>>, %arg6: memref<1x11x11x128xbf16, #tpu.memory_space<vmem>>) attributes {dimension_semantics = [#tpu.dimension_semantics<parallel>, #tpu.dimension_semantics<parallel>], iteration_bounds = array<i64: 2, 1>, scalar_prefetch = 0 : i64, scratch_operands = 0 : i64, tpu.core_type = #tpu.core_type<tc>, window_params = [{transform_indices = @transform_0, window_bounds = array<i64: 1, 12, 12, 128>}, {transform_indices = @transform_1, window_bounds = array<i64: 1, 12, 11, 128>}, {transform_indices = @transform_2, window_bounds = array<i64: 1, 11, 12, 128>}, {transform_indices = @transform_3, window_bounds = array<i64: 1, 11, 11, 128>}, {transform_indices = @transform_4, window_bounds = array<i64: 1, 11, 11, 128>}]} {
    %c0 = arith.constant 0 : index
    %c0_0 = arith.constant 0 : index
    %c0_1 = arith.constant 0 : index
    %c0_2 = arith.constant 0 : index
    %0 = vector.load %arg2[%c0, %c0_0, %c0_1, %c0_2] : memref<1x12x12x128xbf16, #tpu.memory_space<vmem>>, vector<1x12x12x128xbf16>
    %c0_3 = arith.constant 0 : index
    %c0_4 = arith.constant 0 : index
    %c0_5 = arith.constant 0 : index
    %c0_6 = arith.constant 0 : index
    %1 = vector.load %arg3[%c0_3, %c0_4, %c0_5, %c0_6] : memref<1x12x11x128xbf16, #tpu.memory_space<vmem>>, vector<1x12x11x128xbf16>
    %c0_7 = arith.constant 0 : index
    %c0_8 = arith.constant 0 : index
    %c0_9 = arith.constant 0 : index
    %c0_10 = arith.constant 0 : index
    %2 = vector.load %arg4[%c0_7, %c0_8, %c0_9, %c0_10] : memref<1x11x12x128xbf16, #tpu.memory_space<vmem>>, vector<1x11x12x128xbf16>
    %c0_11 = arith.constant 0 : index
    %c0_12 = arith.constant 0 : index
    %c0_13 = arith.constant 0 : index
    %c0_14 = arith.constant 0 : index
    %3 = vector.load %arg5[%c0_11, %c0_12, %c0_13, %c0_14] : memref<1x11x11x128xbf16, #tpu.memory_space<vmem>>, vector<1x11x11x128xbf16>
    %4 = vector.extract_strided_slice %0 {offsets = [0, 0, 0, 0], sizes = [1, 11, 11, 128], strides = [1, 1, 1, 1]} : vector<1x12x12x128xbf16> to vector<1x11x11x128xbf16>
    %5 = vector.extract_strided_slice %1 {offsets = [0, 0, 0, 0], sizes = [1, 11, 11, 128], strides = [1, 1, 1, 1]} : vector<1x12x11x128xbf16> to vector<1x11x11x128xbf16>
    %6 = arith.maximumf %4, %5 : vector<1x11x11x128xbf16>
    %7 = vector.extract_strided_slice %0 {offsets = [0, 0, 1, 0], sizes = [1, 11, 11, 128], strides = [1, 1, 1, 1]} : vector<1x12x12x128xbf16> to vector<1x11x11x128xbf16>
    %8 = arith.maximumf %6, %7 : vector<1x11x11x128xbf16>
    %9 = vector.extract_strided_slice %2 {offsets = [0, 0, 0, 0], sizes = [1, 11, 11, 128], strides = [1, 1, 1, 1]} : vector<1x11x12x128xbf16> to vector<1x11x11x128xbf16>
    %10 = arith.maximumf %8, %9 : vector<1x11x11x128xbf16>
    %11 = arith.maximumf %10, %3 : vector<1x11x11x128xbf16>
    %12 = vector.extract_strided_slice %2 {offsets = [0, 0, 1, 0], sizes = [1, 11, 11, 128], strides = [1, 1, 1, 1]} : vector<1x11x12x128xbf16> to vector<1x11x11x128xbf16>
    %13 = arith.maximumf %11, %12 : vector<1x11x11x128xbf16>
    %14 = vector.extract_strided_slice %0 {offsets = [0, 1, 0, 0], sizes = [1, 11, 11, 128], strides = [1, 1, 1, 1]} : vector<1x12x12x128xbf16> to vector<1x11x11x128xbf16>
    %15 = arith.maximumf %13, %14 : vector<1x11x11x128xbf16>
    %16 = vector.extract_strided_slice %1 {offsets = [0, 1, 0, 0], sizes = [1, 11, 11, 128], strides = [1, 1, 1, 1]} : vector<1x12x11x128xbf16> to vector<1x11x11x128xbf16>
    %17 = arith.maximumf %15, %16 : vector<1x11x11x128xbf16>
    %18 = vector.extract_strided_slice %0 {offsets = [0, 1, 1, 0], sizes = [1, 11, 11, 128], strides = [1, 1, 1, 1]} : vector<1x12x12x128xbf16> to vector<1x11x11x128xbf16>
    %19 = arith.maximumf %17, %18 : vector<1x11x11x128xbf16>
    %c0_15 = arith.constant 0 : index
    %c0_16 = arith.constant 0 : index
    %c0_17 = arith.constant 0 : index
    %c0_18 = arith.constant 0 : index
    %20 = vector.load %arg6[%c0_15, %c0_16, %c0_17, %c0_18] : memref<1x11x11x128xbf16, #tpu.memory_space<vmem>>, vector<1x11x11x128xbf16>
    tpu.vector_store %arg6[%c0_15, %c0_16, %c0_17, %c0_18], %19 {strides = array<i32>} : memref<1x11x11x128xbf16, #tpu.memory_space<vmem>>, vector<1x11x11x128xbf16>,
    return
  }
  func.func @transform_0(%arg0: i32, %arg1: i32) -> (i32, i32, i32, i32) {
    %c0_i32 = arith.constant 0 : i32
    %c0_i32_0 = arith.constant 0 : i32
    %c0_i32_1 = arith.constant 0 : i32
    return %arg0, %c0_i32, %c0_i32_0, %arg1 : i32, i32, i32, i32
  }
  func.func @transform_1(%arg0: i32, %arg1: i32) -> (i32, i32, i32, i32) {
    %c0_i32 = arith.constant 0 : i32
    %c0_i32_0 = arith.constant 0 : i32
    %c0_i32_1 = arith.constant 0 : i32
    return %arg0, %c0_i32, %c0_i32_0, %arg1 : i32, i32, i32, i32
  }
  func.func @transform_2(%arg0: i32, %arg1: i32) -> (i32, i32, i32, i32) {
    %c0_i32 = arith.constant 0 : i32
    %c0_i32_0 = arith.constant 0 : i32
    %c0_i32_1 = arith.constant 0 : i32
    return %arg0, %c0_i32, %c0_i32_0, %arg1 : i32, i32, i32, i32
  }
  func.func @transform_3(%arg0: i32, %arg1: i32) -> (i32, i32, i32, i32) {
    %c0_i32 = arith.constant 0 : i32
    %c0_i32_0 = arith.constant 0 : i32
    %c0_i32_1 = arith.constant 0 : i32
    return %arg0, %c0_i32, %c0_i32_0, %arg1 : i32, i32, i32, i32
  }
  func.func @transform_4(%arg0: i32, %arg1: i32) -> (i32, i32, i32, i32) {
    %c0_i32 = arith.constant 0 : i32
    %c0_i32_0 = arith.constant 0 : i32
    %c0_i32_1 = arith.constant 0 : i32
    return %arg0, %c0_i32, %c0_i32_0, %arg1 : i32, i32, i32, i32
  }
}

module attributes {stable_mosaic.version = 11 : i64} {
  func.func @_mm_kernel(%arg0: i32, %arg1: i32, %arg2: i32, %arg3: memref<256x640xbf16, #tpu.memory_space<vmem>>, %arg4: memref<640x128xbf16, #tpu.memory_space<vmem>>, %arg5: memref<1x128xf32, #tpu.memory_space<vmem>>, %arg6: memref<256x128xbf16, #tpu.memory_space<vmem>>, %arg7: memref<256x128xf32, #tpu.memory_space<vmem>>) attributes {dimension_semantics = [#tpu.dimension_semantics<parallel>, #tpu.dimension_semantics<parallel>, #tpu.dimension_semantics<arbitrary>], iteration_bounds = array<i64: 1, 1, 5>, scalar_prefetch = 0 : i64, scratch_operands = 1 : i64, tpu.core_type = #tpu.core_type<tc>, window_params = [{transform_indices = @transform_0, window_bounds = array<i64: 256, 640>}, {transform_indices = @transform_1, window_bounds = array<i64: 640, 128>}, {transform_indices = @transform_2, window_bounds = array<i64: 1, 128>}, {transform_indices = @transform_3, window_bounds = array<i64: 256, 128>}]} {
    %c0_i32 = arith.constant 0 : i32
    %0 = arith.cmpi eq, %arg2, %c0_i32 : i32
    %1 = arith.extui %0 : i1 to i32
    %c0_i32_0 = arith.constant 0 : i32
    %2 = arith.cmpi ne, %1, %c0_i32_0 : i32
    scf.if %2 {
      %cst_9 = arith.constant 0.000000e+00 : f32
      %12 = vector.broadcast %cst_9 : f32 to vector<256x128xf32>
      %c0_10 = arith.constant 0 : index
      %c0_11 = arith.constant 0 : index
      %13 = vector.load %arg7[%c0_10, %c0_11] : memref<256x128xf32, #tpu.memory_space<vmem>>, vector<256x128xf32>
      tpu.vector_store %arg7[%c0_10, %c0_11], %12 {strides = array<i32>} : memref<256x128xf32, #tpu.memory_space<vmem>>, vector<256x128xf32>,
    } else {
    }
    %c0 = arith.constant 0 : index
    %c0_1 = arith.constant 0 : index
    %3 = vector.load %arg7[%c0, %c0_1] : memref<256x128xf32, #tpu.memory_space<vmem>>, vector<256x128xf32>
    %c0_2 = arith.constant 0 : index
    %c0_3 = arith.constant 0 : index
    %4 = vector.load %arg3[%c0_2, %c0_3] : memref<256x640xbf16, #tpu.memory_space<vmem>>, vector<256x640xbf16>
    %c0_4 = arith.constant 0 : index
    %c0_5 = arith.constant 0 : index
    %5 = vector.load %arg4[%c0_4, %c0_5] : memref<640x128xbf16, #tpu.memory_space<vmem>>, vector<640x128xbf16>
    %cst = arith.constant dense<0.000000e+00> : vector<256x128xf32>
    %6 = tpu.matmul %4, %5, %cst {dimension_numbers = #tpu.dot_dimension_numbers<[1], [0], [0], [1], [0, 0, 1, 1], [], []>} : vector<256x640xbf16>, vector<640x128xbf16>, vector<256x128xf32> -> vector<256x128xf32>
    %7 = arith.addf %3, %6 : vector<256x128xf32>
    %c0_6 = arith.constant 0 : index
    %c0_7 = arith.constant 0 : index
    %8 = vector.load %arg7[%c0_6, %c0_7] : memref<256x128xf32, #tpu.memory_space<vmem>>, vector<256x128xf32>
    tpu.vector_store %arg7[%c0_6, %c0_7], %7 {strides = array<i32>} : memref<256x128xf32, #tpu.memory_space<vmem>>, vector<256x128xf32>,
    %c4_i32 = arith.constant 4 : i32
    %9 = arith.cmpi eq, %arg2, %c4_i32 : i32
    %10 = arith.extui %9 : i1 to i32
    %c0_i32_8 = arith.constant 0 : i32
    %11 = arith.cmpi ne, %10, %c0_i32_8 : i32
    scf.if %11 {
      %c0_9 = arith.constant 0 : index
      %c0_10 = arith.constant 0 : index
      %12 = vector.load %arg7[%c0_9, %c0_10] : memref<256x128xf32, #tpu.memory_space<vmem>>, vector<256x128xf32>
      %c0_11 = arith.constant 0 : index
      %c0_12 = arith.constant 0 : index
      %13 = vector.load %arg5[%c0_11, %c0_12] : memref<1x128xf32, #tpu.memory_space<vmem>>, vector<1x128xf32>
      %14 = vector.broadcast %13 : vector<1x128xf32> to vector<256x128xf32>
      %15 = arith.addf %12, %14 : vector<256x128xf32>
      %cst_13 = arith.constant 0.000000e+00 : f32
      %16 = vector.broadcast %cst_13 : f32 to vector<256x128xf32>
      %17 = arith.maximumf %15, %16 : vector<256x128xf32>
      %18 = arith.truncf %17 : vector<256x128xf32> to vector<256x128xbf16>
      %c0_14 = arith.constant 0 : index
      %c0_15 = arith.constant 0 : index
      %19 = vector.load %arg6[%c0_14, %c0_15] : memref<256x128xbf16, #tpu.memory_space<vmem>>, vector<256x128xbf16>
      tpu.vector_store %arg6[%c0_14, %c0_15], %18 {strides = array<i32>} : memref<256x128xbf16, #tpu.memory_space<vmem>>, vector<256x128xbf16>,
    } else {
    }
    return
  }
  func.func @transform_0(%arg0: i32, %arg1: i32, %arg2: i32) -> (i32, i32) {
    %c0_i32 = arith.constant 0 : i32
    return %arg0, %arg2 : i32, i32
  }
  func.func @transform_1(%arg0: i32, %arg1: i32, %arg2: i32) -> (i32, i32) {
    %c0_i32 = arith.constant 0 : i32
    return %arg2, %arg1 : i32, i32
  }
  func.func @transform_2(%arg0: i32, %arg1: i32, %arg2: i32) -> (i32, i32) {
    %c0_i32 = arith.constant 0 : i32
    %c0_i32_0 = arith.constant 0 : i32
    return %c0_i32, %arg1 : i32, i32
  }
  func.func @transform_3(%arg0: i32, %arg1: i32, %arg2: i32) -> (i32, i32) {
    %c0_i32 = arith.constant 0 : i32
    return %arg0, %arg1 : i32, i32
  }
}

module attributes {stable_mosaic.version = 11 : i64} {
  func.func @_maxpool_kernel(%arg0: i32, %arg1: i32, %arg2: memref<1x6x6x128xbf16, #tpu.memory_space<vmem>>, %arg3: memref<1x6x5x128xbf16, #tpu.memory_space<vmem>>, %arg4: memref<1x5x6x128xbf16, #tpu.memory_space<vmem>>, %arg5: memref<1x5x5x128xbf16, #tpu.memory_space<vmem>>, %arg6: memref<1x5x5x128xbf16, #tpu.memory_space<vmem>>) attributes {dimension_semantics = [#tpu.dimension_semantics<parallel>, #tpu.dimension_semantics<parallel>], iteration_bounds = array<i64: 2, 1>, scalar_prefetch = 0 : i64, scratch_operands = 0 : i64, tpu.core_type = #tpu.core_type<tc>, window_params = [{transform_indices = @transform_0, window_bounds = array<i64: 1, 6, 6, 128>}, {transform_indices = @transform_1, window_bounds = array<i64: 1, 6, 5, 128>}, {transform_indices = @transform_2, window_bounds = array<i64: 1, 5, 6, 128>}, {transform_indices = @transform_3, window_bounds = array<i64: 1, 5, 5, 128>}, {transform_indices = @transform_4, window_bounds = array<i64: 1, 5, 5, 128>}]} {
    %c0 = arith.constant 0 : index
    %c0_0 = arith.constant 0 : index
    %c0_1 = arith.constant 0 : index
    %c0_2 = arith.constant 0 : index
    %0 = vector.load %arg2[%c0, %c0_0, %c0_1, %c0_2] : memref<1x6x6x128xbf16, #tpu.memory_space<vmem>>, vector<1x6x6x128xbf16>
    %c0_3 = arith.constant 0 : index
    %c0_4 = arith.constant 0 : index
    %c0_5 = arith.constant 0 : index
    %c0_6 = arith.constant 0 : index
    %1 = vector.load %arg3[%c0_3, %c0_4, %c0_5, %c0_6] : memref<1x6x5x128xbf16, #tpu.memory_space<vmem>>, vector<1x6x5x128xbf16>
    %c0_7 = arith.constant 0 : index
    %c0_8 = arith.constant 0 : index
    %c0_9 = arith.constant 0 : index
    %c0_10 = arith.constant 0 : index
    %2 = vector.load %arg4[%c0_7, %c0_8, %c0_9, %c0_10] : memref<1x5x6x128xbf16, #tpu.memory_space<vmem>>, vector<1x5x6x128xbf16>
    %c0_11 = arith.constant 0 : index
    %c0_12 = arith.constant 0 : index
    %c0_13 = arith.constant 0 : index
    %c0_14 = arith.constant 0 : index
    %3 = vector.load %arg5[%c0_11, %c0_12, %c0_13, %c0_14] : memref<1x5x5x128xbf16, #tpu.memory_space<vmem>>, vector<1x5x5x128xbf16>
    %4 = vector.extract_strided_slice %0 {offsets = [0, 0, 0, 0], sizes = [1, 5, 5, 128], strides = [1, 1, 1, 1]} : vector<1x6x6x128xbf16> to vector<1x5x5x128xbf16>
    %5 = vector.extract_strided_slice %1 {offsets = [0, 0, 0, 0], sizes = [1, 5, 5, 128], strides = [1, 1, 1, 1]} : vector<1x6x5x128xbf16> to vector<1x5x5x128xbf16>
    %6 = arith.maximumf %4, %5 : vector<1x5x5x128xbf16>
    %7 = vector.extract_strided_slice %0 {offsets = [0, 0, 1, 0], sizes = [1, 5, 5, 128], strides = [1, 1, 1, 1]} : vector<1x6x6x128xbf16> to vector<1x5x5x128xbf16>
    %8 = arith.maximumf %6, %7 : vector<1x5x5x128xbf16>
    %9 = vector.extract_strided_slice %2 {offsets = [0, 0, 0, 0], sizes = [1, 5, 5, 128], strides = [1, 1, 1, 1]} : vector<1x5x6x128xbf16> to vector<1x5x5x128xbf16>
    %10 = arith.maximumf %8, %9 : vector<1x5x5x128xbf16>
    %11 = arith.maximumf %10, %3 : vector<1x5x5x128xbf16>
    %12 = vector.extract_strided_slice %2 {offsets = [0, 0, 1, 0], sizes = [1, 5, 5, 128], strides = [1, 1, 1, 1]} : vector<1x5x6x128xbf16> to vector<1x5x5x128xbf16>
    %13 = arith.maximumf %11, %12 : vector<1x5x5x128xbf16>
    %14 = vector.extract_strided_slice %0 {offsets = [0, 1, 0, 0], sizes = [1, 5, 5, 128], strides = [1, 1, 1, 1]} : vector<1x6x6x128xbf16> to vector<1x5x5x128xbf16>
    %15 = arith.maximumf %13, %14 : vector<1x5x5x128xbf16>
    %16 = vector.extract_strided_slice %1 {offsets = [0, 1, 0, 0], sizes = [1, 5, 5, 128], strides = [1, 1, 1, 1]} : vector<1x6x5x128xbf16> to vector<1x5x5x128xbf16>
    %17 = arith.maximumf %15, %16 : vector<1x5x5x128xbf16>
    %18 = vector.extract_strided_slice %0 {offsets = [0, 1, 1, 0], sizes = [1, 5, 5, 128], strides = [1, 1, 1, 1]} : vector<1x6x6x128xbf16> to vector<1x5x5x128xbf16>
    %19 = arith.maximumf %17, %18 : vector<1x5x5x128xbf16>
    %c0_15 = arith.constant 0 : index
    %c0_16 = arith.constant 0 : index
    %c0_17 = arith.constant 0 : index
    %c0_18 = arith.constant 0 : index
    %20 = vector.load %arg6[%c0_15, %c0_16, %c0_17, %c0_18] : memref<1x5x5x128xbf16, #tpu.memory_space<vmem>>, vector<1x5x5x128xbf16>
    tpu.vector_store %arg6[%c0_15, %c0_16, %c0_17, %c0_18], %19 {strides = array<i32>} : memref<1x5x5x128xbf16, #tpu.memory_space<vmem>>, vector<1x5x5x128xbf16>,
    return
  }
  func.func @transform_0(%arg0: i32, %arg1: i32) -> (i32, i32, i32, i32) {
    %c0_i32 = arith.constant 0 : i32
    %c0_i32_0 = arith.constant 0 : i32
    %c0_i32_1 = arith.constant 0 : i32
    return %arg0, %c0_i32, %c0_i32_0, %arg1 : i32, i32, i32, i32
  }
  func.func @transform_1(%arg0: i32, %arg1: i32) -> (i32, i32, i32, i32) {
    %c0_i32 = arith.constant 0 : i32
    %c0_i32_0 = arith.constant 0 : i32
    %c0_i32_1 = arith.constant 0 : i32
    return %arg0, %c0_i32, %c0_i32_0, %arg1 : i32, i32, i32, i32
  }
  func.func @transform_2(%arg0: i32, %arg1: i32) -> (i32, i32, i32, i32) {
    %c0_i32 = arith.constant 0 : i32
    %c0_i32_0 = arith.constant 0 : i32
    %c0_i32_1 = arith.constant 0 : i32
    return %arg0, %c0_i32, %c0_i32_0, %arg1 : i32, i32, i32, i32
  }
  func.func @transform_3(%arg0: i32, %arg1: i32) -> (i32, i32, i32, i32) {
    %c0_i32 = arith.constant 0 : i32
    %c0_i32_0 = arith.constant 0 : i32
    %c0_i32_1 = arith.constant 0 : i32
    return %arg0, %c0_i32, %c0_i32_0, %arg1 : i32, i32, i32, i32
  }
  func.func @transform_4(%arg0: i32, %arg1: i32) -> (i32, i32, i32, i32) {
    %c0_i32 = arith.constant 0 : i32
    %c0_i32_0 = arith.constant 0 : i32
    %c0_i32_1 = arith.constant 0 : i32
    return %arg0, %c0_i32, %c0_i32_0, %arg1 : i32, i32, i32, i32
  }
}

module attributes {stable_mosaic.version = 11 : i64} {
  func.func @_mm_kernel(%arg0: i32, %arg1: i32, %arg2: i32, %arg3: memref<64x384xbf16, #tpu.memory_space<vmem>>, %arg4: memref<384x128xbf16, #tpu.memory_space<vmem>>, %arg5: memref<1x128xf32, #tpu.memory_space<vmem>>, %arg6: memref<64x128xbf16, #tpu.memory_space<vmem>>, %arg7: memref<64x128xf32, #tpu.memory_space<vmem>>) attributes {dimension_semantics = [#tpu.dimension_semantics<parallel>, #tpu.dimension_semantics<parallel>, #tpu.dimension_semantics<arbitrary>], iteration_bounds = array<i64: 1, 1, 3>, scalar_prefetch = 0 : i64, scratch_operands = 1 : i64, tpu.core_type = #tpu.core_type<tc>, window_params = [{transform_indices = @transform_0, window_bounds = array<i64: 64, 384>}, {transform_indices = @transform_1, window_bounds = array<i64: 384, 128>}, {transform_indices = @transform_2, window_bounds = array<i64: 1, 128>}, {transform_indices = @transform_3, window_bounds = array<i64: 64, 128>}]} {
    %c0_i32 = arith.constant 0 : i32
    %0 = arith.cmpi eq, %arg2, %c0_i32 : i32
    %1 = arith.extui %0 : i1 to i32
    %c0_i32_0 = arith.constant 0 : i32
    %2 = arith.cmpi ne, %1, %c0_i32_0 : i32
    scf.if %2 {
      %cst_9 = arith.constant 0.000000e+00 : f32
      %12 = vector.broadcast %cst_9 : f32 to vector<64x128xf32>
      %c0_10 = arith.constant 0 : index
      %c0_11 = arith.constant 0 : index
      %13 = vector.load %arg7[%c0_10, %c0_11] : memref<64x128xf32, #tpu.memory_space<vmem>>, vector<64x128xf32>
      tpu.vector_store %arg7[%c0_10, %c0_11], %12 {strides = array<i32>} : memref<64x128xf32, #tpu.memory_space<vmem>>, vector<64x128xf32>,
    } else {
    }
    %c0 = arith.constant 0 : index
    %c0_1 = arith.constant 0 : index
    %3 = vector.load %arg7[%c0, %c0_1] : memref<64x128xf32, #tpu.memory_space<vmem>>, vector<64x128xf32>
    %c0_2 = arith.constant 0 : index
    %c0_3 = arith.constant 0 : index
    %4 = vector.load %arg3[%c0_2, %c0_3] : memref<64x384xbf16, #tpu.memory_space<vmem>>, vector<64x384xbf16>
    %c0_4 = arith.constant 0 : index
    %c0_5 = arith.constant 0 : index
    %5 = vector.load %arg4[%c0_4, %c0_5] : memref<384x128xbf16, #tpu.memory_space<vmem>>, vector<384x128xbf16>
    %cst = arith.constant dense<0.000000e+00> : vector<64x128xf32>
    %6 = tpu.matmul %4, %5, %cst {dimension_numbers = #tpu.dot_dimension_numbers<[1], [0], [0], [1], [0, 0, 1, 1], [], []>} : vector<64x384xbf16>, vector<384x128xbf16>, vector<64x128xf32> -> vector<64x128xf32>
    %7 = arith.addf %3, %6 : vector<64x128xf32>
    %c0_6 = arith.constant 0 : index
    %c0_7 = arith.constant 0 : index
    %8 = vector.load %arg7[%c0_6, %c0_7] : memref<64x128xf32, #tpu.memory_space<vmem>>, vector<64x128xf32>
    tpu.vector_store %arg7[%c0_6, %c0_7], %7 {strides = array<i32>} : memref<64x128xf32, #tpu.memory_space<vmem>>, vector<64x128xf32>,
    %c2_i32 = arith.constant 2 : i32
    %9 = arith.cmpi eq, %arg2, %c2_i32 : i32
    %10 = arith.extui %9 : i1 to i32
    %c0_i32_8 = arith.constant 0 : i32
    %11 = arith.cmpi ne, %10, %c0_i32_8 : i32
    scf.if %11 {
      %c0_9 = arith.constant 0 : index
      %c0_10 = arith.constant 0 : index
      %12 = vector.load %arg7[%c0_9, %c0_10] : memref<64x128xf32, #tpu.memory_space<vmem>>, vector<64x128xf32>
      %c0_11 = arith.constant 0 : index
      %c0_12 = arith.constant 0 : index
      %13 = vector.load %arg5[%c0_11, %c0_12] : memref<1x128xf32, #tpu.memory_space<vmem>>, vector<1x128xf32>
      %14 = vector.broadcast %13 : vector<1x128xf32> to vector<64x128xf32>
      %15 = arith.addf %12, %14 : vector<64x128xf32>
      %cst_13 = arith.constant 0.000000e+00 : f32
      %16 = vector.broadcast %cst_13 : f32 to vector<64x128xf32>
      %17 = arith.maximumf %15, %16 : vector<64x128xf32>
      %18 = arith.truncf %17 : vector<64x128xf32> to vector<64x128xbf16>
      %c0_14 = arith.constant 0 : index
      %c0_15 = arith.constant 0 : index
      %19 = vector.load %arg6[%c0_14, %c0_15] : memref<64x128xbf16, #tpu.memory_space<vmem>>, vector<64x128xbf16>
      tpu.vector_store %arg6[%c0_14, %c0_15], %18 {strides = array<i32>} : memref<64x128xbf16, #tpu.memory_space<vmem>>, vector<64x128xbf16>,
    } else {
    }
    return
  }
  func.func @transform_0(%arg0: i32, %arg1: i32, %arg2: i32) -> (i32, i32) {
    %c0_i32 = arith.constant 0 : i32
    return %arg0, %arg2 : i32, i32
  }
  func.func @transform_1(%arg0: i32, %arg1: i32, %arg2: i32) -> (i32, i32) {
    %c0_i32 = arith.constant 0 : i32
    return %arg2, %arg1 : i32, i32
  }
  func.func @transform_2(%arg0: i32, %arg1: i32, %arg2: i32) -> (i32, i32) {
    %c0_i32 = arith.constant 0 : i32
    %c0_i32_0 = arith.constant 0 : i32
    return %c0_i32, %arg1 : i32, i32
  }
  func.func @transform_3(%arg0: i32, %arg1: i32, %arg2: i32) -> (i32, i32) {
    %c0_i32 = arith.constant 0 : i32
    return %arg0, %arg1 : i32, i32
  }
}

module attributes {stable_mosaic.version = 11 : i64} {
  func.func @_maxpool_kernel(%arg0: i32, %arg1: i32, %arg2: memref<1x3x3x128xbf16, #tpu.memory_space<vmem>>, %arg3: memref<1x3x2x128xbf16, #tpu.memory_space<vmem>>, %arg4: memref<1x2x3x128xbf16, #tpu.memory_space<vmem>>, %arg5: memref<1x2x2x128xbf16, #tpu.memory_space<vmem>>, %arg6: memref<1x2x2x128xbf16, #tpu.memory_space<vmem>>) attributes {dimension_semantics = [#tpu.dimension_semantics<parallel>, #tpu.dimension_semantics<parallel>], iteration_bounds = array<i64: 2, 1>, scalar_prefetch = 0 : i64, scratch_operands = 0 : i64, tpu.core_type = #tpu.core_type<tc>, window_params = [{transform_indices = @transform_0, window_bounds = array<i64: 1, 3, 3, 128>}, {transform_indices = @transform_1, window_bounds = array<i64: 1, 3, 2, 128>}, {transform_indices = @transform_2, window_bounds = array<i64: 1, 2, 3, 128>}, {transform_indices = @transform_3, window_bounds = array<i64: 1, 2, 2, 128>}, {transform_indices = @transform_4, window_bounds = array<i64: 1, 2, 2, 128>}]} {
    %c0 = arith.constant 0 : index
    %c0_0 = arith.constant 0 : index
    %c0_1 = arith.constant 0 : index
    %c0_2 = arith.constant 0 : index
    %0 = vector.load %arg2[%c0, %c0_0, %c0_1, %c0_2] : memref<1x3x3x128xbf16, #tpu.memory_space<vmem>>, vector<1x3x3x128xbf16>
    %c0_3 = arith.constant 0 : index
    %c0_4 = arith.constant 0 : index
    %c0_5 = arith.constant 0 : index
    %c0_6 = arith.constant 0 : index
    %1 = vector.load %arg3[%c0_3, %c0_4, %c0_5, %c0_6] : memref<1x3x2x128xbf16, #tpu.memory_space<vmem>>, vector<1x3x2x128xbf16>
    %c0_7 = arith.constant 0 : index
    %c0_8 = arith.constant 0 : index
    %c0_9 = arith.constant 0 : index
    %c0_10 = arith.constant 0 : index
    %2 = vector.load %arg4[%c0_7, %c0_8, %c0_9, %c0_10] : memref<1x2x3x128xbf16, #tpu.memory_space<vmem>>, vector<1x2x3x128xbf16>
    %c0_11 = arith.constant 0 : index
    %c0_12 = arith.constant 0 : index
    %c0_13 = arith.constant 0 : index
    %c0_14 = arith.constant 0 : index
    %3 = vector.load %arg5[%c0_11, %c0_12, %c0_13, %c0_14] : memref<1x2x2x128xbf16, #tpu.memory_space<vmem>>, vector<1x2x2x128xbf16>
    %4 = vector.extract_strided_slice %0 {offsets = [0, 0, 0, 0], sizes = [1, 2, 2, 128], strides = [1, 1, 1, 1]} : vector<1x3x3x128xbf16> to vector<1x2x2x128xbf16>
    %5 = vector.extract_strided_slice %1 {offsets = [0, 0, 0, 0], sizes = [1, 2, 2, 128], strides = [1, 1, 1, 1]} : vector<1x3x2x128xbf16> to vector<1x2x2x128xbf16>
    %6 = arith.maximumf %4, %5 : vector<1x2x2x128xbf16>
    %7 = vector.extract_strided_slice %0 {offsets = [0, 0, 1, 0], sizes = [1, 2, 2, 128], strides = [1, 1, 1, 1]} : vector<1x3x3x128xbf16> to vector<1x2x2x128xbf16>
    %8 = arith.maximumf %6, %7 : vector<1x2x2x128xbf16>
    %9 = vector.extract_strided_slice %2 {offsets = [0, 0, 0, 0], sizes = [1, 2, 2, 128], strides = [1, 1, 1, 1]} : vector<1x2x3x128xbf16> to vector<1x2x2x128xbf16>
    %10 = arith.maximumf %8, %9 : vector<1x2x2x128xbf16>
    %11 = arith.maximumf %10, %3 : vector<1x2x2x128xbf16>
    %12 = vector.extract_strided_slice %2 {offsets = [0, 0, 1, 0], sizes = [1, 2, 2, 128], strides = [1, 1, 1, 1]} : vector<1x2x3x128xbf16> to vector<1x2x2x128xbf16>
    %13 = arith.maximumf %11, %12 : vector<1x2x2x128xbf16>
    %14 = vector.extract_strided_slice %0 {offsets = [0, 1, 0, 0], sizes = [1, 2, 2, 128], strides = [1, 1, 1, 1]} : vector<1x3x3x128xbf16> to vector<1x2x2x128xbf16>
    %15 = arith.maximumf %13, %14 : vector<1x2x2x128xbf16>
    %16 = vector.extract_strided_slice %1 {offsets = [0, 1, 0, 0], sizes = [1, 2, 2, 128], strides = [1, 1, 1, 1]} : vector<1x3x2x128xbf16> to vector<1x2x2x128xbf16>
    %17 = arith.maximumf %15, %16 : vector<1x2x2x128xbf16>
    %18 = vector.extract_strided_slice %0 {offsets = [0, 1, 1, 0], sizes = [1, 2, 2, 128], strides = [1, 1, 1, 1]} : vector<1x3x3x128xbf16> to vector<1x2x2x128xbf16>
    %19 = arith.maximumf %17, %18 : vector<1x2x2x128xbf16>
    %c0_15 = arith.constant 0 : index
    %c0_16 = arith.constant 0 : index
    %c0_17 = arith.constant 0 : index
    %c0_18 = arith.constant 0 : index
    %20 = vector.load %arg6[%c0_15, %c0_16, %c0_17, %c0_18] : memref<1x2x2x128xbf16, #tpu.memory_space<vmem>>, vector<1x2x2x128xbf16>
    tpu.vector_store %arg6[%c0_15, %c0_16, %c0_17, %c0_18], %19 {strides = array<i32>} : memref<1x2x2x128xbf16, #tpu.memory_space<vmem>>, vector<1x2x2x128xbf16>,
    return
  }
  func.func @transform_0(%arg0: i32, %arg1: i32) -> (i32, i32, i32, i32) {
    %c0_i32 = arith.constant 0 : i32
    %c0_i32_0 = arith.constant 0 : i32
    %c0_i32_1 = arith.constant 0 : i32
    return %arg0, %c0_i32, %c0_i32_0, %arg1 : i32, i32, i32, i32
  }
  func.func @transform_1(%arg0: i32, %arg1: i32) -> (i32, i32, i32, i32) {
    %c0_i32 = arith.constant 0 : i32
    %c0_i32_0 = arith.constant 0 : i32
    %c0_i32_1 = arith.constant 0 : i32
    return %arg0, %c0_i32, %c0_i32_0, %arg1 : i32, i32, i32, i32
  }
  func.func @transform_2(%arg0: i32, %arg1: i32) -> (i32, i32, i32, i32) {
    %c0_i32 = arith.constant 0 : i32
    %c0_i32_0 = arith.constant 0 : i32
    %c0_i32_1 = arith.constant 0 : i32
    return %arg0, %c0_i32, %c0_i32_0, %arg1 : i32, i32, i32, i32
  }
  func.func @transform_3(%arg0: i32, %arg1: i32) -> (i32, i32, i32, i32) {
    %c0_i32 = arith.constant 0 : i32
    %c0_i32_0 = arith.constant 0 : i32
    %c0_i32_1 = arith.constant 0 : i32
    return %arg0, %c0_i32, %c0_i32_0, %arg1 : i32, i32, i32, i32
  }
  func.func @transform_4(%arg0: i32, %arg1: i32) -> (i32, i32, i32, i32) {
    %c0_i32 = arith.constant 0 : i32
    %c0_i32_0 = arith.constant 0 : i32
    %c0_i32_1 = arith.constant 0 : i32
    return %arg0, %c0_i32, %c0_i32_0, %arg1 : i32, i32, i32, i32
  }
}

module attributes {stable_mosaic.version = 11 : i64} {
  func.func @_mm_kernel(%arg0: i32, %arg1: i32, %arg2: i32, %arg3: memref<16x1024xbf16, #tpu.memory_space<vmem>>, %arg4: memref<1024x128xbf16, #tpu.memory_space<vmem>>, %arg5: memref<1x128xf32, #tpu.memory_space<vmem>>, %arg6: memref<16x128xbf16, #tpu.memory_space<vmem>>, %arg7: memref<16x128xf32, #tpu.memory_space<vmem>>) attributes {dimension_semantics = [#tpu.dimension_semantics<parallel>, #tpu.dimension_semantics<parallel>, #tpu.dimension_semantics<arbitrary>], iteration_bounds = array<i64: 1, 2, 1>, scalar_prefetch = 0 : i64, scratch_operands = 1 : i64, tpu.core_type = #tpu.core_type<tc>, window_params = [{transform_indices = @transform_0, window_bounds = array<i64: 16, 1024>}, {transform_indices = @transform_1, window_bounds = array<i64: 1024, 128>}, {transform_indices = @transform_2, window_bounds = array<i64: 1, 128>}, {transform_indices = @transform_3, window_bounds = array<i64: 16, 128>}]} {
    %c0_i32 = arith.constant 0 : i32
    %0 = arith.cmpi eq, %arg2, %c0_i32 : i32
    %1 = arith.extui %0 : i1 to i32
    %c0_i32_0 = arith.constant 0 : i32
    %2 = arith.cmpi ne, %1, %c0_i32_0 : i32
    scf.if %2 {
      %cst_10 = arith.constant 0.000000e+00 : f32
      %12 = vector.broadcast %cst_10 : f32 to vector<16x128xf32>
      %c0_11 = arith.constant 0 : index
      %c0_12 = arith.constant 0 : index
      %13 = vector.load %arg7[%c0_11, %c0_12] : memref<16x128xf32, #tpu.memory_space<vmem>>, vector<16x128xf32>
      tpu.vector_store %arg7[%c0_11, %c0_12], %12 {strides = array<i32>} : memref<16x128xf32, #tpu.memory_space<vmem>>, vector<16x128xf32>,
    } else {
    }
    %c0 = arith.constant 0 : index
    %c0_1 = arith.constant 0 : index
    %3 = vector.load %arg7[%c0, %c0_1] : memref<16x128xf32, #tpu.memory_space<vmem>>, vector<16x128xf32>
    %c0_2 = arith.constant 0 : index
    %c0_3 = arith.constant 0 : index
    %4 = vector.load %arg3[%c0_2, %c0_3] : memref<16x1024xbf16, #tpu.memory_space<vmem>>, vector<16x1024xbf16>
    %c0_4 = arith.constant 0 : index
    %c0_5 = arith.constant 0 : index
    %5 = vector.load %arg4[%c0_4, %c0_5] : memref<1024x128xbf16, #tpu.memory_space<vmem>>, vector<1024x128xbf16>
    %cst = arith.constant dense<0.000000e+00> : vector<16x128xf32>
    %6 = tpu.matmul %4, %5, %cst {dimension_numbers = #tpu.dot_dimension_numbers<[1], [0], [0], [1], [0, 0, 1, 1], [], []>} : vector<16x1024xbf16>, vector<1024x128xbf16>, vector<16x128xf32> -> vector<16x128xf32>
    %7 = arith.addf %3, %6 : vector<16x128xf32>
    %c0_6 = arith.constant 0 : index
    %c0_7 = arith.constant 0 : index
    %8 = vector.load %arg7[%c0_6, %c0_7] : memref<16x128xf32, #tpu.memory_space<vmem>>, vector<16x128xf32>
    tpu.vector_store %arg7[%c0_6, %c0_7], %7 {strides = array<i32>} : memref<16x128xf32, #tpu.memory_space<vmem>>, vector<16x128xf32>,
    %c0_i32_8 = arith.constant 0 : i32
    %9 = arith.cmpi eq, %arg2, %c0_i32_8 : i32
    %10 = arith.extui %9 : i1 to i32
    %c0_i32_9 = arith.constant 0 : i32
    %11 = arith.cmpi ne, %10, %c0_i32_9 : i32
    scf.if %11 {
      %c0_10 = arith.constant 0 : index
      %c0_11 = arith.constant 0 : index
      %12 = vector.load %arg7[%c0_10, %c0_11] : memref<16x128xf32, #tpu.memory_space<vmem>>, vector<16x128xf32>
      %c0_12 = arith.constant 0 : index
      %c0_13 = arith.constant 0 : index
      %13 = vector.load %arg5[%c0_12, %c0_13] : memref<1x128xf32, #tpu.memory_space<vmem>>, vector<1x128xf32>
      %14 = vector.broadcast %13 : vector<1x128xf32> to vector<16x128xf32>
      %15 = arith.addf %12, %14 : vector<16x128xf32>
      %cst_14 = arith.constant 0.000000e+00 : f32
      %16 = vector.broadcast %cst_14 : f32 to vector<16x128xf32>
      %17 = arith.maximumf %15, %16 : vector<16x128xf32>
      %18 = arith.truncf %17 : vector<16x128xf32> to vector<16x128xbf16>
      %c0_15 = arith.constant 0 : index
      %c0_16 = arith.constant 0 : index
      %19 = vector.load %arg6[%c0_15, %c0_16] : memref<16x128xbf16, #tpu.memory_space<vmem>>, vector<16x128xbf16>
      tpu.vector_store %arg6[%c0_15, %c0_16], %18 {strides = array<i32>} : memref<16x128xbf16, #tpu.memory_space<vmem>>, vector<16x128xbf16>,
    } else {
    }
    return
  }
  func.func @transform_0(%arg0: i32, %arg1: i32, %arg2: i32) -> (i32, i32) {
    %c0_i32 = arith.constant 0 : i32
    return %arg0, %arg2 : i32, i32
  }
  func.func @transform_1(%arg0: i32, %arg1: i32, %arg2: i32) -> (i32, i32) {
    %c0_i32 = arith.constant 0 : i32
    return %arg2, %arg1 : i32, i32
  }
  func.func @transform_2(%arg0: i32, %arg1: i32, %arg2: i32) -> (i32, i32) {
    %c0_i32 = arith.constant 0 : i32
    %c0_i32_0 = arith.constant 0 : i32
    return %c0_i32, %arg1 : i32, i32
  }
  func.func @transform_3(%arg0: i32, %arg1: i32, %arg2: i32) -> (i32, i32) {
    %c0_i32 = arith.constant 0 : i32
    return %arg0, %arg1 : i32, i32
  }
}

module attributes {stable_mosaic.version = 11 : i64} {
  func.func @_mm_kernel(%arg0: i32, %arg1: i32, %arg2: i32, %arg3: memref<16x256xbf16, #tpu.memory_space<vmem>>, %arg4: memref<256x128xbf16, #tpu.memory_space<vmem>>, %arg5: memref<1x128xf32, #tpu.memory_space<vmem>>, %arg6: memref<16x128xbf16, #tpu.memory_space<vmem>>, %arg7: memref<16x128xf32, #tpu.memory_space<vmem>>) attributes {dimension_semantics = [#tpu.dimension_semantics<parallel>, #tpu.dimension_semantics<parallel>, #tpu.dimension_semantics<arbitrary>], iteration_bounds = array<i64: 1, 2, 1>, scalar_prefetch = 0 : i64, scratch_operands = 1 : i64, tpu.core_type = #tpu.core_type<tc>, window_params = [{transform_indices = @transform_0, window_bounds = array<i64: 16, 256>}, {transform_indices = @transform_1, window_bounds = array<i64: 256, 128>}, {transform_indices = @transform_2, window_bounds = array<i64: 1, 128>}, {transform_indices = @transform_3, window_bounds = array<i64: 16, 128>}]} {
    %c0_i32 = arith.constant 0 : i32
    %0 = arith.cmpi eq, %arg2, %c0_i32 : i32
    %1 = arith.extui %0 : i1 to i32
    %c0_i32_0 = arith.constant 0 : i32
    %2 = arith.cmpi ne, %1, %c0_i32_0 : i32
    scf.if %2 {
      %cst_10 = arith.constant 0.000000e+00 : f32
      %12 = vector.broadcast %cst_10 : f32 to vector<16x128xf32>
      %c0_11 = arith.constant 0 : index
      %c0_12 = arith.constant 0 : index
      %13 = vector.load %arg7[%c0_11, %c0_12] : memref<16x128xf32, #tpu.memory_space<vmem>>, vector<16x128xf32>
      tpu.vector_store %arg7[%c0_11, %c0_12], %12 {strides = array<i32>} : memref<16x128xf32, #tpu.memory_space<vmem>>, vector<16x128xf32>,
    } else {
    }
    %c0 = arith.constant 0 : index
    %c0_1 = arith.constant 0 : index
    %3 = vector.load %arg7[%c0, %c0_1] : memref<16x128xf32, #tpu.memory_space<vmem>>, vector<16x128xf32>
    %c0_2 = arith.constant 0 : index
    %c0_3 = arith.constant 0 : index
    %4 = vector.load %arg3[%c0_2, %c0_3] : memref<16x256xbf16, #tpu.memory_space<vmem>>, vector<16x256xbf16>
    %c0_4 = arith.constant 0 : index
    %c0_5 = arith.constant 0 : index
    %5 = vector.load %arg4[%c0_4, %c0_5] : memref<256x128xbf16, #tpu.memory_space<vmem>>, vector<256x128xbf16>
    %cst = arith.constant dense<0.000000e+00> : vector<16x128xf32>
    %6 = tpu.matmul %4, %5, %cst {dimension_numbers = #tpu.dot_dimension_numbers<[1], [0], [0], [1], [0, 0, 1, 1], [], []>} : vector<16x256xbf16>, vector<256x128xbf16>, vector<16x128xf32> -> vector<16x128xf32>
    %7 = arith.addf %3, %6 : vector<16x128xf32>
    %c0_6 = arith.constant 0 : index
    %c0_7 = arith.constant 0 : index
    %8 = vector.load %arg7[%c0_6, %c0_7] : memref<16x128xf32, #tpu.memory_space<vmem>>, vector<16x128xf32>
    tpu.vector_store %arg7[%c0_6, %c0_7], %7 {strides = array<i32>} : memref<16x128xf32, #tpu.memory_space<vmem>>, vector<16x128xf32>,
    %c0_i32_8 = arith.constant 0 : i32
    %9 = arith.cmpi eq, %arg2, %c0_i32_8 : i32
    %10 = arith.extui %9 : i1 to i32
    %c0_i32_9 = arith.constant 0 : i32
    %11 = arith.cmpi ne, %10, %c0_i32_9 : i32
    scf.if %11 {
      %c0_10 = arith.constant 0 : index
      %c0_11 = arith.constant 0 : index
      %12 = vector.load %arg7[%c0_10, %c0_11] : memref<16x128xf32, #tpu.memory_space<vmem>>, vector<16x128xf32>
      %c0_12 = arith.constant 0 : index
      %c0_13 = arith.constant 0 : index
      %13 = vector.load %arg5[%c0_12, %c0_13] : memref<1x128xf32, #tpu.memory_space<vmem>>, vector<1x128xf32>
      %14 = vector.broadcast %13 : vector<1x128xf32> to vector<16x128xf32>
      %15 = arith.addf %12, %14 : vector<16x128xf32>
      %cst_14 = arith.constant 0.000000e+00 : f32
      %16 = vector.broadcast %cst_14 : f32 to vector<16x128xf32>
      %17 = arith.maximumf %15, %16 : vector<16x128xf32>
      %18 = arith.truncf %17 : vector<16x128xf32> to vector<16x128xbf16>
      %c0_15 = arith.constant 0 : index
      %c0_16 = arith.constant 0 : index
      %19 = vector.load %arg6[%c0_15, %c0_16] : memref<16x128xbf16, #tpu.memory_space<vmem>>, vector<16x128xbf16>
      tpu.vector_store %arg6[%c0_15, %c0_16], %18 {strides = array<i32>} : memref<16x128xbf16, #tpu.memory_space<vmem>>, vector<16x128xbf16>,
    } else {
    }
    return
  }
  func.func @transform_0(%arg0: i32, %arg1: i32, %arg2: i32) -> (i32, i32) {
    %c0_i32 = arith.constant 0 : i32
    return %arg0, %arg2 : i32, i32
  }
  func.func @transform_1(%arg0: i32, %arg1: i32, %arg2: i32) -> (i32, i32) {
    %c0_i32 = arith.constant 0 : i32
    return %arg2, %arg1 : i32, i32
  }
  func.func @transform_2(%arg0: i32, %arg1: i32, %arg2: i32) -> (i32, i32) {
    %c0_i32 = arith.constant 0 : i32
    %c0_i32_0 = arith.constant 0 : i32
    return %c0_i32, %arg1 : i32, i32
  }
  func.func @transform_3(%arg0: i32, %arg1: i32, %arg2: i32) -> (i32, i32) {
    %c0_i32 = arith.constant 0 : i32
    return %arg0, %arg1 : i32, i32
  }
}

module attributes {stable_mosaic.version = 11 : i64} {
  func.func @_mm_kernel(%arg0: i32, %arg1: i32, %arg2: i32, %arg3: memref<16x256xbf16, #tpu.memory_space<vmem>>, %arg4: memref<256x128xbf16, #tpu.memory_space<vmem>>, %arg5: memref<1x128xf32, #tpu.memory_space<vmem>>, %arg6: memref<16x128xf32, #tpu.memory_space<vmem>>, %arg7: memref<16x128xf32, #tpu.memory_space<vmem>>) attributes {dimension_semantics = [#tpu.dimension_semantics<parallel>, #tpu.dimension_semantics<parallel>, #tpu.dimension_semantics<arbitrary>], iteration_bounds = array<i64: 1, 1, 1>, scalar_prefetch = 0 : i64, scratch_operands = 1 : i64, tpu.core_type = #tpu.core_type<tc>, window_params = [{transform_indices = @transform_0, window_bounds = array<i64: 16, 256>}, {transform_indices = @transform_1, window_bounds = array<i64: 256, 128>}, {transform_indices = @transform_2, window_bounds = array<i64: 1, 128>}, {transform_indices = @transform_3, window_bounds = array<i64: 16, 128>}]} {
    %c0_i32 = arith.constant 0 : i32
    %0 = arith.cmpi eq, %arg2, %c0_i32 : i32
    %1 = arith.extui %0 : i1 to i32
    %c0_i32_0 = arith.constant 0 : i32
    %2 = arith.cmpi ne, %1, %c0_i32_0 : i32
    scf.if %2 {
      %cst_10 = arith.constant 0.000000e+00 : f32
      %12 = vector.broadcast %cst_10 : f32 to vector<16x128xf32>
      %c0_11 = arith.constant 0 : index
      %c0_12 = arith.constant 0 : index
      %13 = vector.load %arg7[%c0_11, %c0_12] : memref<16x128xf32, #tpu.memory_space<vmem>>, vector<16x128xf32>
      tpu.vector_store %arg7[%c0_11, %c0_12], %12 {strides = array<i32>} : memref<16x128xf32, #tpu.memory_space<vmem>>, vector<16x128xf32>,
    } else {
    }
    %c0 = arith.constant 0 : index
    %c0_1 = arith.constant 0 : index
    %3 = vector.load %arg7[%c0, %c0_1] : memref<16x128xf32, #tpu.memory_space<vmem>>, vector<16x128xf32>
    %c0_2 = arith.constant 0 : index
    %c0_3 = arith.constant 0 : index
    %4 = vector.load %arg3[%c0_2, %c0_3] : memref<16x256xbf16, #tpu.memory_space<vmem>>, vector<16x256xbf16>
    %c0_4 = arith.constant 0 : index
    %c0_5 = arith.constant 0 : index
    %5 = vector.load %arg4[%c0_4, %c0_5] : memref<256x128xbf16, #tpu.memory_space<vmem>>, vector<256x128xbf16>
    %cst = arith.constant dense<0.000000e+00> : vector<16x128xf32>
    %6 = tpu.matmul %4, %5, %cst {dimension_numbers = #tpu.dot_dimension_numbers<[1], [0], [0], [1], [0, 0, 1, 1], [], []>} : vector<16x256xbf16>, vector<256x128xbf16>, vector<16x128xf32> -> vector<16x128xf32>
    %7 = arith.addf %3, %6 : vector<16x128xf32>
    %c0_6 = arith.constant 0 : index
    %c0_7 = arith.constant 0 : index
    %8 = vector.load %arg7[%c0_6, %c0_7] : memref<16x128xf32, #tpu.memory_space<vmem>>, vector<16x128xf32>
    tpu.vector_store %arg7[%c0_6, %c0_7], %7 {strides = array<i32>} : memref<16x128xf32, #tpu.memory_space<vmem>>, vector<16x128xf32>,
    %c0_i32_8 = arith.constant 0 : i32
    %9 = arith.cmpi eq, %arg2, %c0_i32_8 : i32
    %10 = arith.extui %9 : i1 to i32
    %c0_i32_9 = arith.constant 0 : i32
    %11 = arith.cmpi ne, %10, %c0_i32_9 : i32
    scf.if %11 {
      %c0_10 = arith.constant 0 : index
      %c0_11 = arith.constant 0 : index
      %12 = vector.load %arg7[%c0_10, %c0_11] : memref<16x128xf32, #tpu.memory_space<vmem>>, vector<16x128xf32>
      %c0_12 = arith.constant 0 : index
      %c0_13 = arith.constant 0 : index
      %13 = vector.load %arg5[%c0_12, %c0_13] : memref<1x128xf32, #tpu.memory_space<vmem>>, vector<1x128xf32>
      %14 = vector.broadcast %13 : vector<1x128xf32> to vector<16x128xf32>
      %15 = arith.addf %12, %14 : vector<16x128xf32>
      %c0_14 = arith.constant 0 : index
      %c0_15 = arith.constant 0 : index
      %16 = vector.load %arg6[%c0_14, %c0_15] : memref<16x128xf32, #tpu.memory_space<vmem>>, vector<16x128xf32>
      tpu.vector_store %arg6[%c0_14, %c0_15], %15 {strides = array<i32>} : memref<16x128xf32, #tpu.memory_space<vmem>>, vector<16x128xf32>,
    } else {
    }
    return
  }
  func.func @transform_0(%arg0: i32, %arg1: i32, %arg2: i32) -> (i32, i32) {
    %c0_i32 = arith.constant 0 : i32
    return %arg0, %arg2 : i32, i32
  }
  func.func @transform_1(%arg0: i32, %arg1: i32, %arg2: i32) -> (i32, i32) {
    %c0_i32 = arith.constant 0 : i32
    return %arg2, %arg1 : i32, i32
  }
  func.func @transform_2(%arg0: i32, %arg1: i32, %arg2: i32) -> (i32, i32) {
    %c0_i32 = arith.constant 0 : i32
    %c0_i32_0 = arith.constant 0 : i32
    return %c0_i32, %arg1 : i32, i32
  }
  func.func @transform_3(%arg0: i32, %arg1: i32, %arg2: i32) -> (i32, i32) {
    %c0_i32 = arith.constant 0 : i32
    return %arg0, %arg1 : i32, i32
  }
}

</mosaic_0001>

<bundles_post_ra>
// kernel: forward.19
= control target key start
LH: loop header
LB: loop body
LE: loop exit
PB: predicated region body
PF: predicated region fallthrough
CT: control target
= control target key end

     0   :  { %s1512_s12 = smov 0   ;;  %s1514_s13 = smov 0   ;;  %s1681_s0 = inlined_call_operand.vmem [shape: bf16[1152,384], index: 0, kind: input, shape index: {}]   ;;  %s1682_s1 = inlined_call_operand.vmem [shape: bf16[384,128], index: 1, kind: input, shape index: {}]   ;;  %s1683_s2 = inlined_call_operand.vmem [shape: f32[1,128], index: 2, kind: input, shape index: {}]   ;;  %s1684_s3 = inlined_call_operand.vmem [shape: bf16[1152,128], index: 3, kind: output, shape index: {}]  }
   0x1   :  { %s1516_s14 = smov 0  }
   0x2 LB: > { %s32_s15 = sadd.s32 1, %s1486_s13  ;;  %p1140_p0 = scmp.ge.s32.totalorder %s1490_s14, 1  ;;  %s1490_s14 = sphi %s1516_s14, %s13_s14   ;;  %s1486_s13 = sphi %s1514_s13, %s1686_s13   ;;  %s1482_s12 = sphi %s1512_s12, %s1685_s12  }
   0x3   : > { %p34_p1 = scmp.ge.s32.totalorder %s32_s15, 9  ;;  %p191_p2 = scmp.lt.s32.totalorder %s1490_s14, 10 }
   0x5   : > { %s1688_s15 = smov (%p34_p1, %s32_s15), 0  ;;  %p192_p3 = pnand %p1140_p0, %p191_p2 }
   0x6   : > { %s1141_s5 = sshll.u32 (!%p192_p3), %s1482_s12, 4 }
   0x7   : > { %195 = sbr.rel (%p192_p3) target bundleno = 311 (0x137), region = 32  ;;  %p236_p4 = scmp.lt.s32.totalorder (!%p192_p3), %s1141_s5, 143 }
   0xc   : > { %v1412_v0 = vld [vmem:[%s1682_s1 + $0x78] sm:$0xff]   ;;  %v1415_v3 = vld [vmem:[%s1682_s1 + $0x70] sm:$0xff]   ;;  %v1418_v6 = vld [vmem:[%s1682_s1 + $0x68] sm:$0xff]   ;;  %s1690_s5 = smov (!%p236_p4, %s1141_s5), 143 }
   0xd   : > { %v1413_v1 = vld [vmem:[%s1682_s1 + $0x38] sm:$0xff]   ;;  %1275 = vmatprep.subr.bf16.mxu0 %v1412_v0  ;;  %v1416_v4 = vld [vmem:[%s1682_s1 + $0x30] sm:$0xff]   ;;  %v1419_v7 = vld [vmem:[%s1682_s1 + $0x28] sm:$0xff]   ;;  %s1387_s27 = smul.u32 12, %s1690_s5  ;;  %s1144_s24 = sshll.u32 %s1690_s5, 2 }
   0xe   : > { %v1414_v2 = vld [vmem:[%s1682_s1 + $0xb8] sm:$0xff]   ;;  %1276 = vmatpush3.bf16.msra.mxu0 %v1413_v1  ;;  %v1417_v5 = vld [vmem:[%s1682_s1 + $0xb0] sm:$0xff]   ;;  %v1420_v8 = vld [vmem:[%s1682_s1 + $0xa8] sm:$0xff]  }
   0xf   : > { %1355 = vmatprep.subr.bf16.mxu1 %v1414_v2  ;;  %1277 = vmatprep.subr.bf16.mxu0 %v1415_v3  ;;  %v1421_v9 = vld [vmem:[%s1682_s1 + $0x60] sm:$0xff]   ;;  %v1424_v12 = vld [vmem:[%s1682_s1 + $0x58] sm:$0xff]   ;;  %v1427_v15 = vld [vmem:[%s1682_s1 + $0x50] sm:$0xff]   ;;  %s1602_s16 = scalar_lea.vmem %s1681_s0, %s1387_s27  ;;  %s1648_s27 = scalar_lea.vmem %s1684_s3, %s1144_s24 }
  0x10   : > { %1356 = vmatpush3.bf16.msra.mxu1 %v1414_v2  ;;  %v1422_v10 = vld [vmem:[%s1682_s1 + $0x20] sm:$0xff]   ;;  %v1426_v13 = vld [vmem:[%s1682_s1 + $0x98] sm:$0xff]   ;;  %v1429_v16 = vld [vmem:[%s1682_s1 + $0x90] sm:$0xff]  }
  0x11   : > { %1357 = vmatprep.subr.bf16.mxu1 %v1417_v5  ;;  %v1423_v11 = vld [vmem:[%s1682_s1 + $0xa0] sm:$0xff]   ;;  %v1425_v14 = vld [vmem:[%s1682_s1 + $0x18] sm:$0xff]   ;;  %v1428_v17 = vld [vmem:[%s1682_s1 + $0x10] sm:$0xff]  }
  0x12   : > { %1278 = vmatpush3.bf16.msra.mxu0 %v1416_v4  ;;  %v1430_v18 = vld [vmem:[%s1682_s1 + $0x48] sm:$0xff]   ;;  %v1433_v21 = vld [vmem:[%s1682_s1 + $0x40] sm:$0xff]   ;;  %v1448_v32 = vld [vmem:[%s1602_s16 + $0x50] ss:$12 sps:$4 sm:$0xff]  }
  0x13   : > { %1279 = vmatprep.subr.bf16.mxu0 %v1418_v6  ;;  %v1431_v19 = vld [vmem:[%s1682_s1 + $0x8] sm:$0xff]   ;;  %v1435_v22 = vld [vmem:[%s1682_s1 + $0x80] sm:$0xff]   ;;  %v1446_v34 = vld [vmem:[%s1602_s16 + $0x30] ss:$12 sps:$4 sm:$0xff]  }
  0x14   : > { %1358 = vmatpush3.bf16.msra.mxu1 %v1417_v5  ;;  %v1432_v20 = vld [vmem:[%s1682_s1 + $0x88] sm:$0xff]   ;;  %v1438_v23 = vld [vmem:[%s1602_s16 + $0x4] ss:$12 sps:$4 sm:$0xff]   ;;  %v1444_v31 = vld [vmem:[%s1602_s16 + $0x34] ss:$12 sps:$4 sm:$0xff]  }
  0x15   : > { %1359 = vmatprep.subr.bf16.mxu1 %v1420_v8  ;;  %v1439_v24 = vld [vmem:[%s1602_s16 + $0x8] ss:$12 sps:$4 sm:$0xff]   ;;  %v1434_v25 = vld [vmem:[%s1682_s1] sm:$0xff]   ;;  %688 = vmatprep.mubr.bf16.mxu0 %v1438_v23  ;;  %v1449_v35 = vld [vmem:[%s1602_s16 + $0x4c] ss:$12 sps:$4 sm:$0xff]  }
  0x16   : > { %1280 = vmatpush3.bf16.msra.mxu0 %v1419_v7  ;;  %1371 = vmatprep.mubr.bf16.mxu1 %v1439_v24  ;;  %v1436_v26 = vld [vmem:[%s1602_s16] ss:$12 sps:$4 sm:$0xff]   ;;  %v1441_v27 = vld [vmem:[%s1602_s16 + $0x1c] ss:$12 sps:$4 sm:$0xff]   ;;  %v1447_v29 = vld [vmem:[%s1602_s16 + $0x38] ss:$12 sps:$4 sm:$0xff]  }
  0x17   : > { %1281 = vmatprep.subr.bf16.mxu0 %v1421_v9  ;;  %v1440_v28 = vld [vmem:[%s1602_s16 + $0x20] ss:$12 sps:$4 sm:$0xff]   ;;  %v1443_v30 = vld [vmem:[%s1602_s16 + $0x18] ss:$12 sps:$4 sm:$0xff]   ;;  %v1455_v33 = vld [vmem:[%s1602_s16 + $0x68] ss:$12 sps:$4 sm:$0xff]  }
  0x18   : > { %1360 = vmatpush3.bf16.msra.mxu1 %v1420_v8  ;;  %v1456_v36 = vld [vmem:[%s1602_s16 + $0x80] ss:$12 sps:$4 sm:$0xff]   ;;  %v1463_v37 = vld [vmem:[%s1602_s16 + $0x98] ss:$12 sps:$4 sm:$0xff]   ;;  %v1451_v38 = vld [vmem:[%s1602_s16 + $0x48] ss:$12 sps:$4 sm:$0xff]  }
  0x19   : > { %1361 = vmatprep.subr.bf16.mxu1 %v1423_v11  ;;  %v1452_v39 = vld [vmem:[%s1602_s16 + $0x64] ss:$12 sps:$4 sm:$0xff]   ;;  %v1454_v41 = vld [vmem:[%s1602_s16 + $0x60] ss:$12 sps:$4 sm:$0xff]   ;;  %v1457_v42 = vld [vmem:[%s1602_s16 + $0x7c] ss:$12 sps:$4 sm:$0xff]  }
  0x1a   : > { %1282 = vmatpush3.bf16.msra.mxu0 %v1422_v10  ;;  %v1464_v40 = vld [vmem:[%s1602_s16 + $0xb0] ss:$12 sps:$4 sm:$0xff]   ;;  %v1459_v43 = vld [vmem:[%s1602_s16 + $0x78] ss:$12 sps:$4 sm:$0xff]   ;;  %v1460_v44 = vld [vmem:[%s1602_s16 + $0x94] ss:$12 sps:$4 sm:$0xff]  }
  0x1b   : > { %1283 = vmatprep.subr.bf16.mxu0 %v1424_v12  ;;  %v1462_v45 = vld [vmem:[%s1602_s16 + $0x90] ss:$12 sps:$4 sm:$0xff]   ;;  %v1465_v46 = vld [vmem:[%s1602_s16 + $0xac] ss:$12 sps:$4 sm:$0xff]   ;;  %v1467_v47 = vld [vmem:[%s1602_s16 + $0xa8] ss:$12 sps:$4 sm:$0xff]  }
  0x1c   : > { %1362 = vmatpush3.bf16.msra.mxu1 %v1423_v11  ;;  %v1640_v55 = vld [vmem:[%s1683_s2] ss:$0 sm:$0xff] }
  0x1d   : > { %1363 = vmatprep.subr.bf16.mxu1 %v1426_v13 }
  0x1e   : > { %1284 = vmatpush3.bf16.msra.mxu0 %v1425_v14 }
  0x1f   : > { %1285 = vmatprep.subr.bf16.mxu0 %v1427_v15 }
  0x20   : > { %1364 = vmatpush3.bf16.msra.mxu1 %v1426_v13 }
  0x21   : > { %1365 = vmatprep.subr.bf16.mxu1 %v1429_v16 }
  0x22   : > { %1286 = vmatpush3.bf16.msra.mxu0 %v1428_v17 }
  0x23   : > { %1287 = vmatprep.subr.bf16.mxu0 %v1430_v18 }
  0x24   : > { %1366 = vmatpush3.bf16.msra.mxu1 %v1429_v16 }
  0x25   : > { %1367 = vmatprep.subr.bf16.mxu1 %v1432_v20 }
  0x26   : > { %1288 = vmatpush3.bf16.msra.mxu0 %v1431_v19 }
  0x27   : > { %1289 = vmatprep.subr.bf16.mxu0 %v1433_v21 }
  0x28   : > { %1368 = vmatpush3.bf16.msra.mxu1 %v1432_v20 }
  0x29   : > { %1369 = vmatprep.subr.bf16.mxu1 %v1435_v22 }
  0x2a   : > { %1290 = vmatpush3.bf16.msra.mxu0 %v1434_v25 }
  0x2c   : > { %1370 = vmatpush3.bf16.msra.mxu1 %v1435_v22 }
  0x2d   : > { %689 = vmatmul.mubr.bf16.vlgmr.msra.gmra.mxu0 %v1436_v26 }
  0x2e   : > { %696 = vmatprep.mubr.bf16.mxu0 %v1441_v27 }
  0x2f   : > { %1372 = vmatmul.mubr.bf16.vlgmr.msra.gmra.mxu1 %v1440_v28 }
  0x30   : > { %1375 = vmatprep.mubr.bf16.mxu1 %v1447_v29 }
  0x35   : > { %697 = vmatmul.mubr.bf16.gmra.mxu0 %v1443_v30 }
  0x36   : > { %704 = vmatprep.mubr.bf16.mxu0 %v1444_v31 }
  0x37   : > { %1376 = vmatmul.mubr.bf16.gmra.mxu1 %v1448_v32 }
  0x38   : > { %1379 = vmatprep.mubr.bf16.mxu1 %v1455_v33 }
  0x3d   : > { %705 = vmatmul.mubr.bf16.gmra.mxu0 %v1446_v34 }
  0x3e   : > { %712 = vmatprep.mubr.bf16.mxu0 %v1449_v35 }
  0x3f   : > { %1380 = vmatmul.mubr.bf16.gmra.mxu1 %v1456_v36 }
  0x40   : > { %1383 = vmatprep.mubr.bf16.mxu1 %v1463_v37 }
  0x45   : > { %713 = vmatmul.mubr.bf16.gmra.mxu0 %v1451_v38 }
  0x46   : > { %720 = vmatprep.mubr.bf16.mxu0 %v1452_v39 }
  0x47   : > { %1384 = vmatmul.mubr.bf16.gmra.mxu1 %v1464_v40 }
  0x4d   : > { %721 = vmatmul.mubr.bf16.gmra.mxu0 %v1454_v41 }
  0x4e   : > { %728 = vmatprep.mubr.bf16.mxu0 %v1457_v42 }
  0x55   : > { %729 = vmatmul.mubr.bf16.gmra.mxu0 %v1459_v43 }
  0x56   : > { %736 = vmatprep.mubr.bf16.mxu0 %v1460_v44 }
  0x5d   : > { %737 = vmatmul.mubr.bf16.gmra.mxu0 %v1462_v45 }
  0x5e   : > { %744 = vmatprep.mubr.bf16.mxu0 %v1465_v46 }
  0x65   : > { %745 = vmatmul.mubr.bf16.gmra.mxu0 %v1467_v47 }
  0xed   : > { %v1291_v48 = vpop.f32.mrf.mxu0 }
  0xef   : > { %v1292_v49 = vpop.f32.mrf.mxu0  ;;  %v1373_v50 = vpop.f32.mrf.mxu1 }
  0xf0   : > { %v1293_v51 = vadd.f32 %v1292_v49, %v1291_v48 }
  0xf1   : > { %v1294_v52 = vpop.f32.mrf.mxu0  ;;  %v787_v53 = vpop.f32.mrf.mxu1 }
  0xf2   : > { %v788_v54 = vadd.f32 %v1293_v51, %v787_v53 }
  0xf3   : > { %v1295_v56 = vpop.f32.mrf.mxu0  ;;  %v1374_v57 = vpop.f32.mrf.mxu1 }
  0xf4   : > { %v1296_v58 = vadd.f32 %v1295_v56, %v1294_v52  ;;  %v908_v61 = vadd.f32 %v1640_v55, %v788_v54 }
  0xf5   : > { %v1297_v59 = vpop.f32.mrf.mxu0  ;;  %v790_v60 = vpop.f32.mrf.mxu1 }
  0xf6   : > { %v791_v62 = vadd.f32 %v1296_v58, %v790_v60  ;;  %v924_v4 = vmax.f32 %v908_v61, 0.0 }
  0xf7   : > { %v1298_v63 = vpop.f32.mrf.mxu0  ;;  %v1377_v0 = vpop.f32.mrf.mxu1 }
  0xf8   : > { %v909_v1 = vadd.f32 %v1640_v55, %v791_v62  ;;  %v1299_v2 = vadd.f32 %v1298_v63, %v1297_v59 }
  0xf9   : > { %v1300_v3 = vpop.f32.mrf.mxu0  ;;  %v803_v8 = vpop.f32.mrf.mxu1 }
  0xfa   : > { %v925_v5 = vmax.f32 %v909_v1, 0.0  ;;  %v796_v6 = vadd.f32 %v1373_v50, %v1299_v2 }
  0xfb   : > { %v1301_v7 = vpop.f32.mrf.mxu0  ;;  %v1378_v15 = vpop.f32.mrf.mxu1 }
  0xfc   : > { %v1231_v9 = vpack.c.bf16 %v925_v5, %v924_v4  ;;  %v1302_v10 = vadd.f32 %v1301_v7, %v1300_v3  ;;  %v910_v12 = vadd.f32 %v1640_v55, %v796_v6 }
  0xfd   : > { %v1303_v11 = vpop.f32.mrf.mxu0  ;;  %v806_v23 = vpop.f32.mrf.mxu1 }
  0xfe   : > { %1232 = vst [vmem:[%s1648_s27] sm:$0xff] %v1231_v9   ;;  %v799_v13 = vadd.f32 %v1374_v57, %v1302_v10  ;;  %v926_v19 = vmax.f32 %v910_v12, 0.0 }
  0xff   : > { %v1304_v14 = vpop.f32.mrf.mxu0  ;;  %v1381_v30 = vpop.f32.mrf.mxu1 }
 0x100   : > { %v911_v16 = vadd.f32 %v1640_v55, %v799_v13  ;;  %v1305_v17 = vadd.f32 %v1304_v14, %v1303_v11 }
 0x101   : > { %v1306_v18 = vpop.f32.mrf.mxu0  ;;  %v819_v38 = vpop.f32.mrf.mxu1 }
 0x102   : > { %v927_v20 = vmax.f32 %v911_v16, 0.0  ;;  %v804_v21 = vadd.f32 %v1305_v17, %v803_v8 }
 0x103   : > { %v1307_v22 = vpop.f32.mrf.mxu0  ;;  %v1382_v45 = vpop.f32.mrf.mxu1 }
 0x104   : > { %v1236_v24 = vpack.c.bf16 %v927_v20, %v926_v19  ;;  %v1308_v25 = vadd.f32 %v1307_v22, %v1306_v18  ;;  %v912_v27 = vadd.f32 %v1640_v55, %v804_v21 }
 0x105   : > { %v1309_v26 = vpop.f32.mrf.mxu0  ;;  %v822_v53 = vpop.f32.mrf.mxu1 }
 0x106   : > { %1268 = vst [vmem:[%s1648_s27 + $0x8] sm:$0xff] %v1236_v24   ;;  %v807_v28 = vadd.f32 %v1308_v25, %v806_v23  ;;  %v928_v34 = vmax.f32 %v912_v27, 0.0 }
 0x107   : > { %v1310_v29 = vpop.f32.mrf.mxu0  ;;  %v1385_v61 = vpop.f32.mrf.mxu1 }
 0x108   : > { %v913_v31 = vadd.f32 %v1640_v55, %v807_v28  ;;  %v1311_v32 = vadd.f32 %v1310_v29, %v1309_v26 }
 0x109   : > { %v1312_v33 = vpop.f32.mrf.mxu0  ;;  %v835_v5 = vpop.f32.mrf.mxu1 }
 0x10a   : > { %v929_v35 = vmax.f32 %v913_v31, 0.0  ;;  %v812_v36 = vadd.f32 %v1377_v0, %v1311_v32 }
 0x10b   : > { %v1313_v37 = vpop.f32.mrf.mxu0  ;;  %v1386_v12 = vpop.f32.mrf.mxu1 }
 0x10c   : > { %v1241_v39 = vpack.c.bf16 %v929_v35, %v928_v34  ;;  %v1314_v40 = vadd.f32 %v1313_v37, %v1312_v33  ;;  %v914_v42 = vadd.f32 %v1640_v55, %v812_v36 }
 0x10d   : > { %v1315_v41 = vpop.f32.mrf.mxu0  ;;  %v838_v20 = vpop.f32.mrf.mxu1 }
 0x10e   : > { %1269 = vst [vmem:[%s1648_s27 + $0x10] sm:$0xff] %v1241_v39   ;;  %v815_v43 = vadd.f32 %v1378_v15, %v1314_v40  ;;  %v930_v49 = vmax.f32 %v914_v42, 0.0 }
 0x10f   : > { %v1316_v44 = vpop.f32.mrf.mxu0 }
 0x110   : > { %v915_v46 = vadd.f32 %v1640_v55, %v815_v43  ;;  %v1317_v47 = vadd.f32 %v1316_v44, %v1315_v41 }
 0x111   : > { %v1318_v48 = vpop.f32.mrf.mxu0 }
 0x112   : > { %v931_v50 = vmax.f32 %v915_v46, 0.0  ;;  %v820_v51 = vadd.f32 %v1317_v47, %v819_v38 }
 0x113   : > { %v1319_v52 = vpop.f32.mrf.mxu0 }
 0x114   : > { %v1246_v54 = vpack.c.bf16 %v931_v50, %v930_v49  ;;  %v1320_v56 = vadd.f32 %v1319_v52, %v1318_v48  ;;  %v916_v58 = vadd.f32 %v1640_v55, %v820_v51 }
 0x115   : > { %v1321_v57 = vpop.f32.mrf.mxu0 }
 0x116   : > { %1270 = vst [vmem:[%s1648_s27 + $0x18] sm:$0xff] %v1246_v54   ;;  %v823_v59 = vadd.f32 %v1320_v56, %v822_v53  ;;  %v932_v1 = vmax.f32 %v916_v58, 0.0 }
 0x117   : > { %v1322_v60 = vpop.f32.mrf.mxu0 }
 0x118   : > { %v917_v62 = vadd.f32 %v1640_v55, %v823_v59  ;;  %v1323_v63 = vadd.f32 %v1322_v60, %v1321_v57 }
 0x119   : > { %v1324_v0 = vpop.f32.mrf.mxu0 }
 0x11a   : > { %v933_v2 = vmax.f32 %v917_v62, 0.0  ;;  %v828_v3 = vadd.f32 %v1381_v30, %v1323_v63 }
 0x11b   : > { %v1325_v4 = vpop.f32.mrf.mxu0 }
 0x11c   : > { %v1251_v6 = vpack.c.bf16 %v933_v2, %v932_v1  ;;  %v1326_v7 = vadd.f32 %v1325_v4, %v1324_v0  ;;  %v918_v9 = vadd.f32 %v1640_v55, %v828_v3 }
 0x11d   : > { %v1327_v8 = vpop.f32.mrf.mxu0 }
 0x11e   : > { %1271 = vst [vmem:[%s1648_s27 + $0x20] sm:$0xff] %v1251_v6   ;;  %v831_v10 = vadd.f32 %v1382_v45, %v1326_v7  ;;  %v934_v16 = vmax.f32 %v918_v9, 0.0 }
 0x11f   : > { %v1328_v11 = vpop.f32.mrf.mxu0 }
 0x120   : > { %v919_v13 = vadd.f32 %v1640_v55, %v831_v10  ;;  %v1329_v14 = vadd.f32 %v1328_v11, %v1327_v8 }
 0x121   : > { %v1330_v15 = vpop.f32.mrf.mxu0 }
 0x122   : > { %v935_v17 = vmax.f32 %v919_v13, 0.0  ;;  %v836_v18 = vadd.f32 %v1329_v14, %v835_v5 }
 0x123   : > { %v1331_v19 = vpop.f32.mrf.mxu0 }
 0x124   : > { %v1256_v21 = vpack.c.bf16 %v935_v17, %v934_v16  ;;  %v1332_v22 = vadd.f32 %v1331_v19, %v1330_v15  ;;  %v920_v24 = vadd.f32 %v1640_v55, %v836_v18 }
 0x125   : > { %v1333_v23 = vpop.f32.mrf.mxu0 }
 0x126   : > { %1272 = vst [vmem:[%s1648_s27 + $0x28] sm:$0xff] %v1256_v21   ;;  %v839_v25 = vadd.f32 %v1332_v22, %v838_v20  ;;  %v936_v30 = vmax.f32 %v920_v24, 0.0 }
 0x127   : > { %v1334_v26 = vpop.f32.mrf.mxu0 }
 0x128   : > { %v921_v27 = vadd.f32 %v1640_v55, %v839_v25  ;;  %v1335_v28 = vadd.f32 %v1334_v26, %v1333_v23 }
 0x129   : > { %v1336_v29 = vpop.f32.mrf.mxu0 }
 0x12a   : > { %v937_v31 = vmax.f32 %v921_v27, 0.0  ;;  %v844_v32 = vadd.f32 %v1385_v61, %v1335_v28 }
 0x12b   : > { %v1337_v33 = vpop.f32.mrf.mxu0 }
 0x12c   : > { %v1261_v34 = vpack.c.bf16 %v937_v31, %v936_v30  ;;  %v1338_v35 = vadd.f32 %v1337_v33, %v1336_v29  ;;  %v922_v36 = vadd.f32 %v1640_v55, %v844_v32 }
 0x12e   : > { %1273 = vst [vmem:[%s1648_s27 + $0x30] sm:$0xff] %v1261_v34   ;;  %v847_v37 = vadd.f32 %v1386_v12, %v1338_v35  ;;  %v938_v39 = vmax.f32 %v922_v36, 0.0 }
 0x130   : > { %v923_v38 = vadd.f32 %v1640_v55, %v847_v37 }
 0x132   : > { %v939_v40 = vmax.f32 %v923_v38, 0.0 }
 0x134   : > { %v1266_v41 = vpack.c.bf16 %v939_v40, %v938_v39 }
 0x136   : > { %1274 = vst [vmem:[%s1648_s27 + $0x38] sm:$0xff] %v1266_v41  }
 0x137 PF: > { %s13_s14 = sadd.s32 1, %s1490_s14   ;;  %s1685_s12 = smov %s1486_s13 }
 0x138   : > { %p10_p5 = scmp.ge.s32.totalorder %s13_s14, 11   ;;  %s1686_s13 = smov %s1688_s15 }
 0x13a   :  { %12 = sbr.rel (!%p10_p5) target bundleno = 2 (0x2), region = 76 }

// kernel: forward.20
= control target key start
LH: loop header
LB: loop body
LE: loop exit
PB: predicated region body
PF: predicated region fallthrough
CT: control target
= control target key end

     0   :  { %s1347_s15 = smov 0   ;;  %s1349_s16 = smov 0   ;;  %s1882_s0 = inlined_call_operand.vmem [shape: bf16[2,12,12,128], index: 0, kind: input, shape index: {}]   ;;  %s1883_s1 = inlined_call_operand.vmem [shape: bf16[2,12,11,128], index: 1, kind: input, shape index: {}]   ;;  %s1884_s2 = inlined_call_operand.vmem [shape: bf16[2,11,12,128], index: 2, kind: input, shape index: {}]   ;;  %s1885_s3 = inlined_call_operand.vmem [shape: bf16[2,11,11,128], index: 3, kind: input, shape index: {}]   ;;  %s1886_s4 = inlined_call_operand.vmem [shape: bf16[2,11,11,128], index: 4, kind: output, shape index: {}]  }
   0x1   :  { %s1351_s17 = smov 0  }
   0x2 LB: > { %s26_s18 = sadd.s32 1, %s1316_s16  ;;  %p1264_p0 = scmp.ge.s32.totalorder %s1320_s17, 1  ;;  %s1320_s17 = sphi %s1351_s17, %s14_s17   ;;  %s1316_s16 = sphi %s1349_s16, %s1892_s16   ;;  %s1312_s15 = sphi %s1347_s15, %s1891_s15  }
   0x3   : > { %p28_p1 = scmp.ge.s32.totalorder %s26_s18, 2  ;;  %p226_p2 = scmp.lt.s32.totalorder %s1320_s17, 3 }
   0x5   : > { %s1894_s18 = smov (%p28_p1, %s26_s18), 0  ;;  %p227_p3 = pnand %p1264_p0, %p226_p2 }
   0x6   : > { %p282_p4 = scmp.lt.s32.totalorder (!%p227_p3), %s1312_s15, 1 }
   0x7   : > { %230 = sbr.rel (%p227_p3) target bundleno = 149 (0x95), region = 36 }
   0xc   : > { %s1896_s15 = smov (!%p282_p4, %s1312_s15), 1  ;;  %vm436_vm0 = vsmask.f32 3328  ;;  %vm437_vm1 = vsmask.f32 7440  ;;  %vm1077_vm3 = vcmask 1041408  }
   0xd   : > { %s1272_s19 = smul.u32 96, %s1896_s15  ;;  %vm1421_vm2 = vmor %vm436_vm0, %vm437_vm1  ;;  %vm1078_vm4 = vsmask.f32 1280 }
   0xe   : > { %s1365_s20 = smul.u32 88, %s1896_s15  ;;  %vm1528_vm5 = vmand %vm1077_vm3, %vm1078_vm4 }
   0xf   : > { %s1370_s23 = scalar_lea.vmem %s1882_s0, %s1272_s19  ;;  %s1375_s26 = scalar_lea.vmem %s1883_s1, %s1272_s19 }
  0x10   : > { %s1381_s29 = scalar_lea.vmem %s1884_s2, %s1365_s20  ;;  %v322_v0 = vld [vmem:[%s1370_s23] sm:$0xf]  ;;  %v1385_v1 = vld [vmem:[%s1370_s23 + $0x4] sm:$0x3]  ;;  %v1388_v2 = vld [vmem:[%s1370_s23 + $0x8] sm:$0xf]  ;;  %s1434_s6 = scalar_lea.vmem %s1885_s3, %s1365_s20 }
  0x11   : > { %v1391_v3 = vld [vmem:[%s1370_s23 + $0xc] sm:$0x3]  ;;  %v346_v4 = vld [vmem:[%s1375_s26] sm:$0xf]  ;;  %v1395_v5 = vld [vmem:[%s1375_s26 + $0x8] sm:$0xf]  ;;  %s1509_s9 = scalar_lea.vmem %s1886_s4, %s1365_s20 }
  0x12   : > { %v1398_v6 = vld [vmem:[%s1381_s29] sm:$0xf]  ;;  %v1401_v7 = vld [vmem:[%s1381_s29 + $0x4] sm:$0x3]  ;;  %v414_v8 = vmax.bf16 %v346_v4, %v322_v0  ;;  %v416_v9 = vmax.bf16 %v1395_v5, %v1388_v2  ;;  %v440_v10 = vshrl.u32 %v322_v0, 16  ;;  %v443_v11 = vshll.u32 %v322_v0, 16 }
  0x13   : > { %v1406_v12 = vld [vmem:[%s1381_s29 + $0x8] sm:$0xf]  ;;  %v449_v13 = vshll.u32 %v1385_v1, 16  ;;  %v459_v14 = vshrl.u32 %v1388_v2, 16  ;;  %v462_v15 = vshll.u32 %v1388_v2, 16  ;;  %v468_v16 = vshll.u32 %v1391_v3, 16 }
  0x14   : > { %v442_v17 = vrot.slane %v440_v10, 4  ;;  %v445_v18 = vrot.slane %v443_v11, 5  ;;  %v737_v19 = vshrl.u32 %v1398_v6, 16  ;;  %v740_v20 = vshll.u32 %v1398_v6, 16  ;;  %v347_v21 = vld [vmem:[%s1375_s26 + $0x4] sm:$0x3] }
  0x15   : > { %v451_v22 = vrot.slane %v449_v13, 5  ;;  %v461_v23 = vrot.slane %v459_v14, 4  ;;  %v464_v24 = vrot.slane %v462_v15, 5  ;;  %v470_v25 = vrot.slane %v468_v16, 5  ;;  %v1416_v26 = vld [vmem:[%s1375_s26 + $0xc] sm:$0x3] }
  0x16   : > { %v446_v27 = vor.u32 %v445_v18, %v442_v17  ;;  %v739_v28 = vrot.slane %v737_v19, 4  ;;  %v742_v29 = vrot.slane %v740_v20, 5  ;;  %v746_v30 = vshll.u32 %v1401_v7, 16  ;;  %v1437_v43 = vld [vmem:[%s1381_s29 + $0xc] sm:$0x3] }
  0x17   : > { %v465_v32 = vor.u32 %v464_v24, %v461_v23  ;;  %v756_v33 = vshrl.u32 %v1406_v12, 16  ;;  %v759_v34 = vshll.u32 %v1406_v12, 16  ;;  %v415_v35 = vmax.bf16 %v347_v21, %v1385_v1  ;;  %v1445_v49 = vld [vmem:[%s1375_s26 + $0x10] sm:$0xf]  ;;  %v392_v55 = vld [vmem:[%s1434_s6] sm:$0xf] }
  0x18   : > { %v447_v36 = vrot.slane %v446_v27, 4  ;;  %v743_v37 = vor.u32 %v742_v29, %v739_v28  ;;  %v748_v38 = vrot.slane %v746_v30, 5  ;;  %v417_v39 = vmax.bf16 %v1416_v26, %v1391_v3  ;;  %v1452_v54 = vld [vmem:[%s1370_s23 + $0x10] sm:$0xf]  ;;  %v1459_v60 = vld [vmem:[%s1370_s23 + $0x14] sm:$0x3] }
  0x19   : > { %v466_v40 = vrot.slane %v465_v32, 4  ;;  %v758_v41 = vrot.slane %v756_v33, 4  ;;  %v761_v42 = vrot.slane %v759_v34, 5  ;;  %v453_v44 = vshrl.u32 %v1385_v1, 16  ;;  %v394_v61 = vld [vmem:[%s1434_s6 + $0x8] sm:$0xf] }
  0x1a   : > { %v452_v45 = vsel %vm1421_vm2, %v447_v36, %v451_v22  ;;  %v744_v46 = vrot.slane %v743_v37, 4  ;;  %v472_v47 = vshrl.u32 %v1391_v3, 16  ;;  %v750_v48 = vshrl.u32 %v1401_v7, 16  ;;  %v1469_v14 = vld [vmem:[%s1381_s29 + $0x10] sm:$0xf] }
  0x1b   : > { %v1449_v50 = vsel %vm1421_vm2, %v466_v40, %v470_v25  ;;  %v670_v51 = vmax.bf16 %v452_v45, %v414_v8  ;;  %v762_v52 = vor.u32 %v761_v42, %v758_v41  ;;  %v455_v53 = vrot.slane %v453_v44, 4  ;;  %v1476_v23 = vld [vmem:[%s1375_s26 + $0x14] sm:$0x3]  ;;  %v393_v24 = vld [vmem:[%s1434_s6 + $0x4] sm:$0x3] }
  0x1c   : > { %v672_v56 = vmax.bf16 %v1449_v50, %v416_v9  ;;  %v749_v57 = vsel %vm1421_vm2, %v744_v46, %v748_v38  ;;  %v474_v58 = vrot.slane %v472_v47, 4  ;;  %v752_v59 = vrot.slane %v750_v48, 4  ;;  %v1497_v47 = vld [vmem:[%s1370_s23 + $0x18] sm:$0xf] }
  0x1d   : > { %v692_v62 = vmax.bf16 %v670_v51, %v1398_v6  ;;  %v456_v63 = vor.u32 %v455_v53, %v451_v22  ;;  %v769_v0 = vshrl.u32 %v1437_v43, 16  ;;  %v418_v1 = vmax.bf16 %v1445_v49, %v1452_v54  ;;  %v1500_v48 = vld [vmem:[%s1375_s26 + $0x18] sm:$0xf] }
  0x1e   : > { %v694_v4 = vmax.bf16 %v672_v56, %v1406_v12  ;;  %v475_v8 = vor.u32 %v474_v58, %v470_v25  ;;  %v753_v9 = vor.u32 %v752_v59, %v748_v38  ;;  %v478_v10 = vshrl.u32 %v1452_v54, 16  ;;  %v1512_v59 = vld [vmem:[%s1370_s23 + $0x1c] sm:$0x3] }
  0x1f   : > { %v714_v11 = vmax.bf16 %v692_v62, %v392_v55  ;;  %v457_v13 = vrot.slane %v456_v63, 4  ;;  %v481_v6 = vshll.u32 %v1452_v54, 16  ;;  %v487_v15 = vshll.u32 %v1459_v60, 16 }
  0x20   : > { %v716_v16 = vmax.bf16 %v694_v4, %v394_v61  ;;  %v1473_v17 = vrot.slane %v475_v8, 4  ;;  %v754_v18 = vrot.slane %v753_v9, 4  ;;  %v480_v19 = vrot.slane %v478_v10, 4  ;;  %v396_v61 = vld [vmem:[%s1434_s6 + $0x10] sm:$0xf] }
  0x21   : > { %v967_v12 = vmax.bf16 %v749_v57, %v714_v11  ;;  %v671_v20 = vmax.bf16 %v457_v13, %v415_v35  ;;  %v483_v21 = vrot.slane %v481_v6, 5  ;;  %v489_v22 = vrot.slane %v487_v15, 5  ;;  %v395_v35 = vld [vmem:[%s1434_s6 + $0xc] sm:$0x3]  ;;  %v1080_v15 = vld [vmem:[%s1509_s9 + $0x4] sm:$0x3] }
  0x22   : > { %v673_v25 = vmax.bf16 %v1473_v17, %v417_v39  ;;  %v763_v27 = vrot.slane %v762_v52, 4  ;;  %v765_v28 = vshll.u32 %v1437_v43, 16  ;;  %v775_v29 = vshrl.u32 %v1469_v14, 16 }
  0x23   : > { %v989_v30 = vmax.bf16 %v967_v12, %v1388_v2  ;;  %v693_v32 = vmax.bf16 %v671_v20, %v1401_v7  ;;  %v484_v33 = vor.u32 %v483_v21, %v480_v19  ;;  %v778_v34 = vshll.u32 %v1469_v14, 16  ;;  %v1491_v7 = vld [vmem:[%s1381_s29 + $0x14] sm:$0x3] }
  0x24   : > { %v695_v36 = vmax.bf16 %v673_v25, %v1437_v43  ;;  %v767_v37 = vrot.slane %v765_v28, 5  ;;  %v777_v38 = vrot.slane %v775_v29, 4  ;;  %v419_v39 = vmax.bf16 %v1476_v23, %v1459_v60 }
  0x25   : > { %v1011_v40 = vmax.bf16 %v989_v30, %v1395_v5  ;;  %v715_v41 = vmax.bf16 %v693_v32, %v393_v24  ;;  %v485_v2 = vrot.slane %v484_v33, 4  ;;  %v780_v42 = vrot.slane %v778_v34, 5 }
  0x26   : > { %v768_v44 = vsel %vm1421_vm2, %v763_v27, %v767_v37  ;;  %v491_v45 = vshrl.u32 %v1459_v60, 16  ;;  %v717_v43 = vmax.bf16 %v695_v36, %v395_v35  ;;  %v771_v46 = vrot.slane %v769_v0, 4  ;;  %v1084_v35 = vld [vmem:[%s1509_s9 + $0xc] sm:$0x3] }
  0x27   : > { %v1054_v5 = vmax.bf16 %v1011_v40, %v1449_v50  ;;  %v968_v51 = vmax.bf16 %v754_v18, %v715_v41  ;;  %v490_v52 = vsel %vm1421_vm2, %v485_v2, %v489_v22  ;;  %v781_v53 = vor.u32 %v780_v42, %v777_v38  ;;  %v377_v40 = vld [vmem:[%s1381_s29 + $0x1c] sm:$0x3] }
  0x28   : > { %v674_v55 = vmax.bf16 %v490_v52, %v418_v1  ;;  %v969_v56 = vmax.bf16 %v768_v44, %v716_v16  ;;  %v493_v57 = vrot.slane %v491_v45, 4  ;;  %v772_v58 = vor.u32 %v771_v46, %v767_v37  ;;  %v1556_v44 = vld [vmem:[%s1370_s23 + $0x20] sm:$0xf] }
  0x29   : > { %1076 = vst [vmem:[%s1509_s9] sm:$0xf] %v1054_v5  ;;  %v990_v50 = vmax.bf16 %v968_v51, %v1391_v3  ;;  %v788_v62 = vshrl.u32 %v1491_v7, 16  ;;  %v420_v63 = vmax.bf16 %v1500_v48, %v1497_v47  ;;  %v497_v0 = vshrl.u32 %v1497_v47, 16  ;;  %v1559_v45 = vld [vmem:[%s1375_s26 + $0x20] sm:$0xf] }
  0x2a   : > { %v696_v1 = vmax.bf16 %v674_v55, %v1469_v14  ;;  %v991_v4 = vmax.bf16 %v969_v56, %v1452_v54  ;;  %v494_v8 = vor.u32 %v493_v57, %v489_v22  ;;  %v773_v9 = vrot.slane %v772_v58, 4  ;;  %v1537_v22 = vld [vmem:[%s1375_s26 + $0x1c] sm:$0x3]  ;;  %v398_v58 = vld [vmem:[%s1434_s6 + $0x18] sm:$0xf] }
  0x2b   : > { %v1012_v10 = vmax.bf16 %v990_v50, %v1416_v26  ;;  %v499_v11 = vrot.slane %v497_v0, 4  ;;  %v500_v3 = vshll.u32 %v1497_v47, 16  ;;  %v506_v13 = vshll.u32 %v1512_v59, 16  ;;  %v376_v26 = vld [vmem:[%s1381_s29 + $0x18] sm:$0xf] }
  0x2c   : > { %v718_v14 = vmax.bf16 %v696_v1, %v396_v61  ;;  %v1013_v54 = vmax.bf16 %v991_v4, %v1445_v49  ;;  %v495_v16 = vrot.slane %v494_v8, 4  ;;  %v970_v18 = vmax.bf16 %v773_v9, %v717_v43  ;;  %v1575_v8 = vld [vmem:[%s1381_s29 + $0x20] sm:$0xf] }
  0x2d   : > { %v1055_v19 = vmax.bf16 %v1012_v10, %v1473_v17  ;;  %v502_v12 = vrot.slane %v500_v3, 5  ;;  %v508_v20 = vrot.slane %v506_v13, 5  ;;  %v782_v21 = vrot.slane %v781_v53, 4  ;;  %v397_v17 = vld [vmem:[%s1434_s6 + $0x14] sm:$0x3] }
  0x2e   : > { %v1056_v24 = vmax.bf16 %v1013_v54, %v490_v52  ;;  %v675_v25 = vmax.bf16 %v495_v16, %v419_v39  ;;  %v992_v27 = vmax.bf16 %v970_v18, %v1459_v60  ;;  %v784_v49 = vshll.u32 %v1491_v7, 16  ;;  %v1564_v52 = vld [vmem:[%s1370_s23 + $0x24] sm:$0x3] }
  0x2f   : > { %v1081_v28 = vsel %vm1528_vm5, %v1055_v19, %v1080_v15  ;;  %v503_v29 = vor.u32 %v502_v12, %v499_v11  ;;  %v794_v30 = vshrl.u32 %v376_v26, 16  ;;  %v797_v32 = vshll.u32 %v376_v26, 16  ;;  %v1581_v13 = vld [vmem:[%s1375_s26 + $0x24] sm:$0x3] }
  0x30   : > { %1082 = vst [vmem:[%s1509_s9 + $0x4] sm:$0x3] %v1081_v28  ;;  %1083 = vst [vmem:[%s1509_s9 + $0x8] sm:$0xf] %v1056_v24  ;;  %v697_v33 = vmax.bf16 %v675_v25, %v1491_v7  ;;  %v1014_v34 = vmax.bf16 %v992_v27, %v1476_v23  ;;  %v786_v60 = vrot.slane %v784_v49, 5  ;;  %v421_v36 = vmax.bf16 %v1537_v22, %v1512_v59 }
  0x31   : > { %v504_v37 = vrot.slane %v503_v29, 4  ;;  %v796_v38 = vrot.slane %v794_v30, 4  ;;  %v799_v39 = vrot.slane %v797_v32, 5  ;;  %v510_v41 = vshrl.u32 %v1512_v59, 16  ;;  %v1587_v24 = vld [vmem:[%s1381_s29 + $0x24] sm:$0x3] }
  0x32   : > { %v1057_v2 = vmax.bf16 %v1014_v34, %v495_v16  ;;  %v787_v42 = vsel %vm1421_vm2, %v782_v21, %v786_v60  ;;  %v719_v7 = vmax.bf16 %v697_v33, %v397_v17  ;;  %v790_v23 = vrot.slane %v788_v62, 4  ;;  %v399_v25 = vld [vmem:[%s1434_s6 + $0x1c] sm:$0x3]  ;;  %v1596_v34 = vld [vmem:[%s1375_s26 + $0x28] sm:$0xf] }
  0x33   : > { %v509_v43 = vsel %vm1421_vm2, %v504_v37, %v508_v20  ;;  %v800_v46 = vor.u32 %v799_v39, %v796_v38  ;;  %v971_v5 = vmax.bf16 %v787_v42, %v718_v14  ;;  %v512_v51 = vrot.slane %v510_v41, 4  ;;  %v1603_v39 = vld [vmem:[%s1370_s23 + $0x28] sm:$0xf]  ;;  %v1608_v42 = vld [vmem:[%s1370_s23 + $0x2c] sm:$0x3] }
  0x34   : > { %v1085_v53 = vsel %vm1528_vm5, %v1057_v2, %v1084_v35  ;;  %v676_v55 = vmax.bf16 %v509_v43, %v420_v63  ;;  %v791_v56 = vor.u32 %v790_v23, %v786_v60  ;;  %v807_v57 = vshrl.u32 %v377_v40, 16  ;;  %v1088_v35 = vld [vmem:[%s1509_s9 + $0x14] sm:$0x3] }
  0x35   : > { %1086 = vst [vmem:[%s1509_s9 + $0xc] sm:$0x3] %v1085_v53  ;;  %v993_v50 = vmax.bf16 %v971_v5, %v1497_v47  ;;  %v513_v61 = vor.u32 %v512_v51, %v508_v20  ;;  %v422_v62 = vmax.bf16 %v1559_v45, %v1556_v44  ;;  %v516_v0 = vshrl.u32 %v1556_v44, 16  ;;  %v400_v51 = vld [vmem:[%s1434_s6 + $0x20] sm:$0xf] }
  0x36   : > { %v698_v1 = vmax.bf16 %v676_v55, %v376_v26  ;;  %v792_v4 = vrot.slane %v791_v56, 4  ;;  %v519_v9 = vshll.u32 %v1556_v44, 16  ;;  %v525_v63 = vshll.u32 %v1564_v52, 16 }
  0x37   : > { %v1015_v10 = vmax.bf16 %v993_v50, %v1500_v48  ;;  %v514_v11 = vrot.slane %v513_v61, 4  ;;  %v518_v47 = vrot.slane %v516_v0, 4  ;;  %v801_v3 = vrot.slane %v800_v46, 4  ;;  %v380_v61 = vld [vmem:[%s1381_s29 + $0x28] sm:$0xf] }
  0x38   : > { %v720_v15 = vmax.bf16 %v698_v1, %v398_v58  ;;  %v972_v14 = vmax.bf16 %v792_v4, %v719_v7  ;;  %v521_v54 = vrot.slane %v519_v9, 5  ;;  %v527_v16 = vrot.slane %v525_v63, 5 }
  0x39   : > { %v1058_v18 = vmax.bf16 %v1015_v10, %v509_v43  ;;  %v677_v26 = vmax.bf16 %v514_v11, %v421_v36  ;;  %v803_v19 = vshll.u32 %v377_v40, 16  ;;  %v813_v12 = vshrl.u32 %v1575_v8, 16 }
  0x3a   : > { %v994_v48 = vmax.bf16 %v972_v14, %v1512_v59  ;;  %v522_v20 = vor.u32 %v521_v54, %v518_v47  ;;  %v816_v21 = vshll.u32 %v1575_v8, 16  ;;  %v423_v27 = vmax.bf16 %v1581_v13, %v1564_v52  ;;  %v401_v54 = vld [vmem:[%s1434_s6 + $0x24] sm:$0x3] }
  0x3b   : > { %1087 = vst [vmem:[%s1509_s9 + $0x10] sm:$0xf] %v1058_v18  ;;  %v699_v49 = vmax.bf16 %v677_v26, %v377_v40  ;;  %v805_v28 = vrot.slane %v803_v19, 5  ;;  %v815_v29 = vrot.slane %v813_v12, 4  ;;  %v529_v30 = vshrl.u32 %v1564_v52, 16 }
  0x3c   : > { %v1016_v59 = vmax.bf16 %v994_v48, %v1537_v22  ;;  %v523_v32 = vrot.slane %v522_v20, 4  ;;  %v818_v17 = vrot.slane %v816_v21, 5  ;;  %v809_v33 = vrot.slane %v807_v57, 4  ;;  %v1631_v26 = vld [vmem:[%s1381_s29 + $0x2c] sm:$0x3] }
  0x3d   : > { %v806_v60 = vsel %vm1421_vm2, %v801_v3, %v805_v28  ;;  %v531_v36 = vrot.slane %v529_v30, 4  ;;  %v721_v37 = vmax.bf16 %v699_v49, %v399_v25  ;;  %v826_v38 = vshrl.u32 %v1587_v24, 16 }
  0x3e   : > { %v1059_v40 = vmax.bf16 %v1016_v59, %v514_v11  ;;  %v528_v22 = vsel %vm1421_vm2, %v523_v32, %v527_v16  ;;  %v819_v41 = vor.u32 %v818_v17, %v815_v29  ;;  %v973_v2 = vmax.bf16 %v806_v60, %v720_v15  ;;  %v1092_v29 = vld [vmem:[%s1509_s9 + $0x1c] sm:$0x3] }
  0x3f   : > { %v678_v7 = vmax.bf16 %v528_v22, %v422_v62  ;;  %v532_v23 = vor.u32 %v531_v36, %v527_v16  ;;  %v810_v43 = vor.u32 %v809_v33, %v805_v28  ;;  %v424_v46 = vmax.bf16 %v1596_v34, %v1603_v39  ;;  %v1642_v28 = vld [vmem:[%s1375_s26 + $0x30] sm:$0xf]  ;;  %v1651_v36 = vld [vmem:[%s1370_s23 + $0x34] sm:$0x3] }
  0x40   : > { %v1089_v5 = vsel %vm1528_vm5, %v1059_v40, %v1088_v35  ;;  %v995_v53 = vmax.bf16 %v973_v2, %v1556_v44  ;;  %v535_v55 = vshrl.u32 %v1603_v39, 16  ;;  %v538_v56 = vshll.u32 %v1603_v39, 16  ;;  %v1624_v44 = vld [vmem:[%s1375_s26 + $0x2c] sm:$0x3] }
  0x41   : > { %1090 = vst [vmem:[%s1509_s9 + $0x14] sm:$0x3] %v1089_v5  ;;  %v700_v57 = vmax.bf16 %v678_v7, %v1575_v8  ;;  %v533_v58 = vrot.slane %v532_v23, 4  ;;  %v811_v50 = vrot.slane %v810_v43, 4  ;;  %v544_v62 = vshll.u32 %v1608_v42, 16 }
  0x42   : > { %v1017_v0 = vmax.bf16 %v995_v53, %v1559_v45  ;;  %v537_v1 = vrot.slane %v535_v55, 4  ;;  %v540_v4 = vrot.slane %v538_v56, 5  ;;  %v820_v9 = vrot.slane %v819_v41, 4 }
  0x43   : > { %v722_v63 = vmax.bf16 %v700_v57, %v400_v51  ;;  %v679_v10 = vmax.bf16 %v533_v58, %v423_v27  ;;  %v974_v11 = vmax.bf16 %v811_v50, %v721_v37  ;;  %v546_v47 = vrot.slane %v544_v62, 5  ;;  %v402_v37 = vld [vmem:[%s1434_s6 + $0x28] sm:$0xf]  ;;  %v382_v51 = vld [vmem:[%s1381_s29 + $0x30] sm:$0xf] }
  0x44   : > { %v1060_v8 = vmax.bf16 %v1017_v0, %v528_v22  ;;  %v541_v3 = vor.u32 %v540_v4, %v537_v1  ;;  %v822_v15 = vshll.u32 %v1587_v24, 16  ;;  %v832_v14 = vshrl.u32 %v380_v61, 16  ;;  %v1666_v62 = vld [vmem:[%s1375_s26 + $0x34] sm:$0x3] }
  0x45   : > { %v701_v45 = vmax.bf16 %v679_v10, %v1587_v24  ;;  %v996_v16 = vmax.bf16 %v974_v11, %v1564_v52  ;;  %v835_v18 = vshll.u32 %v380_v61, 16  ;;  %v425_v19 = vmax.bf16 %v1624_v44, %v1608_v42  ;;  %v1639_v52 = vld [vmem:[%s1370_s23 + $0x30] sm:$0xf]  ;;  %v403_v11 = vld [vmem:[%s1434_s6 + $0x2c] sm:$0x3] }
  0x46   : > { %1091 = vst [vmem:[%s1509_s9 + $0x18] sm:$0xf] %v1060_v8  ;;  %v542_v12 = vrot.slane %v541_v3, 4  ;;  %v824_v48 = vrot.slane %v822_v15, 5  ;;  %v834_v20 = vrot.slane %v832_v14, 4  ;;  %v548_v21 = vshrl.u32 %v1608_v42, 16 }
  0x47   : > { %v1018_v25 = vmax.bf16 %v996_v16, %v1581_v13  ;;  %v837_v24 = vrot.slane %v835_v18, 5  ;;  %v723_v27 = vmax.bf16 %v701_v45, %v401_v54  ;;  %v828_v49 = vrot.slane %v826_v38, 4  ;;  %v383_v45 = vld [vmem:[%s1381_s29 + $0x34] sm:$0x3] }
  0x48   : > { %v547_v30 = vsel %vm1421_vm2, %v542_v12, %v546_v47  ;;  %v825_v59 = vsel %vm1421_vm2, %v820_v9, %v824_v48  ;;  %v550_v32 = vrot.slane %v548_v21, 4  ;;  %v845_v17 = vshrl.u32 %v1631_v26, 16  ;;  %v1681_v12 = vld [vmem:[%s1370_s23 + $0x38] sm:$0xf] }
  0x49   : > { %v1061_v13 = vmax.bf16 %v1018_v25, %v533_v58  ;;  %v680_v33 = vmax.bf16 %v547_v30, %v424_v46  ;;  %v838_v35 = vor.u32 %v837_v24, %v834_v20  ;;  %v975_v60 = vmax.bf16 %v825_v59, %v722_v63  ;;  %v1096_v20 = vld [vmem:[%s1509_s9 + $0x24] sm:$0x3]  ;;  %v1690_v59 = vld [vmem:[%s1370_s23 + $0x3c] sm:$0x3] }
  0x4a   : > { %v551_v38 = vor.u32 %v550_v32, %v546_v47  ;;  %v829_v40 = vor.u32 %v828_v49, %v824_v48  ;;  %v426_v22 = vmax.bf16 %v1642_v28, %v1639_v52  ;;  %v554_v41 = vshrl.u32 %v1639_v52, 16  ;;  %v1684_v48 = vld [vmem:[%s1375_s26 + $0x38] sm:$0xf]  ;;  %v404_v32 = vld [vmem:[%s1434_s6 + $0x30] sm:$0xf] }
  0x4b   : > { %v1093_v2 = vsel %vm1528_vm5, %v1061_v13, %v1092_v29  ;;  %v702_v7 = vmax.bf16 %v680_v33, %v380_v61  ;;  %v997_v23 = vmax.bf16 %v975_v60, %v1603_v39  ;;  %v557_v43 = vshll.u32 %v1639_v52, 16 }
  0x4c   : > { %1094 = vst [vmem:[%s1509_s9 + $0x1c] sm:$0x3] %v1093_v2  ;;  %v552_v46 = vrot.slane %v551_v38, 4  ;;  %v830_v5 = vrot.slane %v829_v40, 4  ;;  %v556_v53 = vrot.slane %v554_v41, 4  ;;  %v563_v55 = vshll.u32 %v1651_v36, 16 }
  0x4d   : > { %v724_v56 = vmax.bf16 %v702_v7, %v402_v37  ;;  %v1019_v57 = vmax.bf16 %v997_v23, %v1596_v34  ;;  %v559_v58 = vrot.slane %v557_v43, 5  ;;  %v839_v50 = vrot.slane %v838_v35, 4  ;;  %v384_v2 = vld [vmem:[%s1381_s29 + $0x38] sm:$0xf] }
  0x4e   : > { %v681_v61 = vmax.bf16 %v552_v46, %v425_v19  ;;  %v976_v39 = vmax.bf16 %v830_v5, %v723_v27  ;;  %v565_v0 = vrot.slane %v563_v55, 5  ;;  %v841_v1 = vshll.u32 %v1631_v26, 16 }
  0x4f   : > { %v1062_v4 = vmax.bf16 %v1019_v57, %v547_v30  ;;  %v560_v9 = vor.u32 %v559_v58, %v556_v53  ;;  %v851_v63 = vshrl.u32 %v382_v51, 16  ;;  %v854_v10 = vshll.u32 %v382_v51, 16  ;;  %v1705_v53 = vld [vmem:[%s1375_s26 + $0x3c] sm:$0x3] }
  0x50   : > { %v703_v34 = vmax.bf16 %v681_v61, %v1631_v26  ;;  %v998_v47 = vmax.bf16 %v976_v39, %v1608_v42  ;;  %v843_v8 = vrot.slane %v841_v1, 5  ;;  %v427_v3 = vmax.bf16 %v1666_v62, %v1651_v36  ;;  %v405_v39 = vld [vmem:[%s1434_s6 + $0x34] sm:$0x3]  ;;  %v1100_v1 = vld [vmem:[%s1509_s9 + $0x2c] sm:$0x3] }
  0x51   : > { %1095 = vst [vmem:[%s1509_s9 + $0x20] sm:$0xf] %v1062_v4  ;;  %v561_v15 = vrot.slane %v560_v9, 4  ;;  %v853_v14 = vrot.slane %v851_v63, 4  ;;  %v856_v54 = vrot.slane %v854_v10, 5  ;;  %v567_v16 = vshrl.u32 %v1651_v36, 16 }
  0x52   : > { %v1020_v18 = vmax.bf16 %v998_v47, %v1624_v44  ;;  %v844_v26 = vsel %vm1421_vm2, %v839_v50, %v843_v8  ;;  %v725_v19 = vmax.bf16 %v703_v34, %v403_v11  ;;  %v847_v42 = vrot.slane %v845_v17, 4  ;;  %v385_v47 = vld [vmem:[%s1381_s29 + $0x3c] sm:$0x3] }
  0x53   : > { %v566_v21 = vsel %vm1421_vm2, %v561_v15, %v565_v0  ;;  %v857_v25 = vor.u32 %v856_v54, %v853_v14  ;;  %v977_v24 = vmax.bf16 %v844_v26, %v724_v56  ;;  %v569_v27 = vrot.slane %v567_v16, 4  ;;  %v1719_v54 = vld [vmem:[%s1370_s23 + $0x40] sm:$0xf] }
  0x54   : > { %v1063_v49 = vmax.bf16 %v1020_v18, %v552_v46  ;;  %v682_v44 = vmax.bf16 %v566_v21, %v426_v22  ;;  %v848_v29 = vor.u32 %v847_v42, %v843_v8  ;;  %v864_v30 = vshrl.u32 %v383_v45, 16 }
  0x55   : > { %v999_v17 = vmax.bf16 %v977_v24, %v1639_v52  ;;  %v570_v13 = vor.u32 %v569_v27, %v565_v0  ;;  %v428_v33 = vmax.bf16 %v1684_v48, %v1681_v12  ;;  %v573_v35 = vshrl.u32 %v1681_v12, 16  ;;  %v406_v27 = vld [vmem:[%s1434_s6 + $0x38] sm:$0xf] }
  0x56   : > { %v1097_v60 = vsel %vm1528_vm5, %v1063_v49, %v1096_v20  ;;  %v704_v37 = vmax.bf16 %v682_v44, %v382_v51  ;;  %v849_v38 = vrot.slane %v848_v29, 4  ;;  %v576_v40 = vshll.u32 %v1681_v12, 16 }
  0x57   : > { %1098 = vst [vmem:[%s1509_s9 + $0x24] sm:$0x3] %v1097_v60  ;;  %v1021_v22 = vmax.bf16 %v999_v17, %v1642_v28  ;;  %v571_v41 = vrot.slane %v570_v13, 4  ;;  %v575_v52 = vrot.slane %v573_v35, 4  ;;  %v582_v7 = vshll.u32 %v1690_v59, 16 }
  0x58   : > { %v726_v23 = vmax.bf16 %v704_v37, %v404_v32  ;;  %v978_v43 = vmax.bf16 %v849_v38, %v725_v19  ;;  %v578_v46 = vrot.slane %v576_v40, 5  ;;  %v858_v5 = vrot.slane %v857_v25, 4  ;;  %v1727_v25 = vld [vmem:[%s1370_s23 + $0x44] sm:$0x3]  ;;  %v1738_v13 = vld [vmem:[%s1381_s29 + $0x40] sm:$0xf] }
  0x59   : > { %v1064_v51 = vmax.bf16 %v1021_v22, %v566_v21  ;;  %v683_v55 = vmax.bf16 %v571_v41, %v427_v3  ;;  %v584_v56 = vrot.slane %v582_v7, 5  ;;  %v860_v57 = vshll.u32 %v383_v45, 16 }
  0x5a   : > { %v1000_v28 = vmax.bf16 %v978_v43, %v1651_v36  ;;  %v579_v58 = vor.u32 %v578_v46, %v575_v52  ;;  %v870_v50 = vshrl.u32 %v384_v2, 16  ;;  %v873_v61 = vshll.u32 %v384_v2, 16  ;;  %v407_v46 = vld [vmem:[%s1434_s6 + $0x3c] sm:$0x3] }
  0x5b   : > { %1099 = vst [vmem:[%s1509_s9 + $0x28] sm:$0xf] %v1064_v51  ;;  %v705_v0 = vmax.bf16 %v683_v55, %v383_v45  ;;  %v862_v4 = vrot.slane %v860_v57, 5  ;;  %v429_v9 = vmax.bf16 %v1705_v53, %v1690_v59  ;;  %v586_v63 = vshrl.u32 %v1690_v59, 16  ;;  %v1722_v45 = vld [vmem:[%s1375_s26 + $0x40] sm:$0xf] }
  0x5c   : > { %v1022_v10 = vmax.bf16 %v1000_v28, %v1666_v62  ;;  %v580_v11 = vrot.slane %v579_v58, 4  ;;  %v872_v34 = vrot.slane %v870_v50, 4  ;;  %v875_v36 = vrot.slane %v873_v61, 5 }
  0x5d   : > { %v863_v8 = vsel %vm1421_vm2, %v858_v5, %v862_v4  ;;  %v588_v3 = vrot.slane %v586_v63, 4  ;;  %v727_v15 = vmax.bf16 %v705_v0, %v405_v39  ;;  %v866_v14 = vrot.slane %v864_v30, 4  ;;  %v1104_v39 = vld [vmem:[%s1509_s9 + $0x34] sm:$0x3] }
  0x5e   : > { %v1065_v16 = vmax.bf16 %v1022_v10, %v571_v41  ;;  %v585_v62 = vsel %vm1421_vm2, %v580_v11, %v584_v56  ;;  %v876_v18 = vor.u32 %v875_v36, %v872_v34  ;;  %v979_v26 = vmax.bf16 %v863_v8, %v726_v23  ;;  %v1766_v34 = vld [vmem:[%s1370_s23 + $0x48] sm:$0xf] }
  0x5f   : > { %v684_v19 = vmax.bf16 %v585_v62, %v428_v33  ;;  %v589_v42 = vor.u32 %v588_v3, %v584_v56  ;;  %v867_v20 = vor.u32 %v866_v14, %v862_v4  ;;  %v883_v21 = vshrl.u32 %v385_v47, 16  ;;  %v1751_v56 = vld [vmem:[%s1381_s29 + $0x44] sm:$0x3]  ;;  %v1760_v4 = vld [vmem:[%s1375_s26 + $0x48] sm:$0xf] }
  0x60   : > { %v1101_v24 = vsel %vm1528_vm5, %v1065_v16, %v1100_v1  ;;  %v1001_v49 = vmax.bf16 %v979_v26, %v1681_v12  ;;  %v430_v44 = vmax.bf16 %v1722_v45, %v1719_v54  ;;  %v592_v29 = vshrl.u32 %v1719_v54, 16  ;;  %v1771_v3 = vld [vmem:[%s1370_s23 + $0x4c] sm:$0x3]  ;;  %v408_v26 = vld [vmem:[%s1434_s6 + $0x40] sm:$0xf] }
  0x61   : > { %1102 = vst [vmem:[%s1509_s9 + $0x2c] sm:$0x3] %v1101_v24  ;;  %v706_v30 = vmax.bf16 %v684_v19, %v384_v2  ;;  %v590_v32 = vrot.slane %v589_v42, 4  ;;  %v868_v17 = vrot.slane %v867_v20, 4  ;;  %v595_v33 = vshll.u32 %v1719_v54, 16 }
  0x62   : > { %v1023_v35 = vmax.bf16 %v1001_v49, %v1684_v48  ;;  %v594_v60 = vrot.slane %v592_v29, 4  ;;  %v601_v12 = vshll.u32 %v1727_v25, 16  ;;  %v877_v37 = vrot.slane %v876_v18, 4  ;;  %v1744_v2 = vld [vmem:[%s1375_s26 + $0x44] sm:$0x3] }
  0x63   : > { %v728_v38 = vmax.bf16 %v706_v30, %v406_v27  ;;  %v685_v40 = vmax.bf16 %v590_v32, %v429_v9  ;;  %v980_v22 = vmax.bf16 %v868_v17, %v727_v15  ;;  %v597_v41 = vrot.slane %v595_v33, 5  ;;  %v388_v49 = vld [vmem:[%s1381_s29 + $0x48] sm:$0xf] }
  0x64   : > { %v1066_v52 = vmax.bf16 %v1023_v35, %v585_v62  ;;  %v603_v7 = vrot.slane %v601_v12, 5  ;;  %v879_v23 = vshll.u32 %v385_v47, 16  ;;  %v889_v43 = vshrl.u32 %v1738_v13, 16 }
  0x65   : > { %v707_v48 = vmax.bf16 %v685_v40, %v385_v47  ;;  %v1002_v5 = vmax.bf16 %v980_v22, %v1690_v59  ;;  %v598_v51 = vor.u32 %v597_v41, %v594_v60  ;;  %v892_v55 = vshll.u32 %v1738_v13, 16  ;;  %v409_v22 = vld [vmem:[%s1434_s6 + $0x44] sm:$0x3] }
  0x66   : > { %1103 = vst [vmem:[%s1509_s9 + $0x30] sm:$0xf] %v1066_v52  ;;  %v881_v57 = vrot.slane %v879_v23, 5  ;;  %v891_v28 = vrot.slane %v889_v43, 4  ;;  %v431_v58 = vmax.bf16 %v1744_v2, %v1727_v25  ;;  %v605_v50 = vshrl.u32 %v1727_v25, 16 }
  0x67   : > { %v1024_v61 = vmax.bf16 %v1002_v5, %v1705_v53  ;;  %v599_v0 = vrot.slane %v598_v51, 4  ;;  %v894_v59 = vrot.slane %v892_v55, 5  ;;  %v729_v1 = vmax.bf16 %v707_v48, %v407_v46 }
  0x68   : > { %v882_v9 = vsel %vm1421_vm2, %v877_v37, %v881_v57  ;;  %v607_v63 = vrot.slane %v605_v50, 4  ;;  %v885_v10 = vrot.slane %v883_v21, 4  ;;  %v902_v11 = vshrl.u32 %v1751_v56, 16 }
  0x69   : > { %v1067_v36 = vmax.bf16 %v1024_v61, %v590_v32  ;;  %v604_v53 = vsel %vm1421_vm2, %v599_v0, %v603_v7  ;;  %v895_v47 = vor.u32 %v894_v59, %v891_v28  ;;  %v981_v8 = vmax.bf16 %v882_v9, %v728_v38  ;;  %v1805_v28 = vld [vmem:[%s1375_s26 + $0x50] sm:$0xf] }
  0x6a   : > { %v686_v15 = vmax.bf16 %v604_v53, %v430_v44  ;;  %v608_v14 = vor.u32 %v607_v63, %v603_v7  ;;  %v886_v16 = vor.u32 %v885_v10, %v881_v57  ;;  %v432_v62 = vmax.bf16 %v1760_v4, %v1766_v34  ;;  %v1794_v7 = vld [vmem:[%s1381_s29 + $0x4c] sm:$0x3]  ;;  %v1814_v63 = vld [vmem:[%s1370_s23 + $0x54] sm:$0x3]  ;;  %v410_v10 = vld [vmem:[%s1434_s6 + $0x48] sm:$0xf] }
  0x6b   : > { %v1105_v18 = vsel %vm1528_vm5, %v1067_v36, %v1104_v39  ;;  %v1003_v19 = vmax.bf16 %v981_v8, %v1719_v54  ;;  %v611_v42 = vshrl.u32 %v1766_v34, 16  ;;  %v614_v20 = vshll.u32 %v1766_v34, 16  ;;  %v1787_v54 = vld [vmem:[%s1375_s26 + $0x4c] sm:$0x3] }
  0x6c   : > { %1106 = vst [vmem:[%s1509_s9 + $0x34] sm:$0x3] %v1105_v18  ;;  %v708_v21 = vmax.bf16 %v686_v15, %v1738_v13  ;;  %v609_v24 = vrot.slane %v608_v14, 4  ;;  %v887_v27 = vrot.slane %v886_v16, 4  ;;  %v620_v44 = vshll.u32 %v1771_v3, 16 }
  0x6d   : > { %v1025_v29 = vmax.bf16 %v1003_v19, %v1722_v45  ;;  %v613_v30 = vrot.slane %v611_v42, 4  ;;  %v616_v32 = vrot.slane %v614_v20, 5  ;;  %v896_v17 = vrot.slane %v895_v47, 4 }
  0x6e   : > { %v730_v33 = vmax.bf16 %v708_v21, %v408_v26  ;;  %v687_v35 = vmax.bf16 %v609_v24, %v431_v58  ;;  %v982_v60 = vmax.bf16 %v887_v27, %v729_v1  ;;  %v622_v12 = vrot.slane %v620_v44, 5  ;;  %v1108_v58 = vld [vmem:[%s1509_s9 + $0x3c] sm:$0x3]  ;;  %v390_v26 = vld [vmem:[%s1381_s29 + $0x50] sm:$0xf] }
  0x6f   : > { %v1068_v13 = vmax.bf16 %v1025_v29, %v604_v53  ;;  %v617_v37 = vor.u32 %v616_v32, %v613_v30  ;;  %v898_v38 = vshll.u32 %v1751_v56, 16  ;;  %v908_v40 = vshrl.u32 %v388_v49, 16  ;;  %v1829_v44 = vld [vmem:[%s1375_s26 + $0x54] sm:$0x3] }
  0x70   : > { %v709_v45 = vmax.bf16 %v687_v35, %v1751_v56  ;;  %v1004_v41 = vmax.bf16 %v982_v60, %v1727_v25  ;;  %v911_v52 = vshll.u32 %v388_v49, 16  ;;  %v433_v23 = vmax.bf16 %v1787_v54, %v1771_v3  ;;  %v1802_v25 = vld [vmem:[%s1370_s23 + $0x50] sm:$0xf]  ;;  %v411_v60 = vld [vmem:[%s1434_s6 + $0x4c] sm:$0x3] }
  0x71   : > { %1107 = vst [vmem:[%s1509_s9 + $0x38] sm:$0xf] %v1068_v13  ;;  %v618_v43 = vrot.slane %v617_v37, 4  ;;  %v900_v46 = vrot.slane %v898_v38, 5  ;;  %v910_v48 = vrot.slane %v908_v40, 4  ;;  %v624_v5 = vshrl.u32 %v1771_v3, 16 }
  0x72   : > { %v1026_v51 = vmax.bf16 %v1004_v41, %v1744_v2  ;;  %v913_v55 = vrot.slane %v911_v52, 5  ;;  %v731_v56 = vmax.bf16 %v709_v45, %v409_v22  ;;  %v904_v57 = vrot.slane %v902_v11, 4  ;;  %v391_v45 = vld [vmem:[%s1381_s29 + $0x54] sm:$0x3] }
  0x73   : > { %v623_v50 = vsel %vm1421_vm2, %v618_v43, %v622_v12  ;;  %v901_v61 = vsel %vm1421_vm2, %v896_v17, %v900_v46  ;;  %v626_v39 = vrot.slane %v624_v5, 4  ;;  %v921_v0 = vshrl.u32 %v1794_v7, 16  ;;  %v1112_v43 = vld [vmem:[%s1509_s9 + $0x44] sm:$0x3] }
  0x74   : > { %v1069_v2 = vmax.bf16 %v1026_v51, %v609_v24  ;;  %v688_v59 = vmax.bf16 %v623_v50, %v432_v62  ;;  %v914_v1 = vor.u32 %v913_v55, %v910_v48  ;;  %v983_v9 = vmax.bf16 %v901_v61, %v730_v33  ;;  %v344_v55 = vld [vmem:[%s1370_s23 + $0x58] sm:$0xf] }
  0x75   : > { %v627_v11 = vor.u32 %v626_v39, %v622_v12  ;;  %v905_v36 = vor.u32 %v904_v57, %v900_v46  ;;  %v434_v53 = vmax.bf16 %v1805_v28, %v1802_v25  ;;  %v630_v47 = vshrl.u32 %v1802_v25, 16 }
  0x76   : > { %v1109_v8 = vsel %vm1528_vm5, %v1069_v2, %v1108_v58  ;;  %v710_v15 = vmax.bf16 %v688_v59, %v388_v49  ;;  %v1005_v14 = vmax.bf16 %v983_v9, %v1766_v34  ;;  %v633_v16 = vshll.u32 %v1802_v25, 16  ;;  %v345_v2 = vld [vmem:[%s1370_s23 + $0x5c] sm:$0x3] }
  0x77   : > { %1110 = vst [vmem:[%s1509_s9 + $0x3c] sm:$0x3] %v1109_v8  ;;  %v628_v62 = vrot.slane %v627_v11, 4  ;;  %v906_v18 = vrot.slane %v905_v36, 4  ;;  %v632_v19 = vrot.slane %v630_v47, 4  ;;  %v639_v42 = vshll.u32 %v1814_v63, 16 }
  0x78   : > { %v732_v20 = vmax.bf16 %v710_v15, %v410_v10  ;;  %v1027_v21 = vmax.bf16 %v1005_v14, %v1760_v4  ;;  %v635_v24 = vrot.slane %v633_v16, 5  ;;  %v915_v27 = vrot.slane %v914_v1, 4 }
  0x79   : > { %v689_v49 = vmax.bf16 %v628_v62, %v433_v23  ;;  %v984_v34 = vmax.bf16 %v906_v18, %v731_v56  ;;  %v641_v29 = vrot.slane %v639_v42, 5  ;;  %v917_v30 = vshll.u32 %v1794_v7, 16 }
  0x7a   : > { %v1070_v32 = vmax.bf16 %v1027_v21, %v623_v50  ;;  %v636_v17 = vor.u32 %v635_v24, %v632_v19  ;;  %v927_v33 = vshrl.u32 %v390_v26, 16  ;;  %v930_v35 = vshll.u32 %v390_v26, 16 }
  0x7b   : > { %v711_v12 = vmax.bf16 %v689_v49, %v1794_v7  ;;  %v1006_v4 = vmax.bf16 %v984_v34, %v1771_v3  ;;  %v919_v13 = vrot.slane %v917_v30, 5  ;;  %v435_v37 = vmax.bf16 %v1829_v44, %v1814_v63 }
  0x7c   : > { %1111 = vst [vmem:[%s1509_s9 + $0x40] sm:$0xf] %v1070_v32  ;;  %v637_v38 = vrot.slane %v636_v17, 4  ;;  %v929_v40 = vrot.slane %v927_v33, 4  ;;  %v932_v22 = vrot.slane %v930_v35, 5  ;;  %v643_v41 = vshrl.u32 %v1814_v63, 16 }
  0x7d   : > { %v1028_v52 = vmax.bf16 %v1006_v4, %v1787_v54  ;;  %v920_v7 = vsel %vm1421_vm2, %v915_v27, %v919_v13  ;;  %v733_v3 = vmax.bf16 %v711_v12, %v411_v60  ;;  %v923_v23 = vrot.slane %v921_v0, 4  ;;  %v412_v54 = vld [vmem:[%s1434_s6 + $0x50] sm:$0xf]  ;;  %v368_v27 = vld [vmem:[%s1375_s26 + $0x58] sm:$0xf] }
  0x7e   : > { %v642_v46 = vsel %vm1421_vm2, %v637_v38, %v641_v29  ;;  %v933_v48 = vor.u32 %v932_v22, %v929_v40  ;;  %v985_v5 = vmax.bf16 %v920_v7, %v732_v20  ;;  %v645_v51 = vrot.slane %v643_v41, 4  ;;  %v1116_v33 = vld [vmem:[%s1509_s9 + $0x4c] sm:$0x3] }
  0x7f   : > { %v1071_v56 = vmax.bf16 %v1028_v52, %v628_v62  ;;  %v690_v57 = vmax.bf16 %v642_v46, %v434_v53  ;;  %v924_v58 = vor.u32 %v923_v23, %v919_v13  ;;  %v940_v50 = vshrl.u32 %v391_v45, 16 }
  0x80   : > { %v1007_v61 = vmax.bf16 %v985_v5, %v1802_v25  ;;  %v646_v39 = vor.u32 %v645_v51, %v641_v29  ;;  %v934_v59 = vrot.slane %v933_v48, 4  ;;  %v936_v0 = vshll.u32 %v391_v45, 16 }
  0x81   : > { %v1113_v1 = vsel %vm1528_vm5, %v1071_v56, %v1112_v43  ;;  %v712_v9 = vmax.bf16 %v690_v57, %v390_v26  ;;  %v925_v10 = vrot.slane %v924_v58, 4  ;;  %v1034_v11 = vshrl.u32 %v344_v55, 16 }
  0x82   : > { %1114 = vst [vmem:[%s1509_s9 + $0x44] sm:$0x3] %v1113_v1  ;;  %v1029_v36 = vmax.bf16 %v1007_v61, %v1805_v28  ;;  %v647_v53 = vrot.slane %v646_v39, 4  ;;  %v938_v47 = vrot.slane %v936_v0, 5  ;;  %v1037_v8 = vshll.u32 %v344_v55, 16 }
  0x83   : > { %v734_v25 = vmax.bf16 %v712_v9, %v412_v54  ;;  %v986_v15 = vmax.bf16 %v925_v10, %v733_v3  ;;  %v1036_v14 = vrot.slane %v1034_v11, 4  ;;  %v1043_v16 = vshll.u32 %v345_v2, 16  ;;  %v413_v28 = vld [vmem:[%s1434_s6 + $0x54] sm:$0x3] }
  0x84   : > { %v1072_v62 = vmax.bf16 %v1029_v36, %v642_v46  ;;  %v691_v18 = vmax.bf16 %v647_v53, %v435_v37  ;;  %v939_v26 = vsel %vm1421_vm2, %v934_v59, %v938_v47  ;;  %v1039_v19 = vrot.slane %v1037_v8, 5  ;;  %v1120_v3 = vld [vmem:[%s1509_s9 + $0x54] sm:$0x3] }
  0x85   : > { %v1008_v42 = vmax.bf16 %v986_v15, %v1814_v63  ;;  %v987_v20 = vmax.bf16 %v939_v26, %v734_v25  ;;  %v942_v21 = vrot.slane %v940_v50, 4  ;;  %v1045_v34 = vrot.slane %v1043_v16, 5 }
  0x86   : > { %1115 = vst [vmem:[%s1509_s9 + $0x48] sm:$0xf] %v1072_v62  ;;  %v713_v24 = vmax.bf16 %v691_v18, %v391_v45  ;;  %v1040_v49 = vor.u32 %v1039_v19, %v1036_v14  ;;  %v1047_v29 = vshrl.u32 %v345_v2, 16  ;;  %v369_v45 = vld [vmem:[%s1375_s26 + $0x5c] sm:$0x3] }
  0x87   : > { %v1030_v30 = vmax.bf16 %v1008_v42, %v1829_v44  ;;  %v1009_v32 = vmax.bf16 %v987_v20, %v344_v55  ;;  %v943_v17 = vor.u32 %v942_v21, %v938_v47 }
  0x88   : > { %v1041_v35 = vrot.slane %v1040_v49, 4  ;;  %v735_v60 = vmax.bf16 %v713_v24, %v413_v28  ;;  %v1049_v63 = vrot.slane %v1047_v29, 4 }
  0x89   : > { %v1073_v12 = vmax.bf16 %v1030_v30, %v647_v53  ;;  %v1031_v4 = vmax.bf16 %v1009_v32, %v368_v27  ;;  %v944_v13 = vrot.slane %v943_v17, 4 }
  0x8a   : > { %v1046_v37 = vsel %vm1421_vm2, %v1041_v35, %v1045_v34  ;;  %v1050_v38 = vor.u32 %v1049_v63, %v1045_v34 }
  0x8b   : > { %v1117_v44 = vsel %vm1528_vm5, %v1073_v12, %v1116_v33  ;;  %v1074_v40 = vmax.bf16 %v1046_v37, %v1031_v4  ;;  %v988_v22 = vmax.bf16 %v944_v13, %v735_v60 }
  0x8c   : > { %1118 = vst [vmem:[%s1509_s9 + $0x4c] sm:$0x3] %v1117_v44  ;;  %v1051_v52 = vrot.slane %v1050_v38, 4 }
  0x8d   : > { %1119 = vst [vmem:[%s1509_s9 + $0x50] sm:$0xf] %v1074_v40  ;;  %v1010_v41 = vmax.bf16 %v988_v22, %v345_v2 }
  0x8f   : > { %v1032_v7 = vmax.bf16 %v1010_v41, %v369_v45 }
  0x91   : > { %v1075_v23 = vmax.bf16 %v1051_v52, %v1032_v7 }
  0x93   : > { %v1121_v43 = vsel %vm1528_vm5, %v1075_v23, %v1120_v3 }
  0x94   : > { %1122 = vst [vmem:[%s1509_s9 + $0x54] sm:$0x3] %v1121_v43 }
  0x95 PF: > { %s14_s17 = sadd.s32 1, %s1320_s17   ;;  %s1891_s15 = smov %s1316_s16 }
  0x96   : > { %p11_p5 = scmp.ge.s32.totalorder %s14_s17, 4   ;;  %s1892_s16 = smov %s1894_s18 }
  0x98   :  { %13 = sbr.rel (!%p11_p5) target bundleno = 2 (0x2), region = 75 }

// kernel: forward.21
= control target key start
LH: loop header
LB: loop body
LE: loop exit
PB: predicated region body
PF: predicated region fallthrough
CT: control target
= control target key end

     0   :  { %s3229_s12 = smov 0   ;;  %s3231_s13 = smov 0   ;;  %s3938_s0 = inlined_call_operand.vmem [shape: bf16[256,3200], index: 0, kind: input, shape index: {}]   ;;  %s3939_s1 = inlined_call_operand.vmem [shape: bf16[3200,128], index: 1, kind: input, shape index: {}]   ;;  %s3940_s2 = inlined_call_operand.vmem [shape: f32[1,128], index: 2, kind: input, shape index: {}]   ;;  %s3941_s3 = inlined_call_operand.vmem [shape: bf16[256,128], index: 3, kind: output, shape index: {}]  }
   0x1   :  { %s3233_s14 = smov 0   ;;  %s3235_s15 = smov 0  }
   0x2   :  { %s3237_s16 = smov 0  }
   0x3 LB: > { %s25_s17 = sadd.s32 1, %s3202_s15  ;;  %p48_p1 = scmp.ne.s32.totalorder %s3194_s13, %s3190_s12  ;;  %s3206_s16 = sphi %s3237_s16, %s13_s16   ;;  %s3202_s15 = sphi %s3235_s15, %s3991_s15   ;;  %s3198_s14 = sphi %s3233_s14, %s3990_s14   ;;  %s3194_s13 = sphi %s3231_s13, %s3989_s13   ;;  %s3190_s12 = sphi %s3229_s12, %s3988_s12  }
   0x4   : > { %p26_p0 = scmp.ge.s32.totalorder %s25_s17, 5  ;;  %p49_p2 = scmp.eq.s32.totalorder %s3206_s16, 0 }
   0x5   : > { %s41_s19 = sadd.s32 1, %s3194_s13  ;;  %p2306_p5 = scmp.ge.s32.totalorder %s3206_s16, 5 }
   0x6   : > { %s3993_s17 = smov (%p26_p0, %s25_s17), 0  ;;  %p50_p3 = por %p49_p2, %p48_p1 }
   0x7   : > { %s37_s18 = ssub.s32 %s3202_s15, %s3993_s17  ;;  %162 = sbr.rel (%p2306_p5) target bundleno = 70 (0x46), region = 20 }
   0x8   : > { %p39_p4 = scmp.eq.s32.totalorder %s37_s18, 0 }
   0xa   : > { %s3264_s20 = scalar_select %p39_p4, %s3194_s13, %s41_s19  }
   0xc   : > { %165 = sbr.rel (!%p50_p3) target bundleno = 70 (0x46), region = 24  ;;  %s167_s21 = sand.u32 (%p50_p3), 1, %s3194_s13  }
   0xd   : > { %s2533_s22 = smul.u32 (%p50_p3), 20, %s3202_s15 }
   0xe   : > { %s2973_s23 = smul.u32 (%p50_p3), 640, %s167_s21 }
   0xf   : > { %s3272_s26 = scalar_lea.vmem (%p50_p3), %s3938_s0, %s2533_s22 }
  0x10   : > { %v190_v0 = vld [vmem:[%s3272_s26] sm:$0xff] (%p50_p3)  ;;  %v192_v1 = vld [vmem:[%s3272_s26 + $0x8] sm:$0xff] (%p50_p3)  ;;  %s3277_s27 = scalar_lea.vmem (%p50_p3), [#allocation3], %s2973_s23  ;;  %v200_v5 = vld [vmem:[%s3272_s26 + $0xd0] sm:$0xff] (%p50_p3) }
  0x11   : > { %v194_v2 = vld [vmem:[%s3272_s26 + $0x64] sm:$0xff]  ;;  %191 = vst [vmem:[%s3277_s27] sm:$0xff] %v190_v0  ;;  %193 = vst [vmem:[%s3277_s27 + $0x8] sm:$0xff] %v192_v1  ;;  %v196_v3 = vld [vmem:[%s3272_s26 + $0x6c] sm:$0xff] }
  0x12   : > { %195 = vst [vmem:[%s3277_s27 + $0x14] sm:$0xff] %v194_v2  ;;  %v198_v4 = vld [vmem:[%s3272_s26 + $0xc8] sm:$0xff]  ;;  %197 = vst [vmem:[%s3277_s27 + $0x1c] sm:$0xff] %v196_v3  ;;  %v204_v7 = vld [vmem:[%s3272_s26 + $0x134] sm:$0xff] }
  0x13   : > { %199 = vst [vmem:[%s3277_s27 + $0x28] sm:$0xff] %v198_v4  ;;  %201 = vst [vmem:[%s3277_s27 + $0x30] sm:$0xff] %v200_v5  ;;  %v202_v6 = vld [vmem:[%s3272_s26 + $0x12c] sm:$0xff]  ;;  %v208_v9 = vld [vmem:[%s3272_s26 + $0x198] sm:$0xff] }
  0x14   : > { %v206_v8 = vld [vmem:[%s3272_s26 + $0x190] sm:$0xff]  ;;  %203 = vst [vmem:[%s3277_s27 + $0x3c] sm:$0xff] %v202_v6  ;;  %205 = vst [vmem:[%s3277_s27 + $0x44] sm:$0xff] %v204_v7  ;;  %v212_v11 = vld [vmem:[%s3272_s26 + $0x1fc] sm:$0xff] }
  0x15   : > { %207 = vst [vmem:[%s3277_s27 + $0x50] sm:$0xff] %v206_v8  ;;  %v210_v10 = vld [vmem:[%s3272_s26 + $0x1f4] sm:$0xff]  ;;  %209 = vst [vmem:[%s3277_s27 + $0x58] sm:$0xff] %v208_v9  ;;  %v216_v13 = vld [vmem:[%s3272_s26 + $0x260] sm:$0xff] }
  0x16   : > { %211 = vst [vmem:[%s3277_s27 + $0x64] sm:$0xff] %v210_v10  ;;  %213 = vst [vmem:[%s3277_s27 + $0x6c] sm:$0xff] %v212_v11  ;;  %v214_v12 = vld [vmem:[%s3272_s26 + $0x258] sm:$0xff]  ;;  %v220_v15 = vld [vmem:[%s3272_s26 + $0x2c4] sm:$0xff] }
  0x17   : > { %v218_v14 = vld [vmem:[%s3272_s26 + $0x2bc] sm:$0xff]  ;;  %215 = vst [vmem:[%s3277_s27 + $0x78] sm:$0xff] %v214_v12  ;;  %217 = vst [vmem:[%s3277_s27 + $0x80] sm:$0xff] %v216_v13  ;;  %v224_v17 = vld [vmem:[%s3272_s26 + $0x328] sm:$0xff] }
  0x18   : > { %219 = vst [vmem:[%s3277_s27 + $0x8c] sm:$0xff] %v218_v14  ;;  %v222_v16 = vld [vmem:[%s3272_s26 + $0x320] sm:$0xff]  ;;  %221 = vst [vmem:[%s3277_s27 + $0x94] sm:$0xff] %v220_v15  ;;  %v228_v19 = vld [vmem:[%s3272_s26 + $0x38c] sm:$0xff] }
  0x19   : > { %223 = vst [vmem:[%s3277_s27 + $0xa0] sm:$0xff] %v222_v16  ;;  %225 = vst [vmem:[%s3277_s27 + $0xa8] sm:$0xff] %v224_v17  ;;  %v226_v18 = vld [vmem:[%s3272_s26 + $0x384] sm:$0xff]  ;;  %v232_v21 = vld [vmem:[%s3272_s26 + $0x3f0] sm:$0xff] }
  0x1a   : > { %v230_v20 = vld [vmem:[%s3272_s26 + $0x3e8] sm:$0xff]  ;;  %227 = vst [vmem:[%s3277_s27 + $0xb4] sm:$0xff] %v226_v18  ;;  %229 = vst [vmem:[%s3277_s27 + $0xbc] sm:$0xff] %v228_v19  ;;  %v236_v23 = vld [vmem:[%s3272_s26 + $0x454] sm:$0xff] }
  0x1b   : > { %231 = vst [vmem:[%s3277_s27 + $0xc8] sm:$0xff] %v230_v20  ;;  %v234_v22 = vld [vmem:[%s3272_s26 + $0x44c] sm:$0xff]  ;;  %233 = vst [vmem:[%s3277_s27 + $0xd0] sm:$0xff] %v232_v21  ;;  %v240_v25 = vld [vmem:[%s3272_s26 + $0x4b8] sm:$0xff] }
  0x1c   : > { %235 = vst [vmem:[%s3277_s27 + $0xdc] sm:$0xff] %v234_v22  ;;  %237 = vst [vmem:[%s3277_s27 + $0xe4] sm:$0xff] %v236_v23  ;;  %v238_v24 = vld [vmem:[%s3272_s26 + $0x4b0] sm:$0xff]  ;;  %v244_v27 = vld [vmem:[%s3272_s26 + $0x51c] sm:$0xff] }
  0x1d   : > { %v242_v26 = vld [vmem:[%s3272_s26 + $0x514] sm:$0xff]  ;;  %239 = vst [vmem:[%s3277_s27 + $0xf0] sm:$0xff] %v238_v24  ;;  %241 = vst [vmem:[%s3277_s27 + $0xf8] sm:$0xff] %v240_v25  ;;  %v248_v29 = vld [vmem:[%s3272_s26 + $0x580] sm:$0xff] }
  0x1e   : > { %243 = vst [vmem:[%s3277_s27 + $0x104] sm:$0xff] %v242_v26  ;;  %v246_v28 = vld [vmem:[%s3272_s26 + $0x578] sm:$0xff]  ;;  %245 = vst [vmem:[%s3277_s27 + $0x10c] sm:$0xff] %v244_v27  ;;  %v252_v31 = vld [vmem:[%s3272_s26 + $0x5e4] sm:$0xff] }
  0x1f   : > { %247 = vst [vmem:[%s3277_s27 + $0x118] sm:$0xff] %v246_v28  ;;  %249 = vst [vmem:[%s3277_s27 + $0x120] sm:$0xff] %v248_v29  ;;  %v250_v30 = vld [vmem:[%s3272_s26 + $0x5dc] sm:$0xff]  ;;  %v256_v33 = vld [vmem:[%s3272_s26 + $0x648] sm:$0xff] }
  0x20   : > { %v254_v32 = vld [vmem:[%s3272_s26 + $0x640] sm:$0xff]  ;;  %251 = vst [vmem:[%s3277_s27 + $0x12c] sm:$0xff] %v250_v30  ;;  %253 = vst [vmem:[%s3277_s27 + $0x134] sm:$0xff] %v252_v31  ;;  %v260_v35 = vld [vmem:[%s3272_s26 + $0x6ac] sm:$0xff] }
  0x21   : > { %255 = vst [vmem:[%s3277_s27 + $0x140] sm:$0xff] %v254_v32  ;;  %v258_v34 = vld [vmem:[%s3272_s26 + $0x6a4] sm:$0xff]  ;;  %257 = vst [vmem:[%s3277_s27 + $0x148] sm:$0xff] %v256_v33  ;;  %v264_v37 = vld [vmem:[%s3272_s26 + $0x710] sm:$0xff] }
  0x22   : > { %259 = vst [vmem:[%s3277_s27 + $0x154] sm:$0xff] %v258_v34  ;;  %261 = vst [vmem:[%s3277_s27 + $0x15c] sm:$0xff] %v260_v35  ;;  %v262_v36 = vld [vmem:[%s3272_s26 + $0x708] sm:$0xff]  ;;  %v268_v39 = vld [vmem:[%s3272_s26 + $0x774] sm:$0xff] }
  0x23   : > { %v266_v38 = vld [vmem:[%s3272_s26 + $0x76c] sm:$0xff]  ;;  %263 = vst [vmem:[%s3277_s27 + $0x168] sm:$0xff] %v262_v36  ;;  %265 = vst [vmem:[%s3277_s27 + $0x170] sm:$0xff] %v264_v37  ;;  %v272_v41 = vld [vmem:[%s3272_s26 + $0x7d8] sm:$0xff] }
  0x24   : > { %267 = vst [vmem:[%s3277_s27 + $0x17c] sm:$0xff] %v266_v38  ;;  %v270_v40 = vld [vmem:[%s3272_s26 + $0x7d0] sm:$0xff]  ;;  %269 = vst [vmem:[%s3277_s27 + $0x184] sm:$0xff] %v268_v39  ;;  %v276_v43 = vld [vmem:[%s3272_s26 + $0x83c] sm:$0xff] }
  0x25   : > { %271 = vst [vmem:[%s3277_s27 + $0x190] sm:$0xff] %v270_v40  ;;  %273 = vst [vmem:[%s3277_s27 + $0x198] sm:$0xff] %v272_v41  ;;  %v274_v42 = vld [vmem:[%s3272_s26 + $0x834] sm:$0xff]  ;;  %v280_v45 = vld [vmem:[%s3272_s26 + $0x8a0] sm:$0xff] }
  0x26   : > { %v278_v44 = vld [vmem:[%s3272_s26 + $0x898] sm:$0xff]  ;;  %275 = vst [vmem:[%s3277_s27 + $0x1a4] sm:$0xff] %v274_v42  ;;  %277 = vst [vmem:[%s3277_s27 + $0x1ac] sm:$0xff] %v276_v43  ;;  %v284_v47 = vld [vmem:[%s3272_s26 + $0x904] sm:$0xff] }
  0x27   : > { %279 = vst [vmem:[%s3277_s27 + $0x1b8] sm:$0xff] %v278_v44  ;;  %v282_v46 = vld [vmem:[%s3272_s26 + $0x8fc] sm:$0xff]  ;;  %281 = vst [vmem:[%s3277_s27 + $0x1c0] sm:$0xff] %v280_v45  ;;  %v288_v49 = vld [vmem:[%s3272_s26 + $0x968] sm:$0xff] }
  0x28   : > { %283 = vst [vmem:[%s3277_s27 + $0x1cc] sm:$0xff] %v282_v46  ;;  %285 = vst [vmem:[%s3277_s27 + $0x1d4] sm:$0xff] %v284_v47  ;;  %v286_v48 = vld [vmem:[%s3272_s26 + $0x960] sm:$0xff]  ;;  %v292_v51 = vld [vmem:[%s3272_s26 + $0x9cc] sm:$0xff] }
  0x29   : > { %v290_v50 = vld [vmem:[%s3272_s26 + $0x9c4] sm:$0xff]  ;;  %287 = vst [vmem:[%s3277_s27 + $0x1e0] sm:$0xff] %v286_v48  ;;  %289 = vst [vmem:[%s3277_s27 + $0x1e8] sm:$0xff] %v288_v49  ;;  %v296_v53 = vld [vmem:[%s3272_s26 + $0xa30] sm:$0xff] }
  0x2a   : > { %291 = vst [vmem:[%s3277_s27 + $0x1f4] sm:$0xff] %v290_v50  ;;  %v294_v52 = vld [vmem:[%s3272_s26 + $0xa28] sm:$0xff]  ;;  %293 = vst [vmem:[%s3277_s27 + $0x1fc] sm:$0xff] %v292_v51  ;;  %v300_v55 = vld [vmem:[%s3272_s26 + $0xa94] sm:$0xff] }
  0x2b   : > { %295 = vst [vmem:[%s3277_s27 + $0x208] sm:$0xff] %v294_v52  ;;  %297 = vst [vmem:[%s3277_s27 + $0x210] sm:$0xff] %v296_v53  ;;  %v298_v54 = vld [vmem:[%s3272_s26 + $0xa8c] sm:$0xff]  ;;  %v304_v57 = vld [vmem:[%s3272_s26 + $0xaf8] sm:$0xff] }
  0x2c   : > { %v302_v56 = vld [vmem:[%s3272_s26 + $0xaf0] sm:$0xff]  ;;  %299 = vst [vmem:[%s3277_s27 + $0x21c] sm:$0xff] %v298_v54  ;;  %301 = vst [vmem:[%s3277_s27 + $0x224] sm:$0xff] %v300_v55  ;;  %v308_v59 = vld [vmem:[%s3272_s26 + $0xb5c] sm:$0xff] }
  0x2d   : > { %303 = vst [vmem:[%s3277_s27 + $0x230] sm:$0xff] %v302_v56  ;;  %v306_v58 = vld [vmem:[%s3272_s26 + $0xb54] sm:$0xff]  ;;  %305 = vst [vmem:[%s3277_s27 + $0x238] sm:$0xff] %v304_v57  ;;  %v312_v61 = vld [vmem:[%s3272_s26 + $0xbc0] sm:$0xff] }
  0x2e   : > { %307 = vst [vmem:[%s3277_s27 + $0x244] sm:$0xff] %v306_v58  ;;  %309 = vst [vmem:[%s3277_s27 + $0x24c] sm:$0xff] %v308_v59  ;;  %v310_v60 = vld [vmem:[%s3272_s26 + $0xbb8] sm:$0xff]  ;;  %v316_v63 = vld [vmem:[%s3272_s26 + $0xc24] sm:$0xff] }
  0x2f   : > { %v314_v62 = vld [vmem:[%s3272_s26 + $0xc1c] sm:$0xff]  ;;  %311 = vst [vmem:[%s3277_s27 + $0x258] sm:$0xff] %v310_v60  ;;  %313 = vst [vmem:[%s3277_s27 + $0x260] sm:$0xff] %v312_v61  ;;  %v2308_v0 = vld [vmem:[%s3272_s26 + $0x10] sm:$0xf] }
  0x30   : > { %315 = vst [vmem:[%s3277_s27 + $0x26c] sm:$0xff] %v314_v62  ;;  %v2310_v1 = vld [vmem:[%s3272_s26 + $0x74] sm:$0xf]  ;;  %317 = vst [vmem:[%s3277_s27 + $0x274] sm:$0xff] %v316_v63  ;;  %v2312_v2 = vld [vmem:[%s3272_s26 + $0xd8] sm:$0xf] }
  0x31   : > { %2309 = vst [vmem:[%s3277_s27 + $0x10] sm:$0xf] %v2308_v0  ;;  %2311 = vst [vmem:[%s3277_s27 + $0x24] sm:$0xf] %v2310_v1  ;;  %v2314_v3 = vld [vmem:[%s3272_s26 + $0x13c] sm:$0xf] }
  0x32   : > { %v2316_v4 = vld [vmem:[%s3272_s26 + $0x1a0] sm:$0xf]  ;;  %2313 = vst [vmem:[%s3277_s27 + $0x38] sm:$0xf] %v2312_v2  ;;  %2315 = vst [vmem:[%s3277_s27 + $0x4c] sm:$0xf] %v2314_v3 }
  0x33   : > { %2317 = vst [vmem:[%s3277_s27 + $0x60] sm:$0xf] %v2316_v4  ;;  %v2318_v5 = vld [vmem:[%s3272_s26 + $0x204] sm:$0xf]  ;;  %v2320_v6 = vld [vmem:[%s3272_s26 + $0x268] sm:$0xf] }
  0x34   : > { %v2322_v7 = vld [vmem:[%s3272_s26 + $0x2cc] sm:$0xf]  ;;  %2319 = vst [vmem:[%s3277_s27 + $0x74] sm:$0xf] %v2318_v5  ;;  %2321 = vst [vmem:[%s3277_s27 + $0x88] sm:$0xf] %v2320_v6 }
  0x35   : > { %2323 = vst [vmem:[%s3277_s27 + $0x9c] sm:$0xf] %v2322_v7  ;;  %v2324_v8 = vld [vmem:[%s3272_s26 + $0x330] sm:$0xf]  ;;  %v2326_v9 = vld [vmem:[%s3272_s26 + $0x394] sm:$0xf] }
  0x36   : > { %v2328_v10 = vld [vmem:[%s3272_s26 + $0x3f8] sm:$0xf]  ;;  %2325 = vst [vmem:[%s3277_s27 + $0xb0] sm:$0xf] %v2324_v8  ;;  %2327 = vst [vmem:[%s3277_s27 + $0xc4] sm:$0xf] %v2326_v9 }
  0x37   : > { %2329 = vst [vmem:[%s3277_s27 + $0xd8] sm:$0xf] %v2328_v10  ;;  %v2330_v11 = vld [vmem:[%s3272_s26 + $0x45c] sm:$0xf]  ;;  %v2332_v12 = vld [vmem:[%s3272_s26 + $0x4c0] sm:$0xf] }
  0x38   : > { %v2334_v13 = vld [vmem:[%s3272_s26 + $0x524] sm:$0xf]  ;;  %2331 = vst [vmem:[%s3277_s27 + $0xec] sm:$0xf] %v2330_v11  ;;  %2333 = vst [vmem:[%s3277_s27 + $0x100] sm:$0xf] %v2332_v12 }
  0x39   : > { %2335 = vst [vmem:[%s3277_s27 + $0x114] sm:$0xf] %v2334_v13  ;;  %v2336_v14 = vld [vmem:[%s3272_s26 + $0x588] sm:$0xf]  ;;  %v2338_v15 = vld [vmem:[%s3272_s26 + $0x5ec] sm:$0xf] }
  0x3a   : > { %v2340_v16 = vld [vmem:[%s3272_s26 + $0x650] sm:$0xf]  ;;  %2337 = vst [vmem:[%s3277_s27 + $0x128] sm:$0xf] %v2336_v14  ;;  %2339 = vst [vmem:[%s3277_s27 + $0x13c] sm:$0xf] %v2338_v15 }
  0x3b   : > { %2341 = vst [vmem:[%s3277_s27 + $0x150] sm:$0xf] %v2340_v16  ;;  %v2342_v17 = vld [vmem:[%s3272_s26 + $0x6b4] sm:$0xf]  ;;  %v2344_v18 = vld [vmem:[%s3272_s26 + $0x718] sm:$0xf] }
  0x3c   : > { %v2346_v19 = vld [vmem:[%s3272_s26 + $0x77c] sm:$0xf]  ;;  %2343 = vst [vmem:[%s3277_s27 + $0x164] sm:$0xf] %v2342_v17  ;;  %2345 = vst [vmem:[%s3277_s27 + $0x178] sm:$0xf] %v2344_v18 }
  0x3d   : > { %2347 = vst [vmem:[%s3277_s27 + $0x18c] sm:$0xf] %v2346_v19  ;;  %v2348_v20 = vld [vmem:[%s3272_s26 + $0x7e0] sm:$0xf]  ;;  %v2350_v21 = vld [vmem:[%s3272_s26 + $0x844] sm:$0xf] }
  0x3e   : > { %v2352_v22 = vld [vmem:[%s3272_s26 + $0x8a8] sm:$0xf]  ;;  %2349 = vst [vmem:[%s3277_s27 + $0x1a0] sm:$0xf] %v2348_v20  ;;  %2351 = vst [vmem:[%s3277_s27 + $0x1b4] sm:$0xf] %v2350_v21 }
  0x3f   : > { %2353 = vst [vmem:[%s3277_s27 + $0x1c8] sm:$0xf] %v2352_v22  ;;  %v2354_v23 = vld [vmem:[%s3272_s26 + $0x90c] sm:$0xf]  ;;  %v2356_v24 = vld [vmem:[%s3272_s26 + $0x970] sm:$0xf] }
  0x40   : > { %v2358_v25 = vld [vmem:[%s3272_s26 + $0x9d4] sm:$0xf]  ;;  %2355 = vst [vmem:[%s3277_s27 + $0x1dc] sm:$0xf] %v2354_v23  ;;  %2357 = vst [vmem:[%s3277_s27 + $0x1f0] sm:$0xf] %v2356_v24 }
  0x41   : > { %2359 = vst [vmem:[%s3277_s27 + $0x204] sm:$0xf] %v2358_v25  ;;  %v2360_v26 = vld [vmem:[%s3272_s26 + $0xa38] sm:$0xf]  ;;  %v2362_v27 = vld [vmem:[%s3272_s26 + $0xa9c] sm:$0xf] }
  0x42   : > { %v2364_v28 = vld [vmem:[%s3272_s26 + $0xb00] sm:$0xf]  ;;  %2361 = vst [vmem:[%s3277_s27 + $0x218] sm:$0xf] %v2360_v26  ;;  %2363 = vst [vmem:[%s3277_s27 + $0x22c] sm:$0xf] %v2362_v27 }
  0x43   : > { %2365 = vst [vmem:[%s3277_s27 + $0x240] sm:$0xf] %v2364_v28  ;;  %v2366_v29 = vld [vmem:[%s3272_s26 + $0xb64] sm:$0xf]  ;;  %v2368_v30 = vld [vmem:[%s3272_s26 + $0xbc8] sm:$0xf] }
  0x44   : > { %v2370_v31 = vld [vmem:[%s3272_s26 + $0xc2c] sm:$0xf]  ;;  %2367 = vst [vmem:[%s3277_s27 + $0x254] sm:$0xf] %v2366_v29  ;;  %2369 = vst [vmem:[%s3277_s27 + $0x268] sm:$0xf] %v2368_v30 }
  0x45   : > { %2371 = vst [vmem:[%s3277_s27 + $0x27c] sm:$0xf] %v2370_v31 }
  0x46 PF: > { %p2372_p6 = scmp.ge.s32.totalorder %s3206_s16, 1  ;;  %p406_p7 = scmp.lt.s32.totalorder %s3206_s16, 6 }
  0x48   : > { %p407_p8 = pnand %p2372_p6, %p406_p7 }
  0x4a   : > { %410 = sbr.rel (%p407_p8) target bundleno = 523 (0x20b), region = 54 }
  0x4f   : > { %s413_s28 = sand.u32 1, %s3190_s12   ;;  %s452_s29 = smul.u32 80, %s3198_s14 }
  0x50   : > { %s2974_s30 = smul.u32 640, %s413_s28  ;;  %p2374_p10 = scmp.ne.s32.totalorder %s3198_s14, 0 }
  0x51   : > { %p453_p9 = scmp.lt.s32.totalorder %s452_s29, 399 }
  0x52   : > { %s3477_s8 = scalar_lea.vmem [#allocation3], %s2974_s30  ;;  %477 = sbr.rel (%p2374_p10) target bundleno = 104 (0x68), region = 62 }
  0x53   : > { %s3995_s29 = smov (!%p453_p9, %s452_s29), 399 }
  0x54   : > { %s2373_s4 = sshll.u32 %s3995_s29, 2 }
  0x55   : > { %s3475_s7 = scalar_lea.vmem %s3939_s1, %s2373_s4 }
  0x57   : > { %v3208_v32 = vmov 0.0  }
  0x58   : > { %478 = vst [vmem:[#allocation2 + $0xb0] sm:$0xff] %v3208_v32  ;;  %479 = vst [vmem:[#allocation2] sm:$0xff] %v3208_v32 }
  0x59   : > { %480 = vst [vmem:[#allocation2 + $0xd8] sm:$0xff] %v3208_v32  ;;  %481 = vst [vmem:[#allocation2 + $0x18] sm:$0xff] %v3208_v32 }
  0x5a   : > { %482 = vst [vmem:[#allocation2 + $0x50] sm:$0xff] %v3208_v32  ;;  %483 = vst [vmem:[#allocation2 + $0x68] sm:$0xff] %v3208_v32 }
  0x5b   : > { %484 = vst [vmem:[#allocation2 + $0x30] sm:$0xff] %v3208_v32  ;;  %485 = vst [vmem:[#allocation2 + $0x48] sm:$0xff] %v3208_v32 }
  0x5c   : > { %486 = vst [vmem:[#allocation2 + $0x80] sm:$0xff] %v3208_v32  ;;  %487 = vst [vmem:[#allocation2 + $0x88] sm:$0xff] %v3208_v32 }
  0x5d   : > { %488 = vst [vmem:[#allocation2 + $0xe8] sm:$0xff] %v3208_v32  ;;  %489 = vst [vmem:[#allocation2 + $0xb8] sm:$0xff] %v3208_v32 }
  0x5e   : > { %490 = vst [vmem:[#allocation2 + $0x60] sm:$0xff] %v3208_v32  ;;  %491 = vst [vmem:[#allocation2 + $0xf0] sm:$0xff] %v3208_v32 }
  0x5f   : > { %492 = vst [vmem:[#allocation2 + $0x8] sm:$0xff] %v3208_v32  ;;  %493 = vst [vmem:[#allocation2 + $0x78] sm:$0xff] %v3208_v32 }
  0x60   : > { %494 = vst [vmem:[#allocation2 + $0x38] sm:$0xff] %v3208_v32  ;;  %495 = vst [vmem:[#allocation2 + $0x58] sm:$0xff] %v3208_v32 }
  0x61   : > { %496 = vst [vmem:[#allocation2 + $0x40] sm:$0xff] %v3208_v32  ;;  %497 = vst [vmem:[#allocation2 + $0xc8] sm:$0xff] %v3208_v32 }
  0x62   : > { %498 = vst [vmem:[#allocation2 + $0xe0] sm:$0xff] %v3208_v32  ;;  %499 = vst [vmem:[#allocation2 + $0x90] sm:$0xff] %v3208_v32 }
  0x63   : > { %500 = vst [vmem:[#allocation2 + $0x70] sm:$0xff] %v3208_v32  ;;  %501 = vst [vmem:[#allocation2 + $0xc0] sm:$0xff] %v3208_v32 }
  0x64   : > { %502 = vst [vmem:[#allocation2 + $0xa8] sm:$0xff] %v3208_v32  ;;  %503 = vst [vmem:[#allocation2 + $0xd0] sm:$0xff] %v3208_v32 }
  0x65   : > { %504 = vst [vmem:[#allocation2 + $0x10] sm:$0xff] %v3208_v32  ;;  %505 = vst [vmem:[#allocation2 + $0x28] sm:$0xff] %v3208_v32 }
  0x66   : > { %506 = vst [vmem:[#allocation2 + $0xa0] sm:$0xff] %v3208_v32  ;;  %507 = vst [vmem:[#allocation2 + $0xf8] sm:$0xff] %v3208_v32 }
  0x67   : > { %508 = vst [vmem:[#allocation2 + $0x20] sm:$0xff] %v3208_v32  ;;  %509 = vst [vmem:[#allocation2 + $0x98] sm:$0xff] %v3208_v32 }
  0x68 PF: > { %v3016_v33 = vld [vmem:[%s3475_s7 + $0x78] sm:$0xff]   ;;  %v3018_v35 = vld [vmem:[%s3475_s7 + $0x70] sm:$0xff]   ;;  %v3020_v37 = vld [vmem:[%s3475_s7 + $0x68] sm:$0xff]   ;;  %p2495_p11 = scmp.ne.s32.totalorder %s3198_s14, 4 }
  0x69   : > { %v3017_v34 = vld [vmem:[%s3475_s7 + $0x38] sm:$0xff]   ;;  %2661 = vmatprep.subr.bf16.mxu0 %v3016_v33  ;;  %2957 = vmatprep.subr.bf16.mxu1 %v3016_v33  ;;  %v3019_v36 = vld [vmem:[%s3475_s7 + $0x30] sm:$0xff]   ;;  %v3021_v38 = vld [vmem:[%s3475_s7 + $0x28] sm:$0xff]  }
  0x6a   : > { %2662 = vmatpush3.bf16.msra.mxu0 %v3017_v34  ;;  %2965 = vmatpush3.bf16.msra.mxu1 %v3017_v34  ;;  %v3022_v39 = vld [vmem:[%s3475_s7 + $0x60] sm:$0xff]   ;;  %v3024_v41 = vld [vmem:[%s3475_s7 + $0x58] sm:$0xff]   ;;  %v3026_v43 = vld [vmem:[%s3475_s7 + $0x50] sm:$0xff]  }
  0x6b   : > { %2663 = vmatprep.subr.bf16.mxu0 %v3018_v35  ;;  %2958 = vmatprep.subr.bf16.mxu1 %v3018_v35  ;;  %v3023_v40 = vld [vmem:[%s3475_s7 + $0x20] sm:$0xff]   ;;  %v3025_v42 = vld [vmem:[%s3475_s7 + $0x18] sm:$0xff]   ;;  %v3027_v46 = vld [vmem:[%s3475_s7 + $0x10] sm:$0xff]  }
  0x6c   : > { %v3034_v44 = vld [vmem:[%s3477_s8 + $0x4] ss:$20 sps:$4 sm:$0xff]   ;;  %v3028_v47 = vld [vmem:[%s3475_s7 + $0x48] sm:$0xff]   ;;  %v3032_v53 = vld [vmem:[%s3477_s8] ss:$20 sps:$4 sm:$0xff]  }
  0x6d   : > { %v3037_v45 = vld [vmem:[%s3477_s8 + $0x1e4] ss:$20 sps:$4 sm:$0xff]   ;;  %1406 = vmatprep.mubr.bf16.mxu0 %v3034_v44  ;;  %v3029_v48 = vld [vmem:[%s3475_s7 + $0x8] sm:$0xff]   ;;  %v3035_v54 = vld [vmem:[%s3477_s8 + $0x1e0] ss:$20 sps:$4 sm:$0xff]  }
  0x6e   : > { %2664 = vmatpush3.bf16.msra.mxu0 %v3019_v36  ;;  %2966 = vmatpush3.bf16.msra.mxu1 %v3019_v36  ;;  %v3030_v49 = vld [vmem:[%s3475_s7 + $0x40] sm:$0xff]   ;;  %v3038_v51 = vld [vmem:[%s3475_s7 + $0xf8] sm:$0xff]   ;;  %v3040_v56 = vld [vmem:[%s3475_s7 + $0xf0] sm:$0xff]  }
  0x6f   : > { %2665 = vmatprep.subr.bf16.mxu0 %v3020_v37  ;;  %2959 = vmatprep.subr.bf16.mxu1 %v3020_v37  ;;  %v3031_v50 = vld [vmem:[%s3475_s7] sm:$0xff]   ;;  %v3041_v52 = vld [vmem:[%s3475_s7 + $0x138] sm:$0xff]   ;;  %v3060_v59 = vld [vmem:[%s3475_s7 + $0x130] sm:$0xff]  }
  0x70   : > { %1502 = vmatprep.mubr.bf16.mxu1 %v3037_v45  ;;  %v3039_v55 = vld [vmem:[%s3475_s7 + $0xb8] sm:$0xff]   ;;  %v3043_v57 = vld [vmem:[%s3477_s8 + $0x2c] ss:$20 sps:$4 sm:$0xff]   ;;  %v3042_v60 = vld [vmem:[%s3475_s7 + $0xb0] sm:$0xff]  }
  0x71   : > { %v3045_v58 = vld [vmem:[%s3477_s8 + $0x20c] ss:$20 sps:$4 sm:$0xff]   ;;  %v3047_v61 = vld [vmem:[%s3477_s8 + $0x28] ss:$20 sps:$4 sm:$0xff]   ;;  %v3057_v6 = vld [vmem:[%s3477_s8 + $0x50] ss:$20 sps:$4 sm:$0xff]  }
  0x72   : > { %2666 = vmatpush3.bf16.msra.mxu0 %v3021_v38  ;;  %2967 = vmatpush3.bf16.msra.mxu1 %v3021_v38  ;;  %v3049_v62 = vld [vmem:[%s3475_s7 + $0xe8] sm:$0xff]   ;;  %v3051_v2 = vld [vmem:[%s3475_s7 + $0xe0] sm:$0xff]   ;;  %v3059_v5 = vld [vmem:[%s3475_s7 + $0xd8] sm:$0xff]  }
  0x73   : > { %2667 = vmatprep.subr.bf16.mxu0 %v3022_v39  ;;  %2960 = vmatprep.subr.bf16.mxu1 %v3022_v39  ;;  %v3048_v63 = vld [vmem:[%s3477_s8 + $0x208] ss:$20 sps:$4 sm:$0xff]   ;;  %v3052_v4 = vld [vmem:[%s3475_s7 + $0xa0] sm:$0xff]   ;;  %v3062_v10 = vld [vmem:[%s3475_s7 + $0xd0] sm:$0xff]  }
  0x74   : > { %v3050_v0 = vld [vmem:[%s3475_s7 + $0xa8] sm:$0xff]   ;;  %v3058_v8 = vld [vmem:[%s3477_s8 + $0x230] ss:$20 sps:$4 sm:$0xff]   ;;  %v3061_v9 = vld [vmem:[%s3475_s7 + $0x98] sm:$0xff]  }
  0x75   : > { %v3053_v1 = vld [vmem:[%s3477_s8 + $0x54] ss:$20 sps:$4 sm:$0xff]   ;;  %v3064_v11 = vld [vmem:[%s3477_s8 + $0x7c] ss:$20 sps:$4 sm:$0xff]   ;;  %v3087_v14 = vld [vmem:[%s3475_s7 + $0x120] sm:$0xff]  }
  0x76   : > { %2668 = vmatpush3.bf16.msra.mxu0 %v3023_v40  ;;  %2968 = vmatpush3.bf16.msra.mxu1 %v3023_v40  ;;  %v3055_v3 = vld [vmem:[%s3477_s8 + $0x234] ss:$20 sps:$4 sm:$0xff]   ;;  %v3066_v12 = vld [vmem:[%s3477_s8 + $0x25c] ss:$20 sps:$4 sm:$0xff]   ;;  %v3068_v15 = vld [vmem:[%s3477_s8 + $0x78] ss:$20 sps:$4 sm:$0xff]  }
  0x77   : > { %2669 = vmatprep.subr.bf16.mxu0 %v3024_v41  ;;  %2961 = vmatprep.subr.bf16.mxu1 %v3024_v41  ;;  %v3073_v7 = vld [vmem:[%s3475_s7 + $0x128] sm:$0xff]   ;;  %v3063_v13 = vld [vmem:[%s3475_s7 + $0x90] sm:$0xff]   ;;  %v3072_v19 = vld [vmem:[%s3475_s7 + $0xc0] sm:$0xff]  }
  0x78   : > { %v3069_v16 = vld [vmem:[%s3477_s8 + $0x258] ss:$20 sps:$4 sm:$0xff]   ;;  %v3074_v23 = vld [vmem:[%s3475_s7 + $0x80] sm:$0xff]   ;;  %v3077_v24 = vld [vmem:[%s3477_s8 + $0x8] ss:$20 sps:$4 sm:$0xff]  }
  0x79   : > { %v3070_v17 = vld [vmem:[%s3475_s7 + $0xc8] sm:$0xff]   ;;  %v3075_v20 = vld [vmem:[%s3477_s8 + $0xa4] ss:$20 sps:$4 sm:$0xff]   ;;  %v3080_v25 = vld [vmem:[%s3477_s8 + $0xa0] ss:$20 sps:$4 sm:$0xff]  }
  0x7a   : > { %2670 = vmatpush3.bf16.msra.mxu0 %v3025_v42  ;;  %2969 = vmatpush3.bf16.msra.mxu1 %v3025_v42  ;;  %v3071_v18 = vld [vmem:[%s3475_s7 + $0x88] sm:$0xff]   ;;  %v3094_v21 = vld [vmem:[%s3475_s7 + $0x118] sm:$0xff]   ;;  %v3107_v26 = vld [vmem:[%s3475_s7 + $0x110] sm:$0xff]  }
  0x7b   : > { %2671 = vmatprep.subr.bf16.mxu0 %v3026_v43  ;;  %2962 = vmatprep.subr.bf16.mxu1 %v3026_v43  ;;  %v3079_v22 = vld [vmem:[%s3477_s8 + $0xc] ss:$20 sps:$4 sm:$0xff]   ;;  %v3083_v28 = vld [vmem:[%s3477_s8 + $0x34] ss:$20 sps:$4 sm:$0xff]   ;;  %v3086_v31 = vld [vmem:[%s3477_s8 + $0x30] ss:$20 sps:$4 sm:$0xff]  }
  0x7c   : > { %v3081_v27 = vld [vmem:[%s3477_s8 + $0xcc] ss:$20 sps:$4 sm:$0xff]   ;;  %v3085_v30 = vld [vmem:[%s3477_s8 + $0xc8] ss:$20 sps:$4 sm:$0xff]   ;;  %v3092_v35 = vld [vmem:[%s3477_s8 + $0xf0] ss:$20 sps:$4 sm:$0xff]  }
  0x7d   : > { %v3114_v29 = vld [vmem:[%s3475_s7 + $0x108] sm:$0xff]   ;;  %v3090_v33 = vld [vmem:[%s3477_s8 + $0x5c] ss:$20 sps:$4 sm:$0xff]   ;;  %v3127_v34 = vld [vmem:[%s3475_s7 + $0x100] sm:$0xff]  }
  0x7e   : > { %2672 = vmatpush3.bf16.msra.mxu0 %v3027_v46  ;;  %2970 = vmatpush3.bf16.msra.mxu1 %v3027_v46  ;;  %v3088_v32 = vld [vmem:[%s3477_s8 + $0xf4] ss:$20 sps:$4 sm:$0xff]   ;;  %v3093_v36 = vld [vmem:[%s3477_s8 + $0x58] ss:$20 sps:$4 sm:$0xff]   ;;  %v3095_v37 = vld [vmem:[%s3477_s8 + $0x11c] ss:$20 sps:$4 sm:$0xff]  }
  0x7f   : > { %2673 = vmatprep.subr.bf16.mxu0 %v3028_v47  ;;  %2963 = vmatprep.subr.bf16.mxu1 %v3028_v47  ;;  %v3097_v38 = vld [vmem:[%s3477_s8 + $0x84] ss:$20 sps:$4 sm:$0xff]   ;;  %v3100_v40 = vld [vmem:[%s3477_s8 + $0x80] ss:$20 sps:$4 sm:$0xff]   ;;  %v3106_v44 = vld [vmem:[%s3477_s8 + $0xa8] ss:$20 sps:$4 sm:$0xff]  }
  0x80   : > { %v3099_v39 = vld [vmem:[%s3477_s8 + $0x118] ss:$20 sps:$4 sm:$0xff]   ;;  %v3105_v43 = vld [vmem:[%s3477_s8 + $0x140] ss:$20 sps:$4 sm:$0xff]   ;;  %v3112_v47 = vld [vmem:[%s3477_s8 + $0x168] ss:$20 sps:$4 sm:$0xff]  }
  0x81   : > { %v3101_v41 = vld [vmem:[%s3477_s8 + $0x144] ss:$20 sps:$4 sm:$0xff]   ;;  %v3103_v42 = vld [vmem:[%s3477_s8 + $0xac] ss:$20 sps:$4 sm:$0xff]   ;;  %v3110_v46 = vld [vmem:[%s3477_s8 + $0xd4] ss:$20 sps:$4 sm:$0xff]  }
  0x82   : > { %2674 = vmatpush3.bf16.msra.mxu0 %v3029_v48  ;;  %2971 = vmatpush3.bf16.msra.mxu1 %v3029_v48  ;;  %v3108_v45 = vld [vmem:[%s3477_s8 + $0x16c] ss:$20 sps:$4 sm:$0xff]   ;;  %v3113_v48 = vld [vmem:[%s3477_s8 + $0xd0] ss:$20 sps:$4 sm:$0xff]  }
  0x83   : > { %2675 = vmatprep.subr.bf16.mxu0 %v3030_v49  ;;  %2964 = vmatprep.subr.bf16.mxu1 %v3030_v49  ;;  %v3115_v49 = vld [vmem:[%s3477_s8 + $0x194] ss:$20 sps:$4 sm:$0xff]  }
  0x86   : > { %2676 = vmatpush3.bf16.msra.mxu0 %v3031_v50  ;;  %2972 = vmatpush3.bf16.msra.mxu1 %v3031_v50  ;;  %v3117_v50 = vld [vmem:[%s3477_s8 + $0xfc] ss:$20 sps:$4 sm:$0xff]  }
  0x87   : > { %2773 = vmatprep.subr.bf16.mxu1 %v3038_v51  ;;  %2909 = vmatprep.subr.bf16.mxu0 %v3041_v52  ;;  %v3119_v51 = vld [vmem:[%s3477_s8 + $0x190] ss:$20 sps:$4 sm:$0xff]  }
  0x89   : > { %1407 = vmatmul.mubr.bf16.vlgmr.msra.gmra.mxu0 %v3032_v53  ;;  %1503 = vmatmul.mubr.bf16.vlgmr.msra.gmra.mxu1 %v3035_v54  ;;  %v3121_v53 = vld [vmem:[%s3477_s8 + $0x1bc] ss:$20 sps:$4 sm:$0xff]   ;;  %v3123_v54 = vld [vmem:[%s3477_s8 + $0x124] ss:$20 sps:$4 sm:$0xff]  }
  0x8a   : > { %2774 = vmatpush3.bf16.msra.mxu1 %v3039_v55  ;;  %2910 = vmatpush3.bf16.msra.mxu0 %v3041_v52  ;;  %v3120_v52 = vld [vmem:[%s3477_s8 + $0xf8] ss:$20 sps:$4 sm:$0xff]  }
  0x8b   : > { %2775 = vmatprep.subr.bf16.mxu1 %v3040_v56  ;;  %1414 = vmatprep.mubr.bf16.mxu0 %v3043_v57  ;;  %v3125_v55 = vld [vmem:[%s3477_s8 + $0x1b8] ss:$20 sps:$4 sm:$0xff]   ;;  %v3126_v56 = vld [vmem:[%s3477_s8 + $0x120] ss:$20 sps:$4 sm:$0xff]  }
  0x8c   : > { %1510 = vmatprep.mubr.bf16.mxu1 %v3045_v58  ;;  %2911 = vmatprep.subr.bf16.mxu0 %v3060_v59  ;;  %v3128_v57 = vld [vmem:[%s3477_s8 + $0x14c] ss:$20 sps:$4 sm:$0xff]   ;;  %v3130_v58 = vld [vmem:[%s3477_s8 + $0x10] ss:$20 sps:$4 sm:$0xff]  }
  0x8e   : > { %2776 = vmatpush3.bf16.msra.mxu1 %v3042_v60  ;;  %2912 = vmatpush3.bf16.msra.mxu0 %v3060_v59  ;;  %v3131_v59 = vld [vmem:[%s3477_s8 + $0x148] ss:$20 sps:$4 sm:$0xff]   ;;  %v3132_v60 = vld [vmem:[%s3477_s8 + $0x38] ss:$20 sps:$4 sm:$0xff]  }
  0x8f   : > { %2777 = vmatprep.subr.bf16.mxu1 %v3049_v62  ;;  %2913 = vmatprep.subr.bf16.mxu0 %v3073_v7  ;;  %v3135_v62 = vld [vmem:[%s3477_s8 + $0x60] ss:$20 sps:$4 sm:$0xff]  }
  0x91   : > { %1415 = vmatmul.mubr.bf16.gmra.mxu0 %v3047_v61  ;;  %1511 = vmatmul.mubr.bf16.gmra.mxu1 %v3048_v63  ;;  %v3133_v61 = vld [vmem:[%s3477_s8 + $0x174] ss:$20 sps:$4 sm:$0xff]   ;;  %v3136_v63 = vld [vmem:[%s3477_s8 + $0x170] ss:$20 sps:$4 sm:$0xff]  }
  0x92   : > { %2778 = vmatpush3.bf16.msra.mxu1 %v3050_v0  ;;  %1422 = vmatprep.mubr.bf16.mxu0 %v3053_v1  ;;  %v3137_v0 = vld [vmem:[%s3477_s8 + $0x88] ss:$20 sps:$4 sm:$0xff]  }
  0x93   : > { %2779 = vmatprep.subr.bf16.mxu1 %v3051_v2  ;;  %1518 = vmatprep.mubr.bf16.mxu1 %v3055_v3  ;;  %v3138_v1 = vld [vmem:[%s3477_s8 + $0x19c] ss:$20 sps:$4 sm:$0xff]   ;;  %v3141_v3 = vld [vmem:[%s3477_s8 + $0x198] ss:$20 sps:$4 sm:$0xff]  }
  0x94   : > { %2914 = vmatpush3.bf16.msra.mxu0 %v3073_v7  ;;  %v3140_v2 = vld [vmem:[%s3477_s8 + $0xb0] ss:$20 sps:$4 sm:$0xff]   ;;  %v3146_v7 = vld [vmem:[%s3477_s8 + $0x1c0] ss:$20 sps:$4 sm:$0xff]  }
  0x95   : > { %2915 = vmatprep.subr.bf16.mxu0 %v3087_v14 }
  0x96   : > { %2780 = vmatpush3.bf16.msra.mxu1 %v3052_v4  ;;  %v3142_v4 = vld [vmem:[%s3477_s8 + $0xd8] ss:$20 sps:$4 sm:$0xff]  }
  0x97   : > { %2781 = vmatprep.subr.bf16.mxu1 %v3059_v5  ;;  %v3143_v5 = vld [vmem:[%s3477_s8 + $0x1c4] ss:$20 sps:$4 sm:$0xff]  }
  0x98   : > { %2916 = vmatpush3.bf16.msra.mxu0 %v3087_v14  ;;  %v3155_v14 = vld [vmem:[%s3477_s8 + $0x1a0] ss:$20 sps:$4 sm:$0xff]  }
  0x99   : > { %1423 = vmatmul.mubr.bf16.gmra.mxu0 %v3057_v6  ;;  %1519 = vmatmul.mubr.bf16.gmra.mxu1 %v3058_v8  ;;  %v3145_v6 = vld [vmem:[%s3477_s8 + $0x100] ss:$20 sps:$4 sm:$0xff]   ;;  %v3147_v8 = vld [vmem:[%s3477_s8 + $0x128] ss:$20 sps:$4 sm:$0xff]  }
  0x9a   : > { %2782 = vmatpush3.bf16.msra.mxu1 %v3061_v9  ;;  %1430 = vmatprep.mubr.bf16.mxu0 %v3064_v11  ;;  %v3148_v9 = vld [vmem:[%s3477_s8 + $0x1ec] ss:$20 sps:$4 sm:$0xff]   ;;  %v3151_v11 = vld [vmem:[%s3477_s8 + $0x1e8] ss:$20 sps:$4 sm:$0xff]  }
  0x9b   : > { %2783 = vmatprep.subr.bf16.mxu1 %v3062_v10  ;;  %1526 = vmatprep.mubr.bf16.mxu1 %v3066_v12  ;;  %v3150_v10 = vld [vmem:[%s3477_s8 + $0x150] ss:$20 sps:$4 sm:$0xff]   ;;  %v3152_v12 = vld [vmem:[%s3477_s8 + $0x178] ss:$20 sps:$4 sm:$0xff]  }
  0x9c   : > { %2917 = vmatprep.subr.bf16.mxu0 %v3094_v21 }
  0x9d   : > { %2918 = vmatpush3.bf16.msra.mxu0 %v3094_v21  ;;  %v3163_v21 = vld [vmem:[%s3477_s8 + $0x264] ss:$20 sps:$4 sm:$0xff]  }
  0x9e   : > { %2784 = vmatpush3.bf16.msra.mxu1 %v3063_v13  ;;  %2919 = vmatprep.subr.bf16.mxu0 %v3107_v26  ;;  %v3153_v13 = vld [vmem:[%s3477_s8 + $0x214] ss:$20 sps:$4 sm:$0xff]  }
  0x9f   : > { %2785 = vmatprep.subr.bf16.mxu1 %v3070_v17  ;;  %v3158_v17 = vld [vmem:[%s3477_s8 + $0x23c] ss:$20 sps:$4 sm:$0xff]  }
  0xa1   : > { %1431 = vmatmul.mubr.bf16.gmra.mxu0 %v3068_v15  ;;  %1527 = vmatmul.mubr.bf16.gmra.mxu1 %v3069_v16  ;;  %v3156_v15 = vld [vmem:[%s3477_s8 + $0x210] ss:$20 sps:$4 sm:$0xff]   ;;  %v3157_v16 = vld [vmem:[%s3477_s8 + $0x1c8] ss:$20 sps:$4 sm:$0xff]  }
  0xa2   : > { %2786 = vmatpush3.bf16.msra.mxu1 %v3071_v18  ;;  %1438 = vmatprep.mubr.bf16.mxu0 %v3075_v20  ;;  %v3160_v18 = vld [vmem:[%s3477_s8 + $0x1f0] ss:$20 sps:$4 sm:$0xff]   ;;  %v3162_v20 = vld [vmem:[%s3477_s8 + $0x218] ss:$20 sps:$4 sm:$0xff]  }
  0xa3   : > { %2787 = vmatprep.subr.bf16.mxu1 %v3072_v19  ;;  %1567 = vmatprep.mubr.bf16.mxu1 %v3079_v22  ;;  %v3161_v19 = vld [vmem:[%s3477_s8 + $0x238] ss:$20 sps:$4 sm:$0xff]   ;;  %v3165_v22 = vld [vmem:[%s3477_s8 + $0x240] ss:$20 sps:$4 sm:$0xff]  }
  0xa4   : > { %2920 = vmatpush3.bf16.msra.mxu0 %v3107_v26 }
  0xa5   : > { %2921 = vmatprep.subr.bf16.mxu0 %v3114_v29 }
  0xa6   : > { %2788 = vmatpush3.bf16.msra.mxu1 %v3074_v23  ;;  %v3166_v23 = vld [vmem:[%s3477_s8 + $0x260] ss:$20 sps:$4 sm:$0xff]  }
  0xa8   : > { %2922 = vmatpush3.bf16.msra.mxu0 %v3114_v29 }
  0xa9   : > { %1439 = vmatmul.mubr.bf16.gmra.mxu0 %v3080_v25  ;;  %1568 = vmatmul.mubr.bf16.vlgmr.msra.gmra.mxu1 %v3077_v24  ;;  %v3167_v24 = vld [vmem:[%s3477_s8 + $0x268] ss:$20 sps:$4 sm:$0xff]  }
  0xaa   : > { %1446 = vmatprep.mubr.bf16.mxu0 %v3081_v27  ;;  %1575 = vmatprep.mubr.bf16.mxu1 %v3083_v28 }
  0xab   : > { %2923 = vmatprep.subr.bf16.mxu0 %v3127_v34 }
  0xac   : > { %2924 = vmatpush3.bf16.msra.mxu0 %v3127_v34 }
  0xb1   : > { %1447 = vmatmul.mubr.bf16.gmra.mxu0 %v3085_v30  ;;  %1576 = vmatmul.mubr.bf16.gmra.mxu1 %v3086_v31 }
  0xb2   : > { %1454 = vmatprep.mubr.bf16.mxu0 %v3088_v32  ;;  %1583 = vmatprep.mubr.bf16.mxu1 %v3090_v33 }
  0xb9   : > { %1455 = vmatmul.mubr.bf16.gmra.mxu0 %v3092_v35  ;;  %1584 = vmatmul.mubr.bf16.gmra.mxu1 %v3093_v36 }
  0xba   : > { %1462 = vmatprep.mubr.bf16.mxu0 %v3095_v37  ;;  %1591 = vmatprep.mubr.bf16.mxu1 %v3097_v38 }
  0xc1   : > { %1463 = vmatmul.mubr.bf16.gmra.mxu0 %v3099_v39  ;;  %1592 = vmatmul.mubr.bf16.gmra.mxu1 %v3100_v40 }
  0xc2   : > { %1470 = vmatprep.mubr.bf16.mxu0 %v3101_v41  ;;  %1599 = vmatprep.mubr.bf16.mxu1 %v3103_v42 }
  0xc9   : > { %1471 = vmatmul.mubr.bf16.gmra.mxu0 %v3105_v43  ;;  %1600 = vmatmul.mubr.bf16.gmra.mxu1 %v3106_v44 }
  0xca   : > { %1478 = vmatprep.mubr.bf16.mxu0 %v3108_v45  ;;  %1607 = vmatprep.mubr.bf16.mxu1 %v3110_v46 }
  0xd1   : > { %1479 = vmatmul.mubr.bf16.gmra.mxu0 %v3112_v47  ;;  %1608 = vmatmul.mubr.bf16.gmra.mxu1 %v3113_v48 }
  0xd2   : > { %1486 = vmatprep.mubr.bf16.mxu0 %v3115_v49  ;;  %1615 = vmatprep.mubr.bf16.mxu1 %v3117_v50 }
  0xd9   : > { %1487 = vmatmul.mubr.bf16.gmra.mxu0 %v3119_v51  ;;  %1616 = vmatmul.mubr.bf16.gmra.mxu1 %v3120_v52 }
  0xda   : > { %1494 = vmatprep.mubr.bf16.mxu0 %v3121_v53  ;;  %1623 = vmatprep.mubr.bf16.mxu1 %v3123_v54 }
  0xe1   : > { %1495 = vmatmul.mubr.bf16.gmra.mxu0 %v3125_v55  ;;  %1624 = vmatmul.mubr.bf16.gmra.mxu1 %v3126_v56 }
  0xe2   : > { %1631 = vmatprep.mubr.bf16.mxu1 %v3128_v57  ;;  %2925 = vmatprep.mubr.bf16.mxu0 %v3130_v58 }
  0xe9   : > { %1632 = vmatmul.mubr.bf16.gmra.mxu1 %v3131_v59  ;;  %2926 = vmatmul.mubr.bf16.vlgmr.msra.gmra.mxu0 %v3132_v60 }
  0xea   : > { %1639 = vmatprep.mubr.bf16.mxu1 %v3133_v61  ;;  %2929 = vmatprep.mubr.bf16.mxu0 %v3135_v62 }
  0xf1   : > { %1640 = vmatmul.mubr.bf16.gmra.mxu1 %v3136_v63  ;;  %2930 = vmatmul.mubr.bf16.gmra.mxu0 %v3137_v0 }
  0xf2   : > { %1647 = vmatprep.mubr.bf16.mxu1 %v3138_v1  ;;  %2933 = vmatprep.mubr.bf16.mxu0 %v3140_v2 }
  0xf9   : > { %1648 = vmatmul.mubr.bf16.gmra.mxu1 %v3141_v3  ;;  %2934 = vmatmul.mubr.bf16.gmra.mxu0 %v3142_v4 }
  0xfa   : > { %1655 = vmatprep.mubr.bf16.mxu1 %v3143_v5  ;;  %2937 = vmatprep.mubr.bf16.mxu0 %v3145_v6 }
 0x101   : > { %1656 = vmatmul.mubr.bf16.gmra.mxu1 %v3146_v7  ;;  %2938 = vmatmul.mubr.bf16.gmra.mxu0 %v3147_v8 }
 0x102   : > { %1663 = vmatprep.mubr.bf16.mxu1 %v3148_v9  ;;  %2941 = vmatprep.mubr.bf16.mxu0 %v3150_v10 }
 0x109   : > { %1664 = vmatmul.mubr.bf16.gmra.mxu1 %v3151_v11  ;;  %2942 = vmatmul.mubr.bf16.gmra.mxu0 %v3152_v12 }
 0x10a   : > { %1671 = vmatprep.mubr.bf16.mxu1 %v3153_v13  ;;  %2945 = vmatprep.mubr.bf16.mxu0 %v3155_v14 }
 0x111   : > { %1672 = vmatmul.mubr.bf16.gmra.mxu1 %v3156_v15  ;;  %2946 = vmatmul.mubr.bf16.gmra.mxu0 %v3157_v16 }
 0x112   : > { %1679 = vmatprep.mubr.bf16.mxu1 %v3158_v17  ;;  %2949 = vmatprep.mubr.bf16.mxu0 %v3160_v18 }
 0x119   : > { %1680 = vmatmul.mubr.bf16.gmra.mxu1 %v3161_v19  ;;  %2950 = vmatmul.mubr.bf16.gmra.mxu0 %v3162_v20 }
 0x11a   : > { %1687 = vmatprep.mubr.bf16.mxu1 %v3163_v21  ;;  %2953 = vmatprep.mubr.bf16.mxu0 %v3165_v22 }
 0x121   : > { %1688 = vmatmul.mubr.bf16.gmra.mxu1 %v3166_v23  ;;  %2954 = vmatmul.mubr.bf16.gmra.mxu0 %v3167_v24 }
 0x149   : > { %v2677_v25 = vpop.f32.mrf.mxu0  ;;  %v2749_v26 = vpop.f32.mrf.mxu1 }
 0x14b   : > { %v2678_v27 = vpop.f32.mrf.mxu0  ;;  %v2750_v28 = vpop.f32.mrf.mxu1 }
 0x14c   : > { %v3600_v29 = vadd.f32 %v2678_v27, %v2677_v25  ;;  %v3602_v30 = vadd.f32 %v2750_v28, %v2749_v26 }
 0x14d   : > { %v2680_v31 = vpop.f32.mrf.mxu0  ;;  %v2752_v32 = vpop.f32.mrf.mxu1 }
 0x14e   : > { %3942 = vst [vmem:[#allocation4_spill] sm:$0xff] %v3602_v30 }
 0x14f   : > { %v2681_v33 = vpop.f32.mrf.mxu0  ;;  %v2753_v34 = vpop.f32.mrf.mxu1 }
 0x150   : > { %v3604_v35 = vadd.f32 %v2681_v33, %v2680_v31  ;;  %v3606_v36 = vadd.f32 %v2753_v34, %v2752_v32 }
 0x151   : > { %v2683_v37 = vpop.f32.mrf.mxu0  ;;  %v2755_v38 = vpop.f32.mrf.mxu1 }
 0x152   : > { %3943 = vst [vmem:[#allocation5_spill] sm:$0xff] %v3606_v36 }
 0x153   : > { %v2684_v39 = vpop.f32.mrf.mxu0  ;;  %v2756_v40 = vpop.f32.mrf.mxu1 }
 0x154   : > { %v3608_v41 = vadd.f32 %v2684_v39, %v2683_v37  ;;  %v3610_v42 = vadd.f32 %v2756_v40, %v2755_v38 }
 0x155   : > { %v2686_v43 = vpop.f32.mrf.mxu0  ;;  %v2758_v44 = vpop.f32.mrf.mxu1 }
 0x156   : > { %3944 = vst [vmem:[#allocation6_spill] sm:$0xff] %v3610_v42 }
 0x157   : > { %v2687_v45 = vpop.f32.mrf.mxu0  ;;  %v2759_v46 = vpop.f32.mrf.mxu1 }
 0x158   : > { %v3612_v47 = vadd.f32 %v2687_v45, %v2686_v43  ;;  %v3614_v48 = vadd.f32 %v2759_v46, %v2758_v44 }
 0x159   : > { %v2689_v49 = vpop.f32.mrf.mxu0  ;;  %v2761_v50 = vpop.f32.mrf.mxu1 }
 0x15a   : > { %3945 = vst [vmem:[#allocation7_spill] sm:$0xff] %v3614_v48 }
 0x15b   : > { %v2690_v51 = vpop.f32.mrf.mxu0  ;;  %v2762_v52 = vpop.f32.mrf.mxu1 }
 0x15c   : > { %v3616_v53 = vadd.f32 %v2690_v51, %v2689_v49  ;;  %v3618_v54 = vadd.f32 %v2762_v52, %v2761_v50 }
 0x15d   : > { %v2692_v55 = vpop.f32.mrf.mxu0  ;;  %v2764_v56 = vpop.f32.mrf.mxu1 }
 0x15e   : > { %3946 = vst [vmem:[#allocation8_spill] sm:$0xff] %v3618_v54 }
 0x15f   : > { %v2693_v57 = vpop.f32.mrf.mxu0  ;;  %v2765_v58 = vpop.f32.mrf.mxu1 }
 0x160   : > { %v3620_v59 = vadd.f32 %v2693_v57, %v2692_v55  ;;  %v3622_v60 = vadd.f32 %v2765_v58, %v2764_v56 }
 0x161   : > { %v2695_v61 = vpop.f32.mrf.mxu0  ;;  %v2767_v62 = vpop.f32.mrf.mxu1 }
 0x162   : > { %3947 = vst [vmem:[#allocation9_spill] sm:$0xff] %v3622_v60 }
 0x163   : > { %v2696_v63 = vpop.f32.mrf.mxu0  ;;  %v2768_v0 = vpop.f32.mrf.mxu1 }
 0x164   : > { %v3624_v1 = vadd.f32 %v2696_v63, %v2695_v61  ;;  %v3626_v2 = vadd.f32 %v2768_v0, %v2767_v62 }
 0x165   : > { %v2698_v3 = vpop.f32.mrf.mxu0  ;;  %v2770_v4 = vpop.f32.mrf.mxu1 }
 0x166   : > { %3948 = vst [vmem:[#allocation10_spill] sm:$0xff] %v3626_v2 }
 0x167   : > { %v2699_v5 = vpop.f32.mrf.mxu0  ;;  %v2771_v6 = vpop.f32.mrf.mxu1 }
 0x168   : > { %v3628_v7 = vadd.f32 %v2699_v5, %v2698_v3  ;;  %v3630_v8 = vadd.f32 %v2771_v6, %v2770_v4 }
 0x169   : > { %v2701_v9 = vpop.f32.mrf.mxu0  ;;  %v3632_v10 = vpop.f32.mrf.mxu1 }
 0x16a   : > { %3949 = vst [vmem:[#allocation11_spill] sm:$0xff] %v3630_v8 }
 0x16b   : > { %v2702_v11 = vpop.f32.mrf.mxu0  ;;  %v3634_v12 = vpop.f32.mrf.mxu1 }
 0x16c   : > { %v3636_v13 = vadd.f32 %v2702_v11, %v2701_v9 }
 0x16d   : > { %v2704_v14 = vpop.f32.mrf.mxu0  ;;  %v3638_v15 = vpop.f32.mrf.mxu1 }
 0x16f   : > { %v2705_v16 = vpop.f32.mrf.mxu0  ;;  %v3640_v17 = vpop.f32.mrf.mxu1 }
 0x170   : > { %v3642_v18 = vadd.f32 %v2705_v16, %v2704_v14 }
 0x171   : > { %v2707_v19 = vpop.f32.mrf.mxu0  ;;  %v2795_v20 = vpop.f32.mrf.mxu1 }
 0x173   : > { %v2708_v21 = vpop.f32.mrf.mxu0  ;;  %v2796_v22 = vpop.f32.mrf.mxu1 }
 0x174   : > { %v3644_v23 = vadd.f32 %v2708_v21, %v2707_v19  ;;  %v2797_v30 = vadd.f32 %v2796_v22, %v2795_v20  ;;  %v2794_v20 = vadd.f32 %v3640_v17, %v3638_v15 }
 0x175   : > { %v2710_v24 = vpop.f32.mrf.mxu0  ;;  %v2798_v25 = vpop.f32.mrf.mxu1 }
 0x177   : > { %v2711_v26 = vpop.f32.mrf.mxu0  ;;  %v2799_v27 = vpop.f32.mrf.mxu1 }
 0x178   : > { %v3646_v28 = vadd.f32 %v2711_v26, %v2710_v24 }
 0x179   : > { %v2713_v31 = vpop.f32.mrf.mxu0  ;;  %v3648_v32 = vpop.f32.mrf.mxu1 }
 0x17b   : > { %v2714_v33 = vpop.f32.mrf.mxu0  ;;  %v3650_v34 = vpop.f32.mrf.mxu1 }
 0x17c   : > { %v3652_v37 = vadd.f32 %v2714_v33, %v2713_v31 }
 0x17d   : > { %v2716_v38 = vpop.f32.mrf.mxu0  ;;  %v3654_v39 = vpop.f32.mrf.mxu1 }
 0x17f   : > { %v2717_v40 = vpop.f32.mrf.mxu0  ;;  %v3656_v43 = vpop.f32.mrf.mxu1 }
 0x180   : > { %v3658_v44 = vadd.f32 %v2717_v40, %v2716_v38 }
 0x181   : > { %v3660_v45 = vpop.f32.mrf.mxu0  ;;  %v2807_v46 = vpop.f32.mrf.mxu1 }
 0x182   : > { %3950 = vst [vmem:[#allocation12_spill] sm:$0xff] %v3658_v44  ;;  %v2803_v44 = vadd.f32 %v3650_v34, %v3648_v32  ;;  %v2806_v34 = vadd.f32 %v3656_v43, %v3654_v39  ;;  %v517_v39 = vld [vmem:[#allocation2 + $0x48] sm:$0xff] }
 0x183   : > { %v3662_v49 = vpop.f32.mrf.mxu0  ;;  %v2808_v50 = vpop.f32.mrf.mxu1 }
 0x185   : > { %v3664_v51 = vpop.f32.mrf.mxu0  ;;  %v3666_v52 = vpop.f32.mrf.mxu1 }
 0x187   : > { %v3668_v55 = vpop.f32.mrf.mxu0  ;;  %v2811_v56 = vpop.f32.mrf.mxu1 }
 0x189   : > { %v3670_v57 = vpop.f32.mrf.mxu0  ;;  %v3672_v58 = vpop.f32.mrf.mxu1 }
 0x18a   : > { %3951 = vst [vmem:[#allocation13_spill] sm:$0xff] %v3670_v57 }
 0x18b   : > { %v3674_v61 = vpop.f32.mrf.mxu0  ;;  %v3676_v62 = vpop.f32.mrf.mxu1 }
 0x18c   : > { %3952 = vst [vmem:[#allocation14_spill] sm:$0xff] %v3674_v61 }
 0x18d   : > { %v3678_v63 = vpop.f32.mrf.mxu0  ;;  %v3680_v0 = vpop.f32.mrf.mxu1 }
 0x18e   : > { %3953 = vst [vmem:[#allocation15_spill] sm:$0xff] %v3678_v63 }
 0x18f   : > { %v3682_v3 = vpop.f32.mrf.mxu0  ;;  %v3684_v4 = vpop.f32.mrf.mxu1 }
 0x190   : > { %3954 = vst [vmem:[#allocation16_spill] sm:$0xff] %v3682_v3  ;;  %v2800_v3 = vadd.f32 %v2799_v27, %v2798_v25 }
 0x191   : > { %v3686_v5 = vpop.f32.mrf.mxu0  ;;  %v3688_v6 = vpop.f32.mrf.mxu1 }
 0x192   : > { %v1581_v25 = vadd.f32 %v2800_v3, %v3612_v47 }
 0x193   : > { %v3690_v9 = vpop.f32.mrf.mxu0  ;;  %v3692_v11 = vpop.f32.mrf.mxu1 }
 0x195   : > { %v3694_v14 = vpop.f32.mrf.mxu0  ;;  %v3696_v16 = vpop.f32.mrf.mxu1 }
 0x196   : > { %3955 = vst [vmem:[#allocation17_spill] sm:$0xff] %v3694_v14 }
 0x197   : > { %v3698_v19 = vpop.f32.mrf.mxu0  ;;  %v3700_v21 = vpop.f32.mrf.mxu1 }
 0x198   : > { %3956 = vst [vmem:[#allocation18_spill] sm:$0xff] %v3698_v19 }
 0x199   : > { %v3702_v24 = vpop.f32.mrf.mxu0  ;;  %v3704_v26 = vpop.f32.mrf.mxu1 }
 0x19a   : > { %3957 = vst [vmem:[#allocation19_spill] sm:$0xff] %v3702_v24 }
 0x19b   : > { %v3706_v31 = vpop.f32.mrf.mxu0  ;;  %v3708_v33 = vpop.f32.mrf.mxu1 }
 0x19c   : > { %3958 = vst [vmem:[#allocation20_spill] sm:$0xff] %v3706_v31 }
 0x19d   : > { %v3710_v38 = vpop.f32.mrf.mxu0  ;;  %v3712_v40 = vpop.f32.mrf.mxu1 }
 0x19e   : > { %3959 = vst [vmem:[#allocation21_spill] sm:$0xff] %v3710_v38  ;;  %v2791_v38 = vadd.f32 %v3634_v12, %v3632_v10  ;;  %v510_v10 = vld [vmem:[#allocation2 + $0xb0] sm:$0xff] }
 0x19f   : > { %v3714_v8 = vpop.f32.mrf.mxu0  ;;  %v3716_v60 = vpop.f32.mrf.mxu1 }
 0x1a0   : > { %3960 = vst [vmem:[#allocation22_spill] sm:$0xff] %v3714_v8 }
 0x1a1   : > { %v3718_v2 = vpop.f32.mrf.mxu0  ;;  %v3720_v54 = vpop.f32.mrf.mxu1 }
 0x1a2   : > { %3961 = vst [vmem:[#allocation23_spill] sm:$0xff] %v3718_v2  ;;  %v1578_v2 = vadd.f32 %v2797_v30, %v3608_v41  ;;  %v513_v41 = vld [vmem:[#allocation2 + $0x18] sm:$0xff] }
 0x1a3   : > { %v3722_v36 = vpop.f32.mrf.mxu0  ;;  %v3724_v48 = vpop.f32.mrf.mxu1 }
 0x1a4   : > { %3962 = vst [vmem:[#allocation24_spill] sm:$0xff] %v3722_v36  ;;  %v512_v36 = vld [vmem:[#allocation2 + $0xd8] sm:$0xff] }
 0x1a5   : > { %v3726_v42 = vpop.f32.mrf.mxu0  ;;  %v3728_v31 = vpop.f32.mrf.mxu1 }
 0x1a6   : > { %3963 = vst [vmem:[#allocation25_spill] sm:$0xff] %v3726_v42  ;;  %v1570_v42 = vadd.f32 %v2791_v38, %v3600_v29  ;;  %v1573_v29 = vadd.f32 %v2794_v20, %v3604_v35  ;;  %v516_v38 = vld [vmem:[#allocation2 + $0x30] sm:$0xff] }
 0x1a7   : > { %v3732_v24 = vpop.f32.mrf.mxu0  ;;  %v3734_v8 = vpop.f32.mrf.mxu1 }
 0x1a8   : > { %3964 = vst [vmem:[#allocation26_spill] sm:$0xff] %v3732_v24  ;;  %v2809_v24 = vadd.f32 %v2808_v50, %v2807_v46 }
 0x1a9   : > { %v3737_v63 = vpop.f32.mrf.mxu1  ;;  %v2927_v19 = vpop.f32.mrf.mxu0 }
 0x1aa   : > { %v1739_v22 = vadd.f32 %v2927_v19, %v1578_v2  ;;  %v511_v19 = vld [vmem:[#allocation2] sm:$0xff]  ;;  %v1594_v50 = vadd.f32 %v2809_v24, %v3624_v1 }
 0x1ab   : > { %v3742_v14 = vpop.f32.mrf.mxu1  ;;  %v1730_v12 = vpop.f32.mrf.mxu0 }
 0x1ac   : > { %v1859_v61 = vadd.f32 %v1739_v22, %v512_v36  ;;  %v1731_v57 = vadd.f32 %v1730_v12, %v1570_v42  ;;  %v2812_v36 = vadd.f32 %v2811_v56, %v3666_v52  ;;  %v514_v52 = vld [vmem:[#allocation2 + $0x50] sm:$0xff]  ;;  %v2821_v22 = vadd.f32 %v3692_v11, %v3688_v6  ;;  %v515_v6 = vld [vmem:[#allocation2 + $0x68] sm:$0xff] }
 0x1ad   : > { %v3745_v30 = vpop.f32.mrf.mxu1  ;;  %v2928_v27 = vpop.f32.mrf.mxu0 }
 0x1ae   : > { %1891 = vst [vmem:[#allocation2 + $0xd8] sm:$0xff] %v1859_v61  ;;  %v1857_v2 = vadd.f32 %v1731_v57, %v510_v10  ;;  %v1742_v15 = vadd.f32 %v2928_v27, %v1581_v25  ;;  %v1586_v61 = vadd.f32 %v2803_v44, %v3616_v53  ;;  %v1597_v10 = vadd.f32 %v2812_v36, %v3628_v7 }
 0x1af   : > { %v3750_v17 = vpop.f32.mrf.mxu1  ;;  %v1733_v46 = vpop.f32.mrf.mxu0  ;;  %v2815_v25 = vadd.f32 %v3676_v62, %v3672_v58  ;;  %v520_v58 = vld [vmem:[#allocation2 + $0xe8] sm:$0xff] }
 0x1b0   : > { %1889 = vst [vmem:[#allocation2 + $0xb0] sm:$0xff] %v1857_v2  ;;  %v1860_v42 = vadd.f32 %v1742_v15, %v513_v41  ;;  %v1734_v47 = vadd.f32 %v1733_v46, %v1573_v29  ;;  %v1589_v41 = vadd.f32 %v2806_v34, %v3620_v59  ;;  %v2824_v2 = vadd.f32 %v3700_v21, %v3696_v16  ;;  %v518_v16 = vld [vmem:[#allocation2 + $0x80] sm:$0xff]  ;;  %v521_v34 = vld [vmem:[#allocation2 + $0xb8] sm:$0xff] }
 0x1b1   : > { %v3754_v3 = vpop.f32.mrf.mxu1  ;;  %v2931_v32 = vpop.f32.mrf.mxu0  ;;  %v1610_v29 = vadd.f32 %v2821_v22, %v3644_v23  ;;  %v2818_v46 = vadd.f32 %v3684_v4, %v3680_v0  ;;  %v2721_v0 = vadd.f32 %v3662_v49, %v3660_v45 }
 0x1b2   : > { %1892 = vst [vmem:[#allocation2 + $0x18] sm:$0xff] %v1860_v42  ;;  %v1858_v35 = vadd.f32 %v1734_v47, %v511_v19  ;;  %v1755_v57 = vadd.f32 %v2931_v32, %v1594_v50  ;;  %v1602_v42 = vadd.f32 %v2815_v25, %v3636_v13  ;;  %v2833_v50 = vadd.f32 %v3724_v48, %v3720_v54 }
 0x1b3   : > { %v3759_v20 = vpop.f32.mrf.mxu1  ;;  %v1746_v56 = vpop.f32.mrf.mxu0  ;;  %v1613_v32 = vadd.f32 %v2824_v2, %v3646_v28  ;;  %v2827_v13 = vadd.f32 %v3708_v33, %v3704_v26  ;;  %v1605_v48 = vadd.f32 %v2818_v46, %v3642_v18  ;;  %v2836_v28 = vadd.f32 %v3734_v8, %v3728_v31  ;;  %v524_v33 = vld [vmem:[#allocation2 + $0x8] sm:$0xff]  ;;  %v522_v8 = vld [vmem:[#allocation2 + $0x60] sm:$0xff] }
 0x1b4   : > { %1890 = vst [vmem:[#allocation2] sm:$0xff] %v1858_v35  ;;  %v1863_v1 = vadd.f32 %v1755_v57, %v516_v38  ;;  %v1747_v24 = vadd.f32 %v1746_v56, %v1586_v61  ;;  %v1626_v22 = vadd.f32 %v2833_v50, %v2721_v0  ;;  %v2830_v18 = vadd.f32 %v3716_v60, %v3712_v40  ;;  %v525_v60 = vld [vmem:[#allocation2 + $0x78] sm:$0xff] }
 0x1b5   : > { %v3764_v12 = vpop.f32.mrf.mxu1  ;;  %v2932_v43 = vpop.f32.mrf.mxu0 }
 0x1b6   : > { %1895 = vst [vmem:[#allocation2 + $0x30] sm:$0xff] %v1863_v1  ;;  %v1861_v53 = vadd.f32 %v1747_v24, %v514_v52  ;;  %v1758_v44 = vadd.f32 %v2932_v43, %v1597_v10  ;;  %v519_v52 = vld [vmem:[#allocation2 + $0x88] sm:$0xff]  ;;  %v2724_v1 = vadd.f32 %v3668_v55, %v3664_v51  ;;  %v1618_v43 = vadd.f32 %v2827_v13, %v3652_v37  ;;  %v526_v13 = vld [vmem:[#allocation2 + $0x38] sm:$0xff] }
 0x1b7   : > { %v3769_v27 = vpop.f32.mrf.mxu1  ;;  %v1749_v11 = vpop.f32.mrf.mxu0 }
 0x1b8   : > { %1893 = vst [vmem:[#allocation2 + $0x50] sm:$0xff] %v1861_v53  ;;  %v1864_v7 = vadd.f32 %v1758_v44, %v517_v39  ;;  %v1750_v15 = vadd.f32 %v1749_v11, %v1589_v41  ;;  %v2845_v53 = vadd.f32 %v3759_v20, %v3754_v3  ;;  %v1629_v55 = vadd.f32 %v2836_v28, %v2724_v1  ;;  %v3967_v3 = vld [vmem:[#allocation14_spill] sm:$0xff]  ;;  %v3972_v28 = vld [vmem:[#allocation23_spill] sm:$0xff] }
 0x1b9   : > { %v3774_v19 = vpop.f32.mrf.mxu1  ;;  %v2935_v62 = vpop.f32.mrf.mxu0  ;;  %v2733_v41 = vadd.f32 %v3690_v9, %v3686_v5  ;;  %v2839_v11 = vadd.f32 %v3742_v14, %v3737_v63  ;;  %v2848_v5 = vadd.f32 %v3769_v27, %v3764_v12  ;;  %v3969_v63 = vld [vmem:[#allocation18_spill] sm:$0xff] }
 0x1ba   : > { %1896 = vst [vmem:[#allocation2 + $0x48] sm:$0xff] %v1864_v7  ;;  %v1862_v59 = vadd.f32 %v1750_v15, %v515_v6  ;;  %v1771_v36 = vadd.f32 %v2935_v62, %v1610_v29  ;;  %v3965_v7 = vld [vmem:[#allocation12_spill] sm:$0xff]  ;;  %v3966_v29 = vld [vmem:[#allocation13_spill] sm:$0xff]  ;;  %v523_v62 = vld [vmem:[#allocation2 + $0xf0] sm:$0xff] }
 0x1bb   : > { %v3779_v47 = vpop.f32.mrf.mxu1  ;;  %v1762_v21 = vpop.f32.mrf.mxu0  ;;  %v1621_v15 = vadd.f32 %v2830_v18, %v3965_v7  ;;  %v2727_v20 = vadd.f32 %v3967_v3, %v3966_v29  ;;  %v3979_v29 = vld [vmem:[#allocation22_spill] sm:$0xff] }
 0x1bc   : > { %1894 = vst [vmem:[#allocation2 + $0x68] sm:$0xff] %v1862_v59  ;;  %v1867_v23 = vadd.f32 %v1771_v36, %v520_v58  ;;  %v1763_v38 = vadd.f32 %v1762_v21, %v1602_v42  ;;  %v1642_v36 = vadd.f32 %v2845_v53, %v2733_v41  ;;  %v3968_v42 = vld [vmem:[#allocation17_spill] sm:$0xff]  ;;  %v528_v21 = vld [vmem:[#allocation2 + $0x40] sm:$0xff]  ;;  %v2851_v1 = vadd.f32 %v3779_v47, %v3774_v19  ;;  %v3977_v41 = vld [vmem:[#allocation26_spill] sm:$0xff] }
 0x1bd   : > { %v3786_v4 = vpop.f32.mrf.mxu1  ;;  %v2936_v35 = vpop.f32.mrf.mxu0  ;;  %v2736_v14 = vadd.f32 %v3969_v63, %v3968_v42  ;;  %v1634_v0 = vadd.f32 %v2839_v11, %v2727_v20  ;;  %v532_v19 = vld [vmem:[#allocation2 + $0x70] sm:$0xff]  ;;  %v530_v20 = vld [vmem:[#allocation2 + $0xe0] sm:$0xff] }
 0x1be   : > { %1899 = vst [vmem:[#allocation2 + $0xe8] sm:$0xff] %v1867_v23  ;;  %v1865_v57 = vadd.f32 %v1763_v38, %v518_v16  ;;  %v1774_v61 = vadd.f32 %v2936_v35, %v1613_v32  ;;  %v2842_v23 = vadd.f32 %v3750_v17, %v3745_v30  ;;  %v3971_v35 = vld [vmem:[#allocation16_spill] sm:$0xff]  ;;  %v529_v30 = vld [vmem:[#allocation2 + $0xc8] sm:$0xff] }
 0x1bf   : > { %v3791_v54 = vpop.f32.mrf.mxu1  ;;  %v1765_v56 = vpop.f32.mrf.mxu0 }
 0x1c0   : > { %1897 = vst [vmem:[#allocation2 + $0x80] sm:$0xff] %v1865_v57  ;;  %v1868_v45 = vadd.f32 %v1774_v61, %v521_v34  ;;  %v1766_v49 = vadd.f32 %v1765_v56, %v1605_v48  ;;  %v3970_v34 = vld [vmem:[#allocation15_spill] sm:$0xff]  ;;  %v1645_v56 = vadd.f32 %v2848_v5, %v2736_v14  ;;  %v2854_v11 = vadd.f32 %v3791_v54, %v3786_v4 }
 0x1c1   : > { %v2855_v26 = vpop.f32.mrf.mxu1  ;;  %v2939_v24 = vpop.f32.mrf.mxu0  ;;  %v2730_v12 = vadd.f32 %v3971_v35, %v3970_v34  ;;  %v3980_v34 = vld [vmem:[#allocation6_spill] sm:$0xff] }
 0x1c2   : > { %1900 = vst [vmem:[#allocation2 + $0xb8] sm:$0xff] %v1868_v45  ;;  %v1866_v10 = vadd.f32 %v1766_v49, %v519_v52  ;;  %v1787_v39 = vadd.f32 %v2939_v24, %v1626_v22  ;;  %v3973_v45 = vld [vmem:[#allocation24_spill] sm:$0xff] }
 0x1c3   : > { %v2856_v25 = vpop.f32.mrf.mxu1  ;;  %v1778_v31 = vpop.f32.mrf.mxu0  ;;  %v2745_v49 = vadd.f32 %v3973_v45, %v3972_v28  ;;  %v1637_v18 = vadd.f32 %v2842_v23, %v2730_v12  ;;  %v534_v28 = vld [vmem:[#allocation2 + $0xa8] sm:$0xff] }
 0x1c4   : > { %1898 = vst [vmem:[#allocation2 + $0x88] sm:$0xff] %v1866_v10  ;;  %v1871_v44 = vadd.f32 %v1787_v39, %v524_v33  ;;  %v1779_v51 = vadd.f32 %v1778_v31, %v1618_v43  ;;  %v2857_v61 = vadd.f32 %v2856_v25, %v2855_v26  ;;  %v3974_v10 = vld [vmem:[#allocation19_spill] sm:$0xff]  ;;  %v3975_v39 = vld [vmem:[#allocation20_spill] sm:$0xff] }
 0x1c5   : > { %v2858_v6 = vpop.f32.mrf.mxu1  ;;  %v2940_v40 = vpop.f32.mrf.mxu0  ;;  %v2739_v26 = vadd.f32 %v3975_v39, %v3974_v10  ;;  %v527_v25 = vld [vmem:[#allocation2 + $0x58] sm:$0xff] }
 0x1c6   : > { %1903 = vst [vmem:[#allocation2 + $0x8] sm:$0xff] %v1871_v44  ;;  %v1869_v37 = vadd.f32 %v1779_v51, %v522_v8  ;;  %v1790_v2 = vadd.f32 %v2940_v40, %v1629_v55  ;;  %v1658_v51 = vadd.f32 %v2857_v61, %v2745_v49  ;;  %v3976_v55 = vld [vmem:[#allocation25_spill] sm:$0xff] }
 0x1c7   : > { %v2859_v58 = vpop.f32.mrf.mxu1  ;;  %v1781_v46 = vpop.f32.mrf.mxu0  ;;  %v1650_v7 = vadd.f32 %v2851_v1, %v2739_v26  ;;  %v3983_v26 = vld [vmem:[#allocation5_spill] sm:$0xff] }
 0x1c8   : > { %1901 = vst [vmem:[#allocation2 + $0x60] sm:$0xff] %v1869_v37  ;;  %v1872_v9 = vadd.f32 %v1790_v2, %v525_v60  ;;  %v1782_v59 = vadd.f32 %v1781_v46, %v1621_v15  ;;  %v2860_v31 = vadd.f32 %v2859_v58, %v2858_v6  ;;  %v2748_v60 = vadd.f32 %v3977_v41, %v3976_v55  ;;  %v3978_v15 = vld [vmem:[#allocation21_spill] sm:$0xff] }
 0x1c9   : > { %v2861_v16 = vpop.f32.mrf.mxu1  ;;  %v2943_v50 = vpop.f32.mrf.mxu0  ;;  %v2742_v6 = vadd.f32 %v3979_v29, %v3978_v15 }
 0x1ca   : > { %1904 = vst [vmem:[#allocation2 + $0x78] sm:$0xff] %v1872_v9  ;;  %v1870_v38 = vadd.f32 %v1782_v59, %v523_v62  ;;  %v1803_v32 = vadd.f32 %v2943_v50, %v1642_v36  ;;  %v1661_v9 = vadd.f32 %v2860_v31, %v2748_v60  ;;  %v533_v36 = vld [vmem:[#allocation2 + $0xc0] sm:$0xff]  ;;  %v531_v50 = vld [vmem:[#allocation2 + $0x90] sm:$0xff] }
 0x1cb   : > { %v2862_v27 = vpop.f32.mrf.mxu1  ;;  %v1794_v57 = vpop.f32.mrf.mxu0  ;;  %v1653_v14 = vadd.f32 %v2854_v11, %v2742_v6  ;;  %v538_v11 = vld [vmem:[#allocation2 + $0xa0] sm:$0xff]  ;;  %v3985_v6 = vld [vmem:[#allocation10_spill] sm:$0xff] }
 0x1cc   : > { %1902 = vst [vmem:[#allocation2 + $0xf0] sm:$0xff] %v1870_v38  ;;  %v1875_v48 = vadd.f32 %v1803_v32, %v528_v21  ;;  %v1795_v52 = vadd.f32 %v1794_v57, %v1634_v0  ;;  %v2863_v63 = vadd.f32 %v2862_v27, %v2861_v16  ;;  %v3981_v27 = vld [vmem:[#allocation4_spill] sm:$0xff] }
 0x1cd   : > { %v2864_v22 = vpop.f32.mrf.mxu1  ;;  %v2944_v17 = vpop.f32.mrf.mxu0 }
 0x1ce   : > { %1907 = vst [vmem:[#allocation2 + $0x40] sm:$0xff] %v1875_v48  ;;  %v1873_v33 = vadd.f32 %v1795_v52, %v526_v13  ;;  %v1806_v24 = vadd.f32 %v2944_v17, %v1645_v56  ;;  %v536_v13 = vld [vmem:[#allocation2 + $0x10] sm:$0xff]  ;;  %v1666_v52 = vadd.f32 %v2863_v63, %v3981_v27  ;;  %v3982_v17 = vld [vmem:[#allocation7_spill] sm:$0xff] }
 0x1cf   : > { %v2865_v43 = vpop.f32.mrf.mxu1  ;;  %v1797_v8 = vpop.f32.mrf.mxu0 }
 0x1d0   : > { %1905 = vst [vmem:[#allocation2 + $0x38] sm:$0xff] %v1873_v33  ;;  %v1876_v53 = vadd.f32 %v1806_v24, %v529_v30  ;;  %v1798_v44 = vadd.f32 %v1797_v8, %v1637_v18  ;;  %v2866_v61 = vadd.f32 %v2865_v43, %v2864_v22  ;;  %v537_v24 = vld [vmem:[#allocation2 + $0x28] sm:$0xff]  ;;  %v535_v8 = vld [vmem:[#allocation2 + $0xd0] sm:$0xff] }
 0x1d1   : > { %v2867_v40 = vpop.f32.mrf.mxu1  ;;  %v2947_v47 = vpop.f32.mrf.mxu0 }
 0x1d2   : > { %1908 = vst [vmem:[#allocation2 + $0xc8] sm:$0xff] %v1876_v53  ;;  %v1874_v37 = vadd.f32 %v1798_v44, %v527_v25  ;;  %v1819_v2 = vadd.f32 %v2947_v47, %v1658_v51  ;;  %v1669_v43 = vadd.f32 %v2866_v61, %v3983_v26 }
 0x1d3   : > { %v2868_v3 = vpop.f32.mrf.mxu1  ;;  %v1810_v58 = vpop.f32.mrf.mxu0 }
 0x1d4   : > { %1906 = vst [vmem:[#allocation2 + $0x58] sm:$0xff] %v1874_v37  ;;  %v1879_v62 = vadd.f32 %v1819_v2, %v532_v19  ;;  %v2869_v46 = vadd.f32 %v2868_v3, %v2867_v40  ;;  %v1811_v5 = vadd.f32 %v1810_v58, %v1650_v7  ;;  %v3984_v40 = vld [vmem:[#allocation8_spill] sm:$0xff]  ;;  %v3986_v58 = vld [vmem:[#allocation9_spill] sm:$0xff] }
 0x1d5   : > { %v2870_v59 = vpop.f32.mrf.mxu1  ;;  %v2948_v42 = vpop.f32.mrf.mxu0 }
 0x1d6   : > { %1911 = vst [vmem:[#allocation2 + $0x70] sm:$0xff] %v1879_v62  ;;  %v1877_v4 = vadd.f32 %v1811_v5, %v530_v20  ;;  %v1822_v54 = vadd.f32 %v2948_v42, %v1661_v9  ;;  %v1674_v35 = vadd.f32 %v2869_v46, %v3980_v34  ;;  %v540_v46 = vld [vmem:[#allocation2 + $0x20] sm:$0xff]  ;;  %v539_v9 = vld [vmem:[#allocation2 + $0xf8] sm:$0xff] }
 0x1d7   : > { %v2871_v21 = vpop.f32.mrf.mxu1  ;;  %v1813_v23 = vpop.f32.mrf.mxu0 }
 0x1d8   : > { %1909 = vst [vmem:[#allocation2 + $0xe0] sm:$0xff] %v1877_v4  ;;  %v1880_v38 = vadd.f32 %v1822_v54, %v533_v36  ;;  %v2872_v32 = vadd.f32 %v2871_v21, %v2870_v59  ;;  %v1814_v0 = vadd.f32 %v1813_v23, %v1653_v14  ;;  %v3987_v54 = vld [vmem:[#allocation11_spill] sm:$0xff] }
 0x1d9   : > { %v2873_v12 = vpop.f32.mrf.mxu1  ;;  %v2951_v57 = vpop.f32.mrf.mxu0 }
 0x1da   : > { %1912 = vst [vmem:[#allocation2 + $0xc0] sm:$0xff] %v1880_v38  ;;  %v1878_v48 = vadd.f32 %v1814_v0, %v531_v50  ;;  %v1835_v16 = vadd.f32 %v2951_v57, %v1674_v35  ;;  %v1677_v1 = vadd.f32 %v2872_v32, %v3982_v17  ;;  %v541_v50 = vld [vmem:[#allocation2 + $0x98] sm:$0xff] }
 0x1db   : > { %v2874_v56 = vpop.f32.mrf.mxu1  ;;  %v1826_v45 = vpop.f32.mrf.mxu0 }
 0x1dc   : > { %1910 = vst [vmem:[#allocation2 + $0x90] sm:$0xff] %v1878_v48  ;;  %v1883_v49 = vadd.f32 %v1835_v16, %v536_v13  ;;  %v1827_v30 = vadd.f32 %v1826_v45, %v1666_v52  ;;  %v2875_v10 = vadd.f32 %v2874_v56, %v2873_v12 }
 0x1dd   : > { %v2876_v33 = vpop.f32.mrf.mxu1  ;;  %v2952_v18 = vpop.f32.mrf.mxu0 }
 0x1de   : > { %1915 = vst [vmem:[#allocation2 + $0x10] sm:$0xff] %v1883_v49  ;;  %v1881_v39 = vadd.f32 %v1827_v30, %v534_v28  ;;  %v1838_v22 = vadd.f32 %v2952_v18, %v1677_v1  ;;  %v1682_v19 = vadd.f32 %v2875_v10, %v3984_v40 }
 0x1df   : > { %v2877_v25 = vpop.f32.mrf.mxu1  ;;  %v1829_v31 = vpop.f32.mrf.mxu0 }
 0x1e0   : > { %1913 = vst [vmem:[#allocation2 + $0xa8] sm:$0xff] %v1881_v39  ;;  %v1884_v53 = vadd.f32 %v1838_v22, %v537_v24  ;;  %v1830_v44 = vadd.f32 %v1829_v31, %v1669_v43  ;;  %v2878_v41 = vadd.f32 %v2877_v25, %v2876_v33 }
 0x1e1   : > { %v2879_v51 = vpop.f32.mrf.mxu1  ;;  %v2955_v55 = vpop.f32.mrf.mxu0 }
 0x1e2   : > { %1916 = vst [vmem:[#allocation2 + $0x28] sm:$0xff] %v1884_v53  ;;  %v1882_v60 = vadd.f32 %v1830_v44, %v535_v8  ;;  %v1685_v62 = vadd.f32 %v2878_v41, %v3986_v58 }
 0x1e3   : > { %v2880_v47 = vpop.f32.mrf.mxu1  ;;  %v1842_v37 = vpop.f32.mrf.mxu0 }
 0x1e4   : > { %1914 = vst [vmem:[#allocation2 + $0xd0] sm:$0xff] %v1882_v60  ;;  %v2881_v2 = vadd.f32 %v2880_v47, %v2879_v51  ;;  %v1843_v7 = vadd.f32 %v1842_v37, %v1682_v19 }
 0x1e5   : > { %v2882_v15 = vpop.f32.mrf.mxu1  ;;  %v2956_v29 = vpop.f32.mrf.mxu0 }
 0x1e6   : > { %v1690_v3 = vadd.f32 %v2881_v2, %v3985_v6  ;;  %v1885_v20 = vadd.f32 %v1843_v7, %v538_v11 }
 0x1e7   : > { %v2883_v5 = vpop.f32.mrf.mxu1  ;;  %v1845_v59 = vpop.f32.mrf.mxu0 }
 0x1e8   : > { %v1851_v36 = vadd.f32 %v2955_v55, %v1690_v3  ;;  %1917 = vst [vmem:[#allocation2 + $0xa0] sm:$0xff] %v1885_v20  ;;  %v2884_v42 = vadd.f32 %v2883_v5, %v2882_v15  ;;  %v1846_v63 = vadd.f32 %v1845_v59, %v1685_v62 }
 0x1ea   : > { %v1887_v4 = vadd.f32 %v1851_v36, %v540_v46  ;;  %v1693_v14 = vadd.f32 %v2884_v42, %v3987_v54  ;;  %v1886_v21 = vadd.f32 %v1846_v63, %v539_v9 }
 0x1ec   : > { %1919 = vst [vmem:[#allocation2 + $0x20] sm:$0xff] %v1887_v4  ;;  %v1854_v23 = vadd.f32 %v2956_v29, %v1693_v14  ;;  %1918 = vst [vmem:[#allocation2 + $0xf8] sm:$0xff] %v1886_v21  ;;  %1924 = sbr.rel (%p2495_p11) target bundleno = 523 (0x20b), region = 66 }
 0x1ee   : > { %v1888_v38 = vadd.f32 %v1854_v23, %v541_v50 }
 0x1f0   : > { %1920 = vst [vmem:[#allocation2 + $0x98] sm:$0xff] %v1888_v38 }
 0x1f1   : > { %v1925_v32 = vld [vmem:[#allocation2 + $0xb0] sm:$0xff]  ;;  %v1926_v0 = vld [vmem:[#allocation2] sm:$0xff]  ;;  %v1927_v13 = vld [vmem:[#allocation2 + $0xd8] sm:$0xff] }
 0x1f2   : > { %v3841_v34 = vld [vmem:[%s3940_s2] ss:$0 sm:$0xff]  ;;  %v1928_v57 = vld [vmem:[#allocation2 + $0x18] sm:$0xff]  ;;  %v1929_v61 = vld [vmem:[#allocation2 + $0x50] sm:$0xff] }
 0x1f3   : > { %v1964_v35 = vadd.f32 %v3841_v34, %v1925_v32  ;;  %v1965_v12 = vadd.f32 %v3841_v34, %v1926_v0  ;;  %v1966_v48 = vadd.f32 %v3841_v34, %v1927_v13  ;;  %v1967_v16 = vadd.f32 %v3841_v34, %v1928_v57  ;;  %v1930_v27 = vld [vmem:[#allocation2 + $0x68] sm:$0xff]  ;;  %v1931_v56 = vld [vmem:[#allocation2 + $0x30] sm:$0xff]  ;;  %v1933_v1 = vld [vmem:[#allocation2 + $0x80] sm:$0xff] }
 0x1f4   : > { %v1968_v52 = vadd.f32 %v3841_v34, %v1929_v61  ;;  %v1932_v28 = vld [vmem:[#allocation2 + $0x48] sm:$0xff]  ;;  %v1969_v30 = vadd.f32 %v3841_v34, %v1930_v27  ;;  %v1970_v17 = vadd.f32 %v3841_v34, %v1931_v56  ;;  %v1936_v26 = vld [vmem:[#allocation2 + $0xb8] sm:$0xff]  ;;  %v1937_v43 = vld [vmem:[#allocation2 + $0x60] sm:$0xff]  ;;  %v1972_v53 = vadd.f32 %v3841_v34, %v1933_v1 }
 0x1f5   : > { %v1996_v45 = vmax.f32 %v1964_v35, 0.0  ;;  %v1997_v49 = vmax.f32 %v1965_v12, 0.0  ;;  %v1934_v33 = vld [vmem:[#allocation2 + $0x88] sm:$0xff]  ;;  %v1998_v18 = vmax.f32 %v1966_v48, 0.0  ;;  %v1999_v10 = vmax.f32 %v1967_v16, 0.0  ;;  %v1938_v44 = vld [vmem:[#allocation2 + $0xf0] sm:$0xff] }
 0x1f6   : > { %v1935_v24 = vld [vmem:[#allocation2 + $0xe8] sm:$0xff]  ;;  %v2000_v39 = vmax.f32 %v1968_v52, 0.0  ;;  %v1971_v22 = vadd.f32 %v3841_v34, %v1932_v28  ;;  %v2001_v8 = vmax.f32 %v1969_v30, 0.0  ;;  %v2002_v31 = vmax.f32 %v1970_v17, 0.0  ;;  %v1940_v19 = vld [vmem:[#allocation2 + $0x78] sm:$0xff]  ;;  %v1943_v58 = vld [vmem:[#allocation2 + $0x40] sm:$0xff] }
 0x1f7   : > { %v2569_v25 = vpack.c.bf16 %v1997_v49, %v1996_v45  ;;  %v2574_v51 = vpack.c.bf16 %v1999_v10, %v1998_v18  ;;  %v1973_v41 = vadd.f32 %v3841_v34, %v1934_v33  ;;  %v1974_v60 = vadd.f32 %v3841_v34, %v1935_v24  ;;  %v1939_v40 = vld [vmem:[#allocation2 + $0x8] sm:$0xff]  ;;  %v1941_v7 = vld [vmem:[#allocation2 + $0x38] sm:$0xff]  ;;  %v1945_v54 = vld [vmem:[#allocation2 + $0xe0] sm:$0xff] }
 0x1f8   : > { %v2003_v55 = vmax.f32 %v1971_v22, 0.0  ;;  %v2579_v47 = vpack.c.bf16 %v2001_v8, %v2000_v39  ;;  %v2004_v11 = vmax.f32 %v1972_v53, 0.0  ;;  %v1975_v37 = vadd.f32 %v3841_v34, %v1936_v26  ;;  %v1942_v15 = vld [vmem:[#allocation2 + $0x58] sm:$0xff]  ;;  %v1944_v59 = vld [vmem:[#allocation2 + $0xc8] sm:$0xff]  ;;  %v1946_v14 = vld [vmem:[#allocation2 + $0x90] sm:$0xff] }
 0x1f9   : > { %2570 = vst [vmem:[%s3941_s3] sm:$0xff] %v2569_v25   ;;  %v1976_v2 = vadd.f32 %v3841_v34, %v1937_v43  ;;  %2646 = vst [vmem:[%s3941_s3 + $0x8] sm:$0xff] %v2574_v51   ;;  %v2005_v6 = vmax.f32 %v1973_v41, 0.0  ;;  %v2006_v3 = vmax.f32 %v1974_v60, 0.0  ;;  %v1977_v20 = vadd.f32 %v3841_v34, %v1938_v44  ;;  %v1947_v32 = vld [vmem:[#allocation2 + $0x70] sm:$0xff]  ;;  %v1948_v0 = vld [vmem:[#allocation2 + $0xc0] sm:$0xff] }
 0x1fa   : > { %v2584_v29 = vpack.c.bf16 %v2003_v55, %v2002_v31  ;;  %2647 = vst [vmem:[%s3941_s3 + $0x10] sm:$0xff] %v2579_v47   ;;  %v2007_v62 = vmax.f32 %v1975_v37, 0.0  ;;  %v1978_v5 = vadd.f32 %v3841_v34, %v1939_v40  ;;  %v1979_v9 = vadd.f32 %v3841_v34, %v1940_v19  ;;  %v1949_v61 = vld [vmem:[#allocation2 + $0xa8] sm:$0xff]  ;;  %v1950_v48 = vld [vmem:[#allocation2 + $0xd0] sm:$0xff]  ;;  %v1953_v39 = vld [vmem:[#allocation2 + $0xa0] sm:$0xff] }
 0x1fb   : > { %v2008_v46 = vmax.f32 %v1976_v2, 0.0  ;;  %v2589_v36 = vpack.c.bf16 %v2005_v6, %v2004_v11  ;;  %v2009_v42 = vmax.f32 %v1977_v20, 0.0  ;;  %v1980_v63 = vadd.f32 %v3841_v34, %v1941_v7  ;;  %v1951_v28 = vld [vmem:[#allocation2 + $0x10] sm:$0xff]  ;;  %v1952_v1 = vld [vmem:[#allocation2 + $0x28] sm:$0xff]  ;;  %v1954_v22 = vld [vmem:[#allocation2 + $0xf8] sm:$0xff] }
 0x1fc   : > { %2648 = vst [vmem:[%s3941_s3 + $0x18] sm:$0xff] %v2584_v29   ;;  %v1981_v4 = vadd.f32 %v3841_v34, %v1942_v15  ;;  %v2594_v21 = vpack.c.bf16 %v2007_v62, %v2006_v3  ;;  %v2010_v50 = vmax.f32 %v1978_v5, 0.0  ;;  %v2011_v23 = vmax.f32 %v1979_v9, 0.0  ;;  %v1955_v31 = vld [vmem:[#allocation2 + $0x20] sm:$0xff]  ;;  %v1956_v53 = vld [vmem:[#allocation2 + $0x98] sm:$0xff] }
 0x1fd   : > { %v1982_v38 = vadd.f32 %v3841_v34, %v1943_v58  ;;  %2649 = vst [vmem:[%s3941_s3 + $0x20] sm:$0xff] %v2589_v36   ;;  %v2599_v35 = vpack.c.bf16 %v2009_v42, %v2008_v46  ;;  %v2012_v12 = vmax.f32 %v1980_v63, 0.0  ;;  %v1983_v57 = vadd.f32 %v3841_v34, %v1944_v59 }
 0x1fe   : > { %v2013_v13 = vmax.f32 %v1981_v4, 0.0  ;;  %2650 = vst [vmem:[%s3941_s3 + $0x28] sm:$0xff] %v2594_v21   ;;  %v2604_v16 = vpack.c.bf16 %v2011_v23, %v2010_v50  ;;  %v1984_v52 = vadd.f32 %v3841_v34, %v1945_v54  ;;  %v1985_v56 = vadd.f32 %v3841_v34, %v1946_v14 }
 0x1ff   : > { %v2014_v27 = vmax.f32 %v1982_v38, 0.0  ;;  %2651 = vst [vmem:[%s3941_s3 + $0x30] sm:$0xff] %v2599_v35   ;;  %v2015_v49 = vmax.f32 %v1983_v57, 0.0  ;;  %v1986_v30 = vadd.f32 %v3841_v34, %v1947_v32  ;;  %v1987_v17 = vadd.f32 %v3841_v34, %v1948_v0 }
 0x200   : > { %v2609_v45 = vpack.c.bf16 %v2013_v13, %v2012_v12  ;;  %2652 = vst [vmem:[%s3941_s3 + $0x38] sm:$0xff] %v2604_v16   ;;  %v2016_v33 = vmax.f32 %v1984_v52, 0.0  ;;  %v2017_v24 = vmax.f32 %v1985_v56, 0.0  ;;  %v1988_v18 = vadd.f32 %v3841_v34, %v1949_v61 }
 0x201   : > { %v1989_v10 = vadd.f32 %v3841_v34, %v1950_v48  ;;  %v2614_v26 = vpack.c.bf16 %v2015_v49, %v2014_v27  ;;  %v2018_v43 = vmax.f32 %v1986_v30, 0.0  ;;  %v2019_v25 = vmax.f32 %v1987_v17, 0.0 }
 0x202   : > { %2653 = vst [vmem:[%s3941_s3 + $0x40] sm:$0xff] %v2609_v45   ;;  %v1990_v8 = vadd.f32 %v3841_v34, %v1951_v28  ;;  %v2619_v44 = vpack.c.bf16 %v2017_v24, %v2016_v33  ;;  %v2020_v51 = vmax.f32 %v1988_v18, 0.0  ;;  %v1991_v41 = vadd.f32 %v3841_v34, %v1952_v1 }
 0x203   : > { %v2021_v55 = vmax.f32 %v1989_v10, 0.0  ;;  %2654 = vst [vmem:[%s3941_s3 + $0x48] sm:$0xff] %v2614_v26   ;;  %v2624_v60 = vpack.c.bf16 %v2019_v25, %v2018_v43  ;;  %v1992_v19 = vadd.f32 %v3841_v34, %v1953_v39  ;;  %v1993_v47 = vadd.f32 %v3841_v34, %v1954_v22 }
 0x204   : > { %v2022_v40 = vmax.f32 %v1990_v8, 0.0  ;;  %2655 = vst [vmem:[%s3941_s3 + $0x50] sm:$0xff] %v2619_v44   ;;  %v2023_v37 = vmax.f32 %v1991_v41, 0.0  ;;  %v1994_v2 = vadd.f32 %v3841_v34, %v1955_v31  ;;  %v1995_v7 = vadd.f32 %v3841_v34, %v1956_v53 }
 0x205   : > { %v2629_v11 = vpack.c.bf16 %v2021_v55, %v2020_v51  ;;  %2656 = vst [vmem:[%s3941_s3 + $0x58] sm:$0xff] %v2624_v60   ;;  %v2024_v15 = vmax.f32 %v1992_v19, 0.0  ;;  %v2025_v29 = vmax.f32 %v1993_v47, 0.0 }
 0x206   : > { %v2634_v6 = vpack.c.bf16 %v2023_v37, %v2022_v40  ;;  %v2026_v3 = vmax.f32 %v1994_v2, 0.0  ;;  %v2027_v20 = vmax.f32 %v1995_v7, 0.0 }
 0x207   : > { %2657 = vst [vmem:[%s3941_s3 + $0x60] sm:$0xff] %v2629_v11   ;;  %v2639_v58 = vpack.c.bf16 %v2025_v29, %v2024_v15 }
 0x208   : > { %2658 = vst [vmem:[%s3941_s3 + $0x68] sm:$0xff] %v2634_v6   ;;  %v2644_v62 = vpack.c.bf16 %v2027_v20, %v2026_v3 }
 0x209   : > { %2659 = vst [vmem:[%s3941_s3 + $0x70] sm:$0xff] %v2639_v58  }
 0x20a   : > { %2660 = vst [vmem:[%s3941_s3 + $0x78] sm:$0xff] %v2644_v62  }
 0x20b PF: > { %s13_s16 = sadd.s32 1, %s3206_s16   ;;  %s3988_s12 = smov %s3194_s13 }
 0x20c   : > { %p10_p12 = scmp.ge.s32.totalorder %s13_s16, 7   ;;  %s3989_s13 = smov %s3264_s20 }
 0x20d   : > { %s3990_s14 = smov %s3202_s15  ;;  %s3991_s15 = smov %s3993_s17 }
 0x20e   :  { %12 = sbr.rel (!%p10_p12) target bundleno = 3 (0x3), region = 113 }

// kernel: forward.22
= control target key start
LH: loop header
LB: loop body
LE: loop exit
PB: predicated region body
PF: predicated region fallthrough
CT: control target
= control target key end

     0   :  { %s736_s15 = smov 0   ;;  %s738_s16 = smov 0   ;;  %s900_s0 = inlined_call_operand.vmem [shape: bf16[2,6,6,128], index: 0, kind: input, shape index: {}]   ;;  %s901_s1 = inlined_call_operand.vmem [shape: bf16[2,6,5,128], index: 1, kind: input, shape index: {}]   ;;  %s902_s2 = inlined_call_operand.vmem [shape: bf16[2,5,6,128], index: 2, kind: input, shape index: {}]   ;;  %s903_s3 = inlined_call_operand.vmem [shape: bf16[2,5,5,128], index: 3, kind: input, shape index: {}]   ;;  %s904_s4 = inlined_call_operand.vmem [shape: bf16[2,5,5,128], index: 4, kind: output, shape index: {}]  }
   0x1   :  { %s740_s17 = smov 0  }
   0x2 LB: > { %s26_s18 = sadd.s32 1, %s705_s16  ;;  %p653_p0 = scmp.ge.s32.totalorder %s709_s17, 1  ;;  %s709_s17 = sphi %s740_s17, %s14_s17   ;;  %s705_s16 = sphi %s738_s16, %s908_s16   ;;  %s701_s15 = sphi %s736_s15, %s907_s15  }
   0x3   : > { %p28_p1 = scmp.ge.s32.totalorder %s26_s18, 2  ;;  %p226_p2 = scmp.lt.s32.totalorder %s709_s17, 3 }
   0x5   : > { %s910_s18 = smov (%p28_p1, %s26_s18), 0  ;;  %p227_p3 = pnand %p653_p0, %p226_p2 }
   0x6   : > { %p282_p4 = scmp.lt.s32.totalorder (!%p227_p3), %s701_s15, 1 }
   0x7   : > { %230 = sbr.rel (%p227_p3) target bundleno = 55 (0x37), region = 36 }
   0xc   : > { %s912_s15 = smov (!%p282_p4, %s701_s15), 1  ;;  %vm494_vm0 = vcmask 1042432   ;;  %vm495_vm1 = vsmask.f32 2304 }
   0xd   : > { %s661_s19 = smul.u32 24, %s912_s15  ;;  %vm859_vm2 = vmand %vm494_vm0, %vm495_vm1 }
   0xe   : > { %s754_s20 = smul.u32 20, %s912_s15 }
   0xf   : > { %s759_s23 = scalar_lea.vmem %s900_s0, %s661_s19  ;;  %s764_s26 = scalar_lea.vmem %s901_s1, %s661_s19 }
  0x10   : > { %s770_s29 = scalar_lea.vmem %s902_s2, %s754_s20  ;;  %v322_v0 = vld [vmem:[%s759_s23] sm:$0x7]  ;;  %v774_v1 = vld [vmem:[%s759_s23 + $0x4] sm:$0x7]  ;;  %v795_v19 = vld [vmem:[%s759_s23 + $0x8] sm:$0x7]  ;;  %s805_s6 = scalar_lea.vmem %s903_s3, %s754_s20 }
  0x11   : > { %v328_v2 = vld [vmem:[%s764_s26] sm:$0x7]  ;;  %v778_v3 = vld [vmem:[%s764_s26 + $0x4] sm:$0x7]  ;;  %v350_v8 = vshrl.u32 %v322_v0, 16  ;;  %v353_v9 = vshll.u32 %v322_v0, 16  ;;  %s850_s9 = scalar_lea.vmem %s904_s4, %s754_s20 }
  0x12   : > { %v781_v4 = vld [vmem:[%s770_s29] sm:$0x7]  ;;  %v784_v5 = vld [vmem:[%s770_s29 + $0x4] sm:$0x7]  ;;  %v344_v6 = vmax.bf16 %v328_v2, %v322_v0  ;;  %v345_v7 = vmax.bf16 %v778_v3, %v774_v1  ;;  %v359_v10 = vshrl.u32 %v774_v1, 16  ;;  %v362_v11 = vshll.u32 %v774_v1, 16 }
  0x13   : > { %v415_v12 = vshrl.u32 %v781_v4, 16  ;;  %v418_v13 = vshll.u32 %v781_v4, 16  ;;  %v424_v14 = vshrl.u32 %v784_v5, 16  ;;  %v352_v15 = vrot.slane %v350_v8, 4  ;;  %v798_v23 = vld [vmem:[%s764_s26 + $0x8] sm:$0x7] }
  0x14   : > { %v355_v16 = vrot.slane %v353_v9, 5  ;;  %v361_v17 = vrot.slane %v359_v10, 4  ;;  %v427_v18 = vshll.u32 %v784_v5, 16  ;;  %v364_v20 = vrot.slane %v362_v11, 5  ;;  %v808_v26 = vld [vmem:[%s770_s29 + $0x8] sm:$0x7] }
  0x15   : > { %v417_v21 = vrot.slane %v415_v12, 4  ;;  %v420_v22 = vrot.slane %v418_v13, 5  ;;  %v368_v24 = vshrl.u32 %v795_v19, 16  ;;  %v346_v27 = vmax.bf16 %v798_v23, %v795_v19  ;;  %v814_v34 = vld [vmem:[%s759_s23 + $0xc] sm:$0x7] }
  0x16   : > { %v356_v25 = vor.u32 %v355_v16, %v352_v15  ;;  %v371_v28 = vshll.u32 %v795_v19, 16  ;;  %v426_v29 = vrot.slane %v424_v14, 4  ;;  %v365_v30 = vor.u32 %v364_v20, %v361_v17  ;;  %v819_v39 = vld [vmem:[%s764_s26 + $0xc] sm:$0x7]  ;;  %v339_v40 = vld [vmem:[%s805_s6] sm:$0x7] }
  0x17   : > { %v421_v31 = vor.u32 %v420_v22, %v417_v21  ;;  %v370_v32 = vrot.slane %v368_v24, 4  ;;  %v429_v33 = vrot.slane %v427_v18, 5  ;;  %v433_v37 = vshrl.u32 %v808_v26, 16  ;;  %v340_v46 = vld [vmem:[%s805_s6 + $0x4] sm:$0x7] }
  0x18   : > { %v357_v35 = vrot.slane %v356_v25, 4  ;;  %v373_v36 = vrot.slane %v371_v28, 5  ;;  %v436_v38 = vshll.u32 %v808_v26, 16  ;;  %v822_v41 = vrot.slane %v365_v30, 4  ;;  %v337_v48 = vld [vmem:[%s770_s29 + $0xc] sm:$0x7] }
  0x19   : > { %v422_v42 = vrot.slane %v421_v31, 4  ;;  %v430_v43 = vor.u32 %v429_v33, %v426_v29  ;;  %v347_v44 = vmax.bf16 %v819_v39, %v814_v34  ;;  %v377_v49 = vshrl.u32 %v814_v34, 16  ;;  %v832_v55 = vld [vmem:[%s764_s26 + $0x10] sm:$0x7]  ;;  %v342_v28 = vld [vmem:[%s805_s6 + $0xc] sm:$0x7] }
  0x1a   : > { %v399_v45 = vmax.bf16 %v357_v35, %v344_v6  ;;  %v374_v47 = vor.u32 %v373_v36, %v370_v32  ;;  %v380_v50 = vshll.u32 %v814_v34, 16  ;;  %v400_v51 = vmax.bf16 %v822_v41, %v345_v7  ;;  %v836_v60 = vld [vmem:[%s759_s23 + $0x10] sm:$0x7]  ;;  %v341_v7 = vld [vmem:[%s805_s6 + $0x8] sm:$0x7] }
  0x1b   : > { %v431_v52 = vrot.slane %v430_v43, 4  ;;  %v435_v53 = vrot.slane %v433_v37, 4  ;;  %v438_v54 = vrot.slane %v436_v38, 5  ;;  %v379_v58 = vrot.slane %v377_v49, 4  ;;  %v338_v11 = vld [vmem:[%s770_s29 + $0x10] sm:$0x7] }
  0x1c   : > { %v404_v56 = vmax.bf16 %v399_v45, %v781_v4  ;;  %v375_v57 = vrot.slane %v374_v47, 4  ;;  %v382_v59 = vrot.slane %v380_v50, 5  ;;  %v405_v61 = vmax.bf16 %v400_v51, %v784_v5  ;;  %v327_v32 = vld [vmem:[%s759_s23 + $0x14] sm:$0x7]  ;;  %v497_v38 = vld [vmem:[%s850_s9] sm:$0x7] }
  0x1d   : > { %v439_v62 = vor.u32 %v438_v54, %v435_v53  ;;  %v442_v63 = vshrl.u32 %v337_v48, 16  ;;  %v445_v0 = vshll.u32 %v337_v48, 16  ;;  %v348_v9 = vmax.bf16 %v832_v55, %v836_v60  ;;  %v343_v54 = vld [vmem:[%s805_s6 + $0x10] sm:$0x7] }
  0x1e   : > { %v409_v2 = vmax.bf16 %v404_v56, %v339_v40  ;;  %v401_v6 = vmax.bf16 %v375_v57, %v346_v27  ;;  %v383_v8 = vor.u32 %v382_v59, %v379_v58  ;;  %v410_v4 = vmax.bf16 %v405_v61, %v340_v46  ;;  %v503_v56 = vld [vmem:[%s850_s9 + $0x8] sm:$0x7] }
  0x1f   : > { %v440_v10 = vrot.slane %v439_v62, 4  ;;  %v386_v12 = vshrl.u32 %v836_v60, 16  ;;  %v389_v13 = vshll.u32 %v836_v60, 16  ;;  %v444_v16 = vrot.slane %v442_v63, 4 }
  0x20   : > { %v464_v5 = vmax.bf16 %v422_v42, %v409_v2  ;;  %v406_v14 = vmax.bf16 %v401_v6, %v808_v26  ;;  %v384_v15 = vrot.slane %v383_v8, 4  ;;  %v465_v17 = vmax.bf16 %v431_v52, %v410_v4  ;;  %v506_v6 = vld [vmem:[%s850_s9 + $0xc] sm:$0x7] }
  0x21   : > { %v388_v18 = vrot.slane %v386_v12, 4  ;;  %v391_v20 = vrot.slane %v389_v13, 5  ;;  %v447_v21 = vrot.slane %v445_v0, 5  ;;  %v451_v27 = vshrl.u32 %v338_v11, 16  ;;  %v509_v12 = vld [vmem:[%s850_s9 + $0x10] sm:$0x7] }
  0x22   : > { %v469_v22 = vmax.bf16 %v464_v5, %v774_v1  ;;  %v402_v24 = vmax.bf16 %v384_v15, %v347_v44  ;;  %v411_v25 = vmax.bf16 %v406_v14, %v341_v7  ;;  %v470_v26 = vmax.bf16 %v465_v17, %v795_v19 }
  0x23   : > { %v392_v29 = vor.u32 %v391_v20, %v388_v18  ;;  %v448_v30 = vor.u32 %v447_v21, %v444_v16  ;;  %v454_v31 = vshll.u32 %v338_v11, 16  ;;  %v453_v37 = vrot.slane %v451_v27, 4 }
  0x24   : > { %v474_v33 = vmax.bf16 %v469_v22, %v778_v3  ;;  %v407_v35 = vmax.bf16 %v402_v24, %v337_v48  ;;  %v466_v36 = vmax.bf16 %v440_v10, %v411_v25  ;;  %v475_v19 = vmax.bf16 %v470_v26, %v798_v23  ;;  %v500_v3 = vld [vmem:[%s850_s9 + $0x4] sm:$0x7] }
  0x25   : > { %v393_v40 = vrot.slane %v392_v29, 4  ;;  %v449_v42 = vrot.slane %v448_v30, 4  ;;  %v456_v43 = vrot.slane %v454_v31, 5  ;;  %v480_v47 = vshrl.u32 %v327_v32, 16 }
  0x26   : > { %v489_v44 = vmax.bf16 %v474_v33, %v822_v41  ;;  %v471_v45 = vmax.bf16 %v466_v36, %v814_v34  ;;  %v412_v46 = vmax.bf16 %v407_v35, %v342_v28  ;;  %v490_v48 = vmax.bf16 %v475_v19, %v375_v57 }
  0x27   : > { %v403_v49 = vmax.bf16 %v393_v40, %v348_v9  ;;  %v457_v50 = vor.u32 %v456_v43, %v453_v37  ;;  %v483_v51 = vshll.u32 %v327_v32, 16  ;;  %v482_v41 = vrot.slane %v480_v47, 4  ;;  %v333_v9 = vld [vmem:[%s764_s26 + $0x14] sm:$0x7] }
  0x28   : > { %v498_v23 = vsel %vm859_vm2, %v489_v44, %v497_v38  ;;  %v476_v52 = vmax.bf16 %v471_v45, %v819_v39  ;;  %v467_v53 = vmax.bf16 %v449_v42, %v412_v46  ;;  %v501_v34 = vsel %vm859_vm2, %v490_v48, %v500_v3 }
  0x29   : > { %499 = vst [vmem:[%s850_s9] sm:$0x7] %v498_v23  ;;  %v408_v57 = vmax.bf16 %v403_v49, %v338_v11  ;;  %v458_v58 = vrot.slane %v457_v50, 4  ;;  %v485_v59 = vrot.slane %v483_v51, 5  ;;  %502 = vst [vmem:[%s850_s9 + $0x4] sm:$0x7] %v501_v34 }
  0x2a   : > { %v491_v61 = vmax.bf16 %v476_v52, %v384_v15  ;;  %v472_v39 = vmax.bf16 %v467_v53, %v836_v60 }
  0x2b   : > { %v413_v62 = vmax.bf16 %v408_v57, %v343_v54  ;;  %v486_v63 = vor.u32 %v485_v59, %v482_v41 }
  0x2c   : > { %v504_v0 = vsel %vm859_vm2, %v491_v61, %v503_v56  ;;  %v477_v2 = vmax.bf16 %v472_v39, %v832_v55 }
  0x2d   : > { %505 = vst [vmem:[%s850_s9 + $0x8] sm:$0x7] %v504_v0  ;;  %v468_v7 = vmax.bf16 %v458_v58, %v413_v62  ;;  %v487_v10 = vrot.slane %v486_v63, 4 }
  0x2e   : > { %v492_v8 = vmax.bf16 %v477_v2, %v393_v40 }
  0x2f   : > { %v473_v4 = vmax.bf16 %v468_v7, %v327_v32 }
  0x30   : > { %v507_v11 = vsel %vm859_vm2, %v492_v8, %v506_v6 }
  0x31   : > { %508 = vst [vmem:[%s850_s9 + $0xc] sm:$0x7] %v507_v11  ;;  %v478_v60 = vmax.bf16 %v473_v4, %v333_v9 }
  0x33   : > { %v493_v13 = vmax.bf16 %v487_v10, %v478_v60 }
  0x35   : > { %v510_v5 = vsel %vm859_vm2, %v493_v13, %v509_v12 }
  0x36   : > { %511 = vst [vmem:[%s850_s9 + $0x10] sm:$0x7] %v510_v5 }
  0x37 PF: > { %s14_s17 = sadd.s32 1, %s709_s17   ;;  %s907_s15 = smov %s705_s16 }
  0x38   : > { %p11_p5 = scmp.ge.s32.totalorder %s14_s17, 4   ;;  %s908_s16 = smov %s910_s18 }
  0x3a   :  { %13 = sbr.rel (!%p11_p5) target bundleno = 2 (0x2), region = 75 }

// kernel: forward.23
= control target key start
LH: loop header
LB: loop body
LE: loop exit
PB: predicated region body
PF: predicated region fallthrough
CT: control target
= control target key end

     0   :  { %s1268_s12 = smov 0   ;;  %s1270_s13 = smov 0   ;;  %s1408_s0 = inlined_call_operand.vmem [shape: bf16[64,1152], index: 0, kind: input, shape index: {}]   ;;  %s1409_s1 = inlined_call_operand.vmem [shape: bf16[1152,128], index: 1, kind: input, shape index: {}]   ;;  %s1410_s2 = inlined_call_operand.vmem [shape: f32[1,128], index: 2, kind: input, shape index: {}]   ;;  %s1411_s3 = inlined_call_operand.vmem [shape: bf16[64,128], index: 3, kind: output, shape index: {}]  }
   0x1   :  { %s1272_s14 = smov 0   ;;  %s1274_s15 = smov 0  }
   0x2   :  { %s1276_s16 = smov 0  }
   0x3 LB: > { %s25_s17 = sadd.s32 1, %s1241_s15  ;;  %p48_p1 = scmp.ne.s32.totalorder %s1233_s13, %s1229_s12  ;;  %s1245_s16 = sphi %s1276_s16, %s13_s16   ;;  %s1241_s15 = sphi %s1274_s15, %s1415_s15   ;;  %s1237_s14 = sphi %s1272_s14, %s1414_s14   ;;  %s1233_s13 = sphi %s1270_s13, %s1413_s13   ;;  %s1229_s12 = sphi %s1268_s12, %s1412_s12  }
   0x4   : > { %p26_p0 = scmp.ge.s32.totalorder %s25_s17, 3  ;;  %p49_p2 = scmp.eq.s32.totalorder %s1245_s16, 0 }
   0x5   : > { %s41_s19 = sadd.s32 1, %s1233_s13  ;;  %p945_p5 = scmp.ge.s32.totalorder %s1245_s16, 3 }
   0x6   : > { %s1417_s17 = smov (%p26_p0, %s25_s17), 0  ;;  %p50_p3 = por %p49_p2, %p48_p1 }
   0x7   : > { %s37_s18 = ssub.s32 %s1241_s15, %s1417_s17  ;;  %162 = sbr.rel (%p945_p5) target bundleno = 26 (0x1a), region = 20 }
   0x8   : > { %p39_p4 = scmp.eq.s32.totalorder %s37_s18, 0 }
   0xa   : > { %s1303_s20 = scalar_select %p39_p4, %s1233_s13, %s41_s19  }
   0xc   : > { %165 = sbr.rel (!%p50_p3) target bundleno = 26 (0x1a), region = 24  ;;  %s167_s21 = sand.u32 (%p50_p3), 1, %s1233_s13  }
   0xd   : > { %s1016_s22 = smul.u32 (%p50_p3), 12, %s1241_s15 }
   0xe   : > { %s1124_s23 = smul.u32 (%p50_p3), 96, %s167_s21 }
   0xf   : > { %s1311_s26 = scalar_lea.vmem (%p50_p3), %s1408_s0, %s1016_s22 }
  0x10   : > { %v190_v0 = vld [vmem:[%s1311_s26] sm:$0xff] (%p50_p3)  ;;  %v194_v2 = vld [vmem:[%s1311_s26 + $0x48] sm:$0xff] (%p50_p3)  ;;  %s169_s27 = scalar_lea.vmem (%p50_p3), [#allocation3], %s1124_s23  ;;  %v198_v4 = vld [vmem:[%s1311_s26 + $0x90] sm:$0xff] (%p50_p3) }
  0x11   : > { %v192_v1 = vld [vmem:[%s1311_s26 + $0x24] sm:$0xff]  ;;  %191 = vst [vmem:[%s169_s27] sm:$0xff] %v190_v0  ;;  %195 = vst [vmem:[%s169_s27 + $0x18] sm:$0xff] %v194_v2  ;;  %v196_v3 = vld [vmem:[%s1311_s26 + $0x6c] sm:$0xff] }
  0x12   : > { %193 = vst [vmem:[%s169_s27 + $0xc] sm:$0xff] %v192_v1  ;;  %v200_v5 = vld [vmem:[%s1311_s26 + $0xb4] sm:$0xff]  ;;  %197 = vst [vmem:[%s169_s27 + $0x24] sm:$0xff] %v196_v3  ;;  %v204_v7 = vld [vmem:[%s1311_s26 + $0xfc] sm:$0xff] }
  0x13   : > { %199 = vst [vmem:[%s169_s27 + $0x30] sm:$0xff] %v198_v4  ;;  %201 = vst [vmem:[%s169_s27 + $0x3c] sm:$0xff] %v200_v5  ;;  %v202_v6 = vld [vmem:[%s1311_s26 + $0xd8] sm:$0xff]  ;;  %v947_v8 = vld [vmem:[%s1311_s26 + $0x8] sm:$0xf] }
  0x14   : > { %203 = vst [vmem:[%s169_s27 + $0x48] sm:$0xff] %v202_v6  ;;  %205 = vst [vmem:[%s169_s27 + $0x54] sm:$0xff] %v204_v7  ;;  %v949_v9 = vld [vmem:[%s1311_s26 + $0x2c] sm:$0xf]  ;;  %v951_v10 = vld [vmem:[%s1311_s26 + $0x50] sm:$0xf] }
  0x15   : > { %948 = vst [vmem:[%s169_s27 + $0x8] sm:$0xf] %v947_v8  ;;  %v953_v11 = vld [vmem:[%s1311_s26 + $0x74] sm:$0xf]  ;;  %950 = vst [vmem:[%s169_s27 + $0x14] sm:$0xf] %v949_v9 }
  0x16   : > { %952 = vst [vmem:[%s169_s27 + $0x20] sm:$0xf] %v951_v10  ;;  %954 = vst [vmem:[%s169_s27 + $0x2c] sm:$0xf] %v953_v11  ;;  %v955_v12 = vld [vmem:[%s1311_s26 + $0x98] sm:$0xf] }
  0x17   : > { %v957_v13 = vld [vmem:[%s1311_s26 + $0xbc] sm:$0xf]  ;;  %v959_v14 = vld [vmem:[%s1311_s26 + $0xe0] sm:$0xf]  ;;  %956 = vst [vmem:[%s169_s27 + $0x38] sm:$0xf] %v955_v12 }
  0x18   : > { %958 = vst [vmem:[%s169_s27 + $0x44] sm:$0xf] %v957_v13  ;;  %960 = vst [vmem:[%s169_s27 + $0x50] sm:$0xf] %v959_v14  ;;  %v961_v15 = vld [vmem:[%s1311_s26 + $0x104] sm:$0xf] }
  0x19   : > { %962 = vst [vmem:[%s169_s27 + $0x5c] sm:$0xf] %v961_v15 }
  0x1a PF: > { %p963_p6 = scmp.ge.s32.totalorder %s1245_s16, 1  ;;  %p246_p7 = scmp.lt.s32.totalorder %s1245_s16, 4 }
  0x1c   : > { %p247_p8 = pnand %p963_p6, %p246_p7 }
  0x1d   : > { %s253_s28 = sand.u32 (!%p247_p8), 1, %s1229_s12   ;;  %s292_s29 = smul.u32 (!%p247_p8), 48, %s1237_s14 }
  0x1e   : > { %250 = sbr.rel (%p247_p8) target bundleno = 322 (0x142), region = 54  ;;  %p965_p10 = scmp.ne.s32.totalorder (!%p247_p8), %s1237_s14, 0 }
  0x1f   : > { %s1125_s30 = smul.u32 (!%p247_p8), 96, %s253_s28  ;;  %p293_p9 = scmp.lt.s32.totalorder (!%p247_p8), %s292_s29, 143 }
  0x21   : > { %s1338_s8 = scalar_lea.vmem (!%p247_p8), [#allocation3], %s1125_s30 }
  0x23   : > { %s1419_s29 = smov (!%p293_p9, %s292_s29), 143  ;;  %317 = sbr.rel (%p965_p10) target bundleno = 45 (0x2d), region = 62 }
  0x24   : > { %s964_s4 = sshll.u32 %s1419_s29, 2 }
  0x25   : > { %s1336_s7 = scalar_lea.vmem %s1409_s1, %s964_s4 }
  0x28   : > { %v1247_v16 = vmov 0.0  }
  0x29   : > { %318 = vst [vmem:[#allocation2 + $0x30] sm:$0xff] %v1247_v16  ;;  %319 = vst [vmem:[#allocation2] sm:$0xff] %v1247_v16 }
  0x2a   : > { %320 = vst [vmem:[#allocation2 + $0x18] sm:$0xff] %v1247_v16  ;;  %321 = vst [vmem:[#allocation2 + $0x10] sm:$0xff] %v1247_v16 }
  0x2b   : > { %322 = vst [vmem:[#allocation2 + $0x8] sm:$0xff] %v1247_v16  ;;  %323 = vst [vmem:[#allocation2 + $0x20] sm:$0xff] %v1247_v16 }
  0x2c   : > { %324 = vst [vmem:[#allocation2 + $0x28] sm:$0xff] %v1247_v16  ;;  %325 = vst [vmem:[#allocation2 + $0x38] sm:$0xff] %v1247_v16 }
  0x2d PF: > { %v1167_v17 = vld [vmem:[%s1336_s7 + $0x78] sm:$0xff]   ;;  %v1170_v20 = vld [vmem:[%s1336_s7 + $0x70] sm:$0xff]   ;;  %v1173_v23 = vld [vmem:[%s1336_s7 + $0x68] sm:$0xff]   ;;  %p1002_p11 = scmp.ne.s32.totalorder %s1237_s14, 2 }
  0x2e   : > { %v1168_v18 = vld [vmem:[%s1336_s7 + $0x38] sm:$0xff]   ;;  %1048 = vmatprep.subr.bf16.mxu0 %v1167_v17  ;;  %v1171_v21 = vld [vmem:[%s1336_s7 + $0x30] sm:$0xff]   ;;  %v1174_v24 = vld [vmem:[%s1336_s7 + $0x28] sm:$0xff]  }
  0x2f   : > { %v1169_v19 = vld [vmem:[%s1336_s7 + $0xb8] sm:$0xff]   ;;  %1049 = vmatpush3.bf16.msra.mxu0 %v1168_v18  ;;  %v1172_v22 = vld [vmem:[%s1336_s7 + $0xb0] sm:$0xff]   ;;  %v1175_v25 = vld [vmem:[%s1336_s7 + $0xa8] sm:$0xff]  }
  0x30   : > { %1100 = vmatprep.subr.bf16.mxu1 %v1169_v19  ;;  %1050 = vmatprep.subr.bf16.mxu0 %v1170_v20  ;;  %v1176_v26 = vld [vmem:[%s1336_s7 + $0x60] sm:$0xff]   ;;  %v1179_v29 = vld [vmem:[%s1336_s7 + $0x58] sm:$0xff]   ;;  %v1182_v32 = vld [vmem:[%s1336_s7 + $0x50] sm:$0xff]  }
  0x31   : > { %1101 = vmatpush3.bf16.msra.mxu1 %v1169_v19  ;;  %v1177_v27 = vld [vmem:[%s1336_s7 + $0x20] sm:$0xff]   ;;  %v1181_v30 = vld [vmem:[%s1336_s7 + $0x98] sm:$0xff]   ;;  %v1184_v33 = vld [vmem:[%s1336_s7 + $0x90] sm:$0xff]  }
  0x32   : > { %1102 = vmatprep.subr.bf16.mxu1 %v1172_v22  ;;  %v1178_v28 = vld [vmem:[%s1336_s7 + $0xa0] sm:$0xff]   ;;  %v1180_v31 = vld [vmem:[%s1336_s7 + $0x18] sm:$0xff]   ;;  %v1183_v34 = vld [vmem:[%s1336_s7 + $0x10] sm:$0xff]  }
  0x33   : > { %1051 = vmatpush3.bf16.msra.mxu0 %v1171_v21  ;;  %v1185_v35 = vld [vmem:[%s1336_s7 + $0x48] sm:$0xff]   ;;  %v1188_v38 = vld [vmem:[%s1336_s7 + $0x40] sm:$0xff]   ;;  %v1203_v49 = vld [vmem:[%s1338_s8 + $0x50] ss:$12 sps:$4 sm:$0xff]  }
  0x34   : > { %1052 = vmatprep.subr.bf16.mxu0 %v1173_v23  ;;  %v1186_v36 = vld [vmem:[%s1336_s7 + $0x8] sm:$0xff]   ;;  %v1190_v39 = vld [vmem:[%s1336_s7 + $0x80] sm:$0xff]   ;;  %v1201_v50 = vld [vmem:[%s1338_s8 + $0x30] ss:$12 sps:$4 sm:$0xff]  }
  0x35   : > { %1103 = vmatpush3.bf16.msra.mxu1 %v1172_v22  ;;  %v1187_v37 = vld [vmem:[%s1336_s7 + $0x88] sm:$0xff]   ;;  %v1193_v40 = vld [vmem:[%s1338_s8 + $0x4] ss:$12 sps:$4 sm:$0xff]   ;;  %v1199_v48 = vld [vmem:[%s1338_s8 + $0x34] ss:$12 sps:$4 sm:$0xff]  }
  0x36   : > { %1104 = vmatprep.subr.bf16.mxu1 %v1175_v25  ;;  %v1194_v41 = vld [vmem:[%s1338_s8 + $0x8] ss:$12 sps:$4 sm:$0xff]   ;;  %v1189_v42 = vld [vmem:[%s1336_s7] sm:$0xff]   ;;  %638 = vmatprep.mubr.bf16.mxu0 %v1193_v40  ;;  %v1204_v51 = vld [vmem:[%s1338_s8 + $0x4c] ss:$12 sps:$4 sm:$0xff]  }
  0x37   : > { %1053 = vmatpush3.bf16.msra.mxu0 %v1174_v24  ;;  %1116 = vmatprep.mubr.bf16.mxu1 %v1194_v41  ;;  %v1191_v43 = vld [vmem:[%s1338_s8] ss:$12 sps:$4 sm:$0xff]   ;;  %v1196_v44 = vld [vmem:[%s1338_s8 + $0x1c] ss:$12 sps:$4 sm:$0xff]   ;;  %v1202_v46 = vld [vmem:[%s1338_s8 + $0x38] ss:$12 sps:$4 sm:$0xff]  }
  0x38   : > { %1054 = vmatprep.subr.bf16.mxu0 %v1176_v26  ;;  %v1195_v45 = vld [vmem:[%s1338_s8 + $0x20] ss:$12 sps:$4 sm:$0xff]   ;;  %v1198_v47 = vld [vmem:[%s1338_s8 + $0x18] ss:$12 sps:$4 sm:$0xff]   ;;  %v1206_v52 = vld [vmem:[%s1338_s8 + $0x48] ss:$12 sps:$4 sm:$0xff]  }
  0x39   : > { %1105 = vmatpush3.bf16.msra.mxu1 %v1175_v25  ;;  %v326_v58 = vld [vmem:[#allocation2 + $0x30] sm:$0xff]  ;;  %v327_v2 = vld [vmem:[#allocation2] sm:$0xff]  ;;  %v328_v9 = vld [vmem:[#allocation2 + $0x18] sm:$0xff] }
  0x3a   : > { %1106 = vmatprep.subr.bf16.mxu1 %v1178_v28  ;;  %v329_v16 = vld [vmem:[#allocation2 + $0x10] sm:$0xff]  ;;  %v330_v24 = vld [vmem:[#allocation2 + $0x8] sm:$0xff] }
  0x3b   : > { %1055 = vmatpush3.bf16.msra.mxu0 %v1177_v27 }
  0x3c   : > { %1056 = vmatprep.subr.bf16.mxu0 %v1179_v29 }
  0x3d   : > { %1107 = vmatpush3.bf16.msra.mxu1 %v1178_v28 }
  0x3e   : > { %1108 = vmatprep.subr.bf16.mxu1 %v1181_v30 }
  0x3f   : > { %1057 = vmatpush3.bf16.msra.mxu0 %v1180_v31  ;;  %v331_v31 = vld [vmem:[#allocation2 + $0x20] sm:$0xff] }
  0x40   : > { %1058 = vmatprep.subr.bf16.mxu0 %v1182_v32 }
  0x41   : > { %1109 = vmatpush3.bf16.msra.mxu1 %v1181_v30 }
  0x42   : > { %1110 = vmatprep.subr.bf16.mxu1 %v1184_v33 }
  0x43   : > { %1059 = vmatpush3.bf16.msra.mxu0 %v1183_v34 }
  0x44   : > { %1060 = vmatprep.subr.bf16.mxu0 %v1185_v35 }
  0x45   : > { %1111 = vmatpush3.bf16.msra.mxu1 %v1184_v33 }
  0x46   : > { %1112 = vmatprep.subr.bf16.mxu1 %v1187_v37 }
  0x47   : > { %1061 = vmatpush3.bf16.msra.mxu0 %v1186_v36  ;;  %v332_v36 = vld [vmem:[#allocation2 + $0x28] sm:$0xff] }
  0x48   : > { %1062 = vmatprep.subr.bf16.mxu0 %v1188_v38 }
  0x49   : > { %1113 = vmatpush3.bf16.msra.mxu1 %v1187_v37 }
  0x4a   : > { %1114 = vmatprep.subr.bf16.mxu1 %v1190_v39 }
  0x4b   : > { %1063 = vmatpush3.bf16.msra.mxu0 %v1189_v42  ;;  %v333_v42 = vld [vmem:[#allocation2 + $0x38] sm:$0xff] }
  0x4d   : > { %1115 = vmatpush3.bf16.msra.mxu1 %v1190_v39 }
  0x4e   : > { %639 = vmatmul.mubr.bf16.vlgmr.msra.gmra.mxu0 %v1191_v43 }
  0x4f   : > { %646 = vmatprep.mubr.bf16.mxu0 %v1196_v44 }
  0x50   : > { %1117 = vmatmul.mubr.bf16.vlgmr.msra.gmra.mxu1 %v1195_v45 }
  0x51   : > { %1120 = vmatprep.mubr.bf16.mxu1 %v1202_v46 }
  0x56   : > { %647 = vmatmul.mubr.bf16.gmra.mxu0 %v1198_v47 }
  0x57   : > { %654 = vmatprep.mubr.bf16.mxu0 %v1199_v48 }
  0x58   : > { %1121 = vmatmul.mubr.bf16.gmra.mxu1 %v1203_v49 }
  0x5e   : > { %655 = vmatmul.mubr.bf16.gmra.mxu0 %v1201_v50 }
  0x5f   : > { %662 = vmatprep.mubr.bf16.mxu0 %v1204_v51 }
  0x66   : > { %663 = vmatmul.mubr.bf16.gmra.mxu0 %v1206_v52 }
 0x10e   : > { %v1064_v53 = vpop.f32.mrf.mxu0 }
 0x110   : > { %v1065_v54 = vpop.f32.mrf.mxu0  ;;  %v1118_v55 = vpop.f32.mrf.mxu1 }
 0x111   : > { %v1066_v56 = vadd.f32 %v1065_v54, %v1064_v53 }
 0x112   : > { %v1067_v57 = vpop.f32.mrf.mxu0  ;;  %v705_v59 = vpop.f32.mrf.mxu1 }
 0x113   : > { %v706_v60 = vadd.f32 %v1066_v56, %v705_v59 }
 0x114   : > { %v1068_v61 = vpop.f32.mrf.mxu0  ;;  %v1119_v62 = vpop.f32.mrf.mxu1 }
 0x115   : > { %v736_v63 = vadd.f32 %v706_v60, %v326_v58  ;;  %v1069_v0 = vadd.f32 %v1068_v61, %v1067_v57 }
 0x116   : > { %v1070_v1 = vpop.f32.mrf.mxu0  ;;  %v708_v3 = vpop.f32.mrf.mxu1 }
 0x117   : > { %744 = vst [vmem:[#allocation2 + $0x30] sm:$0xff] %v736_v63  ;;  %v709_v4 = vadd.f32 %v1069_v0, %v708_v3 }
 0x118   : > { %v1071_v5 = vpop.f32.mrf.mxu0  ;;  %v1122_v6 = vpop.f32.mrf.mxu1 }
 0x119   : > { %v737_v7 = vadd.f32 %v709_v4, %v327_v2  ;;  %v1072_v8 = vadd.f32 %v1071_v5, %v1070_v1 }
 0x11a   : > { %v1073_v10 = vpop.f32.mrf.mxu0  ;;  %v721_v13 = vpop.f32.mrf.mxu1 }
 0x11b   : > { %745 = vst [vmem:[#allocation2] sm:$0xff] %v737_v7  ;;  %v714_v11 = vadd.f32 %v1118_v55, %v1072_v8 }
 0x11c   : > { %v1074_v12 = vpop.f32.mrf.mxu0  ;;  %v1123_v20 = vpop.f32.mrf.mxu1 }
 0x11d   : > { %v738_v14 = vadd.f32 %v714_v11, %v328_v9  ;;  %v1075_v15 = vadd.f32 %v1074_v12, %v1073_v10 }
 0x11e   : > { %v1076_v17 = vpop.f32.mrf.mxu0  ;;  %v724_v27 = vpop.f32.mrf.mxu1 }
 0x11f   : > { %746 = vst [vmem:[#allocation2 + $0x18] sm:$0xff] %v738_v14  ;;  %v717_v18 = vadd.f32 %v1119_v62, %v1075_v15 }
 0x120   : > { %v1077_v19 = vpop.f32.mrf.mxu0 }
 0x121   : > { %v739_v21 = vadd.f32 %v717_v18, %v329_v16  ;;  %v1078_v22 = vadd.f32 %v1077_v19, %v1076_v17 }
 0x122   : > { %v1079_v23 = vpop.f32.mrf.mxu0 }
 0x123   : > { %747 = vst [vmem:[#allocation2 + $0x10] sm:$0xff] %v739_v21  ;;  %v722_v25 = vadd.f32 %v1078_v22, %v721_v13 }
 0x124   : > { %v1080_v26 = vpop.f32.mrf.mxu0 }
 0x125   : > { %v740_v28 = vadd.f32 %v722_v25, %v330_v24  ;;  %v1081_v29 = vadd.f32 %v1080_v26, %v1079_v23 }
 0x126   : > { %v1082_v30 = vpop.f32.mrf.mxu0 }
 0x127   : > { %748 = vst [vmem:[#allocation2 + $0x8] sm:$0xff] %v740_v28  ;;  %v725_v32 = vadd.f32 %v1081_v29, %v724_v27 }
 0x128   : > { %v1083_v33 = vpop.f32.mrf.mxu0 }
 0x129   : > { %v741_v34 = vadd.f32 %v725_v32, %v331_v31  ;;  %v1084_v35 = vadd.f32 %v1083_v33, %v1082_v30 }
 0x12a   : > { %v1085_v37 = vpop.f32.mrf.mxu0 }
 0x12b   : > { %749 = vst [vmem:[#allocation2 + $0x20] sm:$0xff] %v741_v34  ;;  %v730_v38 = vadd.f32 %v1122_v6, %v1084_v35 }
 0x12c   : > { %v1086_v39 = vpop.f32.mrf.mxu0 }
 0x12d   : > { %v742_v40 = vadd.f32 %v730_v38, %v332_v36  ;;  %v1087_v41 = vadd.f32 %v1086_v39, %v1085_v37 }
 0x12f   : > { %750 = vst [vmem:[#allocation2 + $0x28] sm:$0xff] %v742_v40  ;;  %v733_v43 = vadd.f32 %v1123_v20, %v1087_v41  ;;  %755 = sbr.rel (%p1002_p11) target bundleno = 322 (0x142), region = 66 }
 0x131   : > { %v743_v44 = vadd.f32 %v733_v43, %v333_v42 }
 0x133   : > { %751 = vst [vmem:[#allocation2 + $0x38] sm:$0xff] %v743_v44 }
 0x134   : > { %v756_v45 = vld [vmem:[#allocation2 + $0x30] sm:$0xff]  ;;  %v757_v46 = vld [vmem:[#allocation2] sm:$0xff]  ;;  %v758_v50 = vld [vmem:[#allocation2 + $0x18] sm:$0xff] }
 0x135   : > { %v1003_v47 = vld [vmem:[%s1410_s2] ss:$0 sm:$0xff]  ;;  %v759_v51 = vld [vmem:[#allocation2 + $0x10] sm:$0xff]  ;;  %v760_v52 = vld [vmem:[#allocation2 + $0x8] sm:$0xff] }
 0x136   : > { %v771_v48 = vadd.f32 %v1003_v47, %v756_v45  ;;  %v772_v49 = vadd.f32 %v1003_v47, %v757_v46  ;;  %v773_v53 = vadd.f32 %v1003_v47, %v758_v50  ;;  %v774_v54 = vadd.f32 %v1003_v47, %v759_v51  ;;  %v761_v55 = vld [vmem:[#allocation2 + $0x20] sm:$0xff]  ;;  %v762_v57 = vld [vmem:[#allocation2 + $0x28] sm:$0xff] }
 0x137   : > { %v775_v56 = vadd.f32 %v1003_v47, %v760_v52  ;;  %v776_v61 = vadd.f32 %v1003_v47, %v761_v55  ;;  %v777_v62 = vadd.f32 %v1003_v47, %v762_v57 }
 0x138   : > { %v779_v59 = vmax.f32 %v771_v48, 0.0  ;;  %v780_v60 = vmax.f32 %v772_v49, 0.0  ;;  %v781_v63 = vmax.f32 %v773_v53, 0.0  ;;  %v782_v0 = vmax.f32 %v774_v54, 0.0 }
 0x139   : > { %v783_v1 = vmax.f32 %v775_v56, 0.0  ;;  %v784_v4 = vmax.f32 %v776_v61, 0.0  ;;  %v785_v5 = vmax.f32 %v777_v62, 0.0 }
 0x13a   : > { %v763_v58 = vld [vmem:[#allocation2 + $0x38] sm:$0xff]  ;;  %v1028_v3 = vpack.c.bf16 %v780_v60, %v779_v59  ;;  %v1033_v6 = vpack.c.bf16 %v782_v0, %v781_v63 }
 0x13b   : > { %v778_v2 = vadd.f32 %v1003_v47, %v763_v58  ;;  %v1038_v8 = vpack.c.bf16 %v784_v4, %v783_v1 }
 0x13c   : > { %1029 = vst [vmem:[%s1411_s3] sm:$0xff] %v1028_v3   ;;  %1045 = vst [vmem:[%s1411_s3 + $0x8] sm:$0xff] %v1033_v6  }
 0x13d   : > { %v786_v7 = vmax.f32 %v778_v2, 0.0  ;;  %1046 = vst [vmem:[%s1411_s3 + $0x10] sm:$0xff] %v1038_v8  }
 0x13f   : > { %v1043_v9 = vpack.c.bf16 %v786_v7, %v785_v5 }
 0x141   : > { %1047 = vst [vmem:[%s1411_s3 + $0x18] sm:$0xff] %v1043_v9  }
 0x142 PF: > { %s13_s16 = sadd.s32 1, %s1245_s16   ;;  %s1412_s12 = smov %s1233_s13 }
 0x143   : > { %p10_p12 = scmp.ge.s32.totalorder %s13_s16, 5   ;;  %s1413_s13 = smov %s1303_s20 }
 0x144   : > { %s1414_s14 = smov %s1241_s15  ;;  %s1415_s15 = smov %s1417_s17 }
 0x145   :  { %12 = sbr.rel (!%p10_p12) target bundleno = 3 (0x3), region = 113 }

// kernel: forward.26
= control target key start
LH: loop header
LB: loop body
LE: loop exit
PB: predicated region body
PF: predicated region fallthrough
CT: control target
= control target key end

     0   :  { %s605_s15 = smov 0   ;;  %s607_s16 = smov 0   ;;  %s662_s0 = inlined_call_operand.vmem [shape: bf16[2,3,3,128], index: 0, kind: input, shape index: {}]   ;;  %s663_s1 = inlined_call_operand.vmem [shape: bf16[2,3,2,128], index: 1, kind: input, shape index: {}]   ;;  %s664_s2 = inlined_call_operand.vmem [shape: bf16[2,2,3,128], index: 2, kind: input, shape index: {}]   ;;  %s665_s3 = inlined_call_operand.vmem [shape: bf16[2,2,2,128], index: 3, kind: input, shape index: {}]   ;;  %s666_s4 = inlined_call_operand.vmem [shape: bf16[2,2,2,128], index: 4, kind: output, shape index: {}]  }
   0x1   :  { %s609_s17 = smov 0  }
   0x2 LB: > { %s26_s18 = sadd.s32 1, %s574_s16  ;;  %p521_p0 = scmp.ge.s32.totalorder %s578_s17, 1  ;;  %s578_s17 = sphi %s609_s17, %s14_s17   ;;  %s574_s16 = sphi %s607_s16, %s668_s16   ;;  %s570_s15 = sphi %s605_s15, %s667_s15  }
   0x3   : > { %p28_p1 = scmp.ge.s32.totalorder %s26_s18, 2  ;;  %p224_p2 = scmp.lt.s32.totalorder %s578_s17, 3 }
   0x5   : > { %s670_s18 = smov (%p28_p1, %s26_s18), 0  ;;  %p225_p3 = pnand %p521_p0, %p224_p2 }
   0x6   : > { %p277_p4 = scmp.lt.s32.totalorder (!%p225_p3), %s570_s15, 1 }
   0x7   : > { %228 = sbr.rel (%p225_p3) target bundleno = 41 (0x29), region = 36 }
   0xc   : > { %s672_s15 = smov (!%p277_p4, %s570_s15), 1 }
   0xd   : > { %s530_s19 = smul.u32 6, %s672_s15  ;;  %s529_s20 = sshll.u32 %s672_s15, 2 }
   0xe   : > { %s531_s21 = smul.u32 3, %s672_s15  ;;  %s299_s24 = scalar_lea.vmem %s664_s2, %s529_s20 }
   0xf   : > { %s284_s27 = scalar_lea.vmem %s662_s0, %s530_s19  ;;  %v320_v0 = vld [vmem:[%s299_s24] sm:$0x3]  ;;  %v321_v5 = vld [vmem:[%s299_s24 + $0x2] sm:$0x3]  ;;  %s525_s5 = sshll.u32 %s672_s15, 1 }
  0x10   : > { %s637_s30 = scalar_lea.vmem %s663_s1, %s531_s21  ;;  %v314_v1 = vld [vmem:[%s284_s27] sm:$0x3]  ;;  %v315_v2 = vld [vmem:[%s284_s27 + $0x2] sm:$0x3]  ;;  %v353_v3 = vshrl.u32 %v320_v0, 16  ;;  %v356_v4 = vshll.u32 %v320_v0, 16  ;;  %s306_s8 = scalar_lea.vmem %s665_s3, %s525_s5 }
  0x11   : > { %v317_v6 = vld [vmem:[%s637_s30] sm:$0x1]  ;;  %v327_v7 = vshrl.u32 %v314_v1, 16  ;;  %v330_v8 = vshll.u32 %v314_v1, 16  ;;  %v318_v9 = vld [vmem:[%s637_s30 + $0x1] sm:$0x1]  ;;  %s313_s11 = scalar_lea.vmem %s666_s4, %s525_s5 }
  0x12   : > { %v336_v10 = vshrl.u32 %v315_v2, 16  ;;  %v339_v11 = vshll.u32 %v315_v2, 16  ;;  %v355_v12 = vrot.slane %v353_v3, 6  ;;  %v358_v13 = vrot.slane %v356_v4, 7  ;;  %v316_v18 = vld [vmem:[%s284_s27 + $0x4] sm:$0x3] }
  0x13   : > { %v329_v14 = vrot.slane %v327_v7, 6  ;;  %v332_v15 = vrot.slane %v330_v8, 7  ;;  %v362_v16 = vshrl.u32 %v321_v5, 16  ;;  %v365_v17 = vshll.u32 %v321_v5, 16  ;;  %v322_v34 = vld [vmem:[%s306_s8] sm:$0x1] }
  0x14   : > { %v338_v19 = vrot.slane %v336_v10, 6  ;;  %v341_v20 = vrot.slane %v339_v11, 7  ;;  %v324_v21 = vmax.bf16 %v317_v6, %v314_v1  ;;  %v325_v25 = vmax.bf16 %v318_v9, %v315_v2  ;;  %v323_v38 = vld [vmem:[%s306_s8 + $0x1] sm:$0x1]  ;;  %v319_v49 = vld [vmem:[%s637_s30 + $0x2] sm:$0x1] }
  0x15   : > { %v333_v22 = vor.u32 %v332_v15, %v329_v14  ;;  %v364_v23 = vrot.slane %v362_v16, 6  ;;  %v367_v24 = vrot.slane %v365_v17, 7  ;;  %v379_v27 = vshrl.u32 %v316_v18, 16 }
  0x16   : > { %v342_v26 = vor.u32 %v341_v20, %v338_v19  ;;  %v382_v28 = vshll.u32 %v316_v18, 16  ;;  %v359_v30 = vor.u32 %v358_v13, %v355_v12 }
  0x17   : > { %v334_v29 = vrot.slane %v333_v22, 2  ;;  %v368_v32 = vor.u32 %v367_v24, %v364_v23  ;;  %v381_v36 = vrot.slane %v379_v27, 6 }
  0x18   : > { %v343_v31 = vrot.slane %v342_v26, 2  ;;  %v384_v37 = vrot.slane %v382_v28, 7  ;;  %v360_v40 = vrot.slane %v359_v30, 2 }
  0x19   : > { %v346_v33 = vmax.bf16 %v334_v29, %v324_v21  ;;  %v369_v42 = vrot.slane %v368_v32, 2 }
  0x1a   : > { %v347_v35 = vmax.bf16 %v343_v31, %v325_v25  ;;  %v385_v45 = vor.u32 %v384_v37, %v381_v36 }
  0x1b   : > { %v348_v39 = vmax.bf16 %v346_v33, %v320_v0 }
  0x1c   : > { %v349_v41 = vmax.bf16 %v347_v35, %v321_v5  ;;  %v386_v51 = vrot.slane %v385_v45, 2 }
  0x1d   : > { %v350_v43 = vmax.bf16 %v348_v39, %v322_v34 }
  0x1e   : > { %v351_v44 = vmax.bf16 %v349_v41, %v323_v38 }
  0x1f   : > { %v372_v46 = vmax.bf16 %v360_v40, %v350_v43 }
  0x20   : > { %v373_v47 = vmax.bf16 %v369_v42, %v351_v44 }
  0x21   : > { %v374_v48 = vmax.bf16 %v372_v46, %v315_v2 }
  0x22   : > { %v375_v50 = vmax.bf16 %v373_v47, %v316_v18 }
  0x23   : > { %v376_v52 = vmax.bf16 %v374_v48, %v318_v9 }
  0x24   : > { %v377_v53 = vmax.bf16 %v375_v50, %v319_v49 }
  0x25   : > { %v388_v54 = vmax.bf16 %v376_v52, %v343_v31 }
  0x26   : > { %v389_v55 = vmax.bf16 %v386_v51, %v377_v53 }
  0x27   : > { %390 = vst [vmem:[%s313_s11] sm:$0x1] %v388_v54 }
  0x28   : > { %391 = vst [vmem:[%s313_s11 + $0x1] sm:$0x1] %v389_v55 }
  0x29 PF: > { %s14_s17 = sadd.s32 1, %s578_s17   ;;  %s667_s15 = smov %s574_s16 }
  0x2a   : > { %p11_p5 = scmp.ge.s32.totalorder %s14_s17, 4   ;;  %s668_s16 = smov %s670_s18 }
  0x2c   :  { %13 = sbr.rel (!%p11_p5) target bundleno = 2 (0x2), region = 75 }

// kernel: forward.35
= control target key start
LH: loop header
LB: loop body
LE: loop exit
PB: predicated region body
PF: predicated region fallthrough
CT: control target
= control target key end

     0   :  { %s2069_s12 = smov 0   ;;  %s2071_s13 = smov 0   ;;  %s2532_s0 = inlined_call_operand.vmem [shape: bf16[16,1024], index: 0, kind: input, shape index: {}]   ;;  %s2533_s1 = inlined_call_operand.vmem [shape: bf16[1024,256], index: 1, kind: input, shape index: {}]   ;;  %s2534_s2 = inlined_call_operand.vmem [shape: f32[1,256], index: 2, kind: input, shape index: {}]   ;;  %s2535_s3 = inlined_call_operand.vmem [shape: bf16[16,256], index: 3, kind: output, shape index: {}]  }
   0x1   :  { %s2073_s14 = smov 0   ;;  %s2075_s15 = smov 0  }
   0x2   :  { %s2077_s16 = smov 0  }
   0x3 LB: > { %s28_s17 = sadd.s32 1, %s2043_s15  ;;  %s1721_s18 = sadd.s32 4294967295, %s2047_s16   ;;  %s2047_s16 = sphi %s2077_s16, %s13_s16   ;;  %s2043_s15 = sphi %s2075_s15, %s2540_s15   ;;  %s2039_s14 = sphi %s2073_s14, %s2539_s14   ;;  %s2035_s13 = sphi %s2071_s13, %s2538_s13   ;;  %s2031_s12 = sphi %s2069_s12, %s2537_s12  }
   0x4   : > { %p30_p0 = scmp.ge.s32.totalorder %s28_s17, 2  ;;  %p76_p1 = scmp.ne.s32.totalorder %s2035_s13, %s2031_s12 }
   0x5   : > { %p77_p2 = scmp.eq.s32.totalorder %s2047_s16, 0  ;;  %p134_p4 = scmp.eq.s32.totalorder %s1721_s18, 1 }
   0x6   : > { %s2542_s17 = smov (%p30_p0, %s28_s17), 0  ;;  %s69_s20 = sadd.s32 1, %s2035_s13 }
   0x7   : > { %p78_p3 = por %p77_p2, %p76_p1  ;;  %s65_s19 = ssub.s32 %s2043_s15, %s2542_s17 }
   0x8   : > { %p67_p5 = scmp.eq.s32.totalorder %s65_s19, 0  ;;  %p2104_p6 = por %p134_p4, %p76_p1 }
   0x9   : > { %p1725_p7 = scmp.ge.s32.totalorder %s2047_s16, 2 }
   0xa   : > { %s2109_s22 = scalar_select %p67_p5, %s2035_s13, %s69_s20  }
   0xb   : > { %171 = sbr.rel (%p1725_p7) target bundleno = 105 (0x69), region = 20 }
  0x10   : > { %174 = sbr.rel (!%p78_p3) target bundleno = 105 (0x69), region = 24  ;;  %s176_s23 = sand.u32 (%p78_p3), 1, %s2035_s13  }
  0x11   : > { %s1727_s24 = sshll.u32 (%p78_p3), %s2043_s15, 2  ;;  %s1726_s25 = sshll.u32 (%p78_p3), %s176_s23, 9 }
  0x12   : > { %s2117_s28 = scalar_lea.vmem (%p78_p3), %s2533_s1, %s1727_s24  ;;  %s2121_s29 = scalar_lea.vmem (%p78_p3), [#allocation3], %s1726_s25 }
  0x13   : > { %v200_v0 = vld [vmem:[%s2117_s28] sm:$0xf] (%p78_p3)  ;;  %v202_v1 = vld [vmem:[%s2117_s28 + $0x8] sm:$0xf] (%p78_p3)  ;;  %v204_v2 = vld [vmem:[%s2117_s28 + $0x10] sm:$0xf] (%p78_p3) }
  0x14   : > { %201 = vst [vmem:[%s2121_s29] sm:$0xf] (%p78_p3), %v200_v0  ;;  %203 = vst [vmem:[%s2121_s29 + $0x4] sm:$0xf] (%p78_p3), %v202_v1  ;;  %v206_v3 = vld [vmem:[%s2117_s28 + $0x18] sm:$0xf] (%p78_p3) }
  0x15   : > { %v208_v4 = vld [vmem:[%s2117_s28 + $0x20] sm:$0xf]  ;;  %205 = vst [vmem:[%s2121_s29 + $0x8] sm:$0xf] %v204_v2  ;;  %207 = vst [vmem:[%s2121_s29 + $0xc] sm:$0xf] %v206_v3 }
  0x16   : > { %209 = vst [vmem:[%s2121_s29 + $0x10] sm:$0xf] %v208_v4  ;;  %v210_v5 = vld [vmem:[%s2117_s28 + $0x28] sm:$0xf]  ;;  %v212_v6 = vld [vmem:[%s2117_s28 + $0x30] sm:$0xf] }
  0x17   : > { %v214_v7 = vld [vmem:[%s2117_s28 + $0x38] sm:$0xf]  ;;  %211 = vst [vmem:[%s2121_s29 + $0x14] sm:$0xf] %v210_v5  ;;  %213 = vst [vmem:[%s2121_s29 + $0x18] sm:$0xf] %v212_v6 }
  0x18   : > { %215 = vst [vmem:[%s2121_s29 + $0x1c] sm:$0xf] %v214_v7  ;;  %v216_v8 = vld [vmem:[%s2117_s28 + $0x40] sm:$0xf]  ;;  %v218_v9 = vld [vmem:[%s2117_s28 + $0x48] sm:$0xf] }
  0x19   : > { %v220_v10 = vld [vmem:[%s2117_s28 + $0x50] sm:$0xf]  ;;  %217 = vst [vmem:[%s2121_s29 + $0x20] sm:$0xf] %v216_v8  ;;  %219 = vst [vmem:[%s2121_s29 + $0x24] sm:$0xf] %v218_v9 }
  0x1a   : > { %221 = vst [vmem:[%s2121_s29 + $0x28] sm:$0xf] %v220_v10  ;;  %v222_v11 = vld [vmem:[%s2117_s28 + $0x58] sm:$0xf]  ;;  %v224_v12 = vld [vmem:[%s2117_s28 + $0x60] sm:$0xf] }
  0x1b   : > { %v226_v13 = vld [vmem:[%s2117_s28 + $0x68] sm:$0xf]  ;;  %223 = vst [vmem:[%s2121_s29 + $0x2c] sm:$0xf] %v222_v11  ;;  %225 = vst [vmem:[%s2121_s29 + $0x30] sm:$0xf] %v224_v12 }
  0x1c   : > { %227 = vst [vmem:[%s2121_s29 + $0x34] sm:$0xf] %v226_v13  ;;  %v228_v14 = vld [vmem:[%s2117_s28 + $0x70] sm:$0xf]  ;;  %v230_v15 = vld [vmem:[%s2117_s28 + $0x78] sm:$0xf] }
  0x1d   : > { %v232_v16 = vld [vmem:[%s2117_s28 + $0x80] sm:$0xf]  ;;  %229 = vst [vmem:[%s2121_s29 + $0x38] sm:$0xf] %v228_v14  ;;  %231 = vst [vmem:[%s2121_s29 + $0x3c] sm:$0xf] %v230_v15 }
  0x1e   : > { %233 = vst [vmem:[%s2121_s29 + $0x40] sm:$0xf] %v232_v16  ;;  %v234_v17 = vld [vmem:[%s2117_s28 + $0x88] sm:$0xf]  ;;  %v236_v18 = vld [vmem:[%s2117_s28 + $0x90] sm:$0xf] }
  0x1f   : > { %v238_v19 = vld [vmem:[%s2117_s28 + $0x98] sm:$0xf]  ;;  %235 = vst [vmem:[%s2121_s29 + $0x44] sm:$0xf] %v234_v17  ;;  %237 = vst [vmem:[%s2121_s29 + $0x48] sm:$0xf] %v236_v18 }
  0x20   : > { %239 = vst [vmem:[%s2121_s29 + $0x4c] sm:$0xf] %v238_v19  ;;  %v240_v20 = vld [vmem:[%s2117_s28 + $0xa0] sm:$0xf]  ;;  %v242_v21 = vld [vmem:[%s2117_s28 + $0xa8] sm:$0xf] }
  0x21   : > { %v244_v22 = vld [vmem:[%s2117_s28 + $0xb0] sm:$0xf]  ;;  %241 = vst [vmem:[%s2121_s29 + $0x50] sm:$0xf] %v240_v20  ;;  %243 = vst [vmem:[%s2121_s29 + $0x54] sm:$0xf] %v242_v21 }
  0x22   : > { %245 = vst [vmem:[%s2121_s29 + $0x58] sm:$0xf] %v244_v22  ;;  %v246_v23 = vld [vmem:[%s2117_s28 + $0xb8] sm:$0xf]  ;;  %v248_v24 = vld [vmem:[%s2117_s28 + $0xc0] sm:$0xf] }
  0x23   : > { %v250_v25 = vld [vmem:[%s2117_s28 + $0xc8] sm:$0xf]  ;;  %247 = vst [vmem:[%s2121_s29 + $0x5c] sm:$0xf] %v246_v23  ;;  %249 = vst [vmem:[%s2121_s29 + $0x60] sm:$0xf] %v248_v24 }
  0x24   : > { %251 = vst [vmem:[%s2121_s29 + $0x64] sm:$0xf] %v250_v25  ;;  %v252_v26 = vld [vmem:[%s2117_s28 + $0xd0] sm:$0xf]  ;;  %v254_v27 = vld [vmem:[%s2117_s28 + $0xd8] sm:$0xf] }
  0x25   : > { %v256_v28 = vld [vmem:[%s2117_s28 + $0xe0] sm:$0xf]  ;;  %253 = vst [vmem:[%s2121_s29 + $0x68] sm:$0xf] %v252_v26  ;;  %255 = vst [vmem:[%s2121_s29 + $0x6c] sm:$0xf] %v254_v27 }
  0x26   : > { %257 = vst [vmem:[%s2121_s29 + $0x70] sm:$0xf] %v256_v28  ;;  %v258_v29 = vld [vmem:[%s2117_s28 + $0xe8] sm:$0xf]  ;;  %v260_v30 = vld [vmem:[%s2117_s28 + $0xf0] sm:$0xf] }
  0x27   : > { %v262_v31 = vld [vmem:[%s2117_s28 + $0xf8] sm:$0xf]  ;;  %259 = vst [vmem:[%s2121_s29 + $0x74] sm:$0xf] %v258_v29  ;;  %261 = vst [vmem:[%s2121_s29 + $0x78] sm:$0xf] %v260_v30 }
  0x28   : > { %263 = vst [vmem:[%s2121_s29 + $0x7c] sm:$0xf] %v262_v31  ;;  %v264_v32 = vld [vmem:[%s2117_s28 + $0x100] sm:$0xf]  ;;  %v266_v33 = vld [vmem:[%s2117_s28 + $0x108] sm:$0xf] }
  0x29   : > { %v268_v34 = vld [vmem:[%s2117_s28 + $0x110] sm:$0xf]  ;;  %265 = vst [vmem:[%s2121_s29 + $0x80] sm:$0xf] %v264_v32  ;;  %267 = vst [vmem:[%s2121_s29 + $0x84] sm:$0xf] %v266_v33 }
  0x2a   : > { %269 = vst [vmem:[%s2121_s29 + $0x88] sm:$0xf] %v268_v34  ;;  %v270_v35 = vld [vmem:[%s2117_s28 + $0x118] sm:$0xf]  ;;  %v272_v36 = vld [vmem:[%s2117_s28 + $0x120] sm:$0xf] }
  0x2b   : > { %v274_v37 = vld [vmem:[%s2117_s28 + $0x128] sm:$0xf]  ;;  %271 = vst [vmem:[%s2121_s29 + $0x8c] sm:$0xf] %v270_v35  ;;  %273 = vst [vmem:[%s2121_s29 + $0x90] sm:$0xf] %v272_v36 }
  0x2c   : > { %275 = vst [vmem:[%s2121_s29 + $0x94] sm:$0xf] %v274_v37  ;;  %v276_v38 = vld [vmem:[%s2117_s28 + $0x130] sm:$0xf]  ;;  %v278_v39 = vld [vmem:[%s2117_s28 + $0x138] sm:$0xf] }
  0x2d   : > { %v280_v40 = vld [vmem:[%s2117_s28 + $0x140] sm:$0xf]  ;;  %277 = vst [vmem:[%s2121_s29 + $0x98] sm:$0xf] %v276_v38  ;;  %279 = vst [vmem:[%s2121_s29 + $0x9c] sm:$0xf] %v278_v39 }
  0x2e   : > { %281 = vst [vmem:[%s2121_s29 + $0xa0] sm:$0xf] %v280_v40  ;;  %v282_v41 = vld [vmem:[%s2117_s28 + $0x148] sm:$0xf]  ;;  %v284_v42 = vld [vmem:[%s2117_s28 + $0x150] sm:$0xf] }
  0x2f   : > { %v286_v43 = vld [vmem:[%s2117_s28 + $0x158] sm:$0xf]  ;;  %283 = vst [vmem:[%s2121_s29 + $0xa4] sm:$0xf] %v282_v41  ;;  %285 = vst [vmem:[%s2121_s29 + $0xa8] sm:$0xf] %v284_v42 }
  0x30   : > { %287 = vst [vmem:[%s2121_s29 + $0xac] sm:$0xf] %v286_v43  ;;  %v288_v44 = vld [vmem:[%s2117_s28 + $0x160] sm:$0xf]  ;;  %v290_v45 = vld [vmem:[%s2117_s28 + $0x168] sm:$0xf] }
  0x31   : > { %v292_v46 = vld [vmem:[%s2117_s28 + $0x170] sm:$0xf]  ;;  %289 = vst [vmem:[%s2121_s29 + $0xb0] sm:$0xf] %v288_v44  ;;  %291 = vst [vmem:[%s2121_s29 + $0xb4] sm:$0xf] %v290_v45 }
  0x32   : > { %293 = vst [vmem:[%s2121_s29 + $0xb8] sm:$0xf] %v292_v46  ;;  %v294_v47 = vld [vmem:[%s2117_s28 + $0x178] sm:$0xf]  ;;  %v296_v48 = vld [vmem:[%s2117_s28 + $0x180] sm:$0xf] }
  0x33   : > { %v298_v49 = vld [vmem:[%s2117_s28 + $0x188] sm:$0xf]  ;;  %295 = vst [vmem:[%s2121_s29 + $0xbc] sm:$0xf] %v294_v47  ;;  %297 = vst [vmem:[%s2121_s29 + $0xc0] sm:$0xf] %v296_v48 }
  0x34   : > { %299 = vst [vmem:[%s2121_s29 + $0xc4] sm:$0xf] %v298_v49  ;;  %v300_v50 = vld [vmem:[%s2117_s28 + $0x190] sm:$0xf]  ;;  %v302_v51 = vld [vmem:[%s2117_s28 + $0x198] sm:$0xf] }
  0x35   : > { %v304_v52 = vld [vmem:[%s2117_s28 + $0x1a0] sm:$0xf]  ;;  %301 = vst [vmem:[%s2121_s29 + $0xc8] sm:$0xf] %v300_v50  ;;  %303 = vst [vmem:[%s2121_s29 + $0xcc] sm:$0xf] %v302_v51 }
  0x36   : > { %305 = vst [vmem:[%s2121_s29 + $0xd0] sm:$0xf] %v304_v52  ;;  %v306_v53 = vld [vmem:[%s2117_s28 + $0x1a8] sm:$0xf]  ;;  %v308_v54 = vld [vmem:[%s2117_s28 + $0x1b0] sm:$0xf] }
  0x37   : > { %v310_v55 = vld [vmem:[%s2117_s28 + $0x1b8] sm:$0xf]  ;;  %307 = vst [vmem:[%s2121_s29 + $0xd4] sm:$0xf] %v306_v53  ;;  %309 = vst [vmem:[%s2121_s29 + $0xd8] sm:$0xf] %v308_v54 }
  0x38   : > { %311 = vst [vmem:[%s2121_s29 + $0xdc] sm:$0xf] %v310_v55  ;;  %v312_v56 = vld [vmem:[%s2117_s28 + $0x1c0] sm:$0xf]  ;;  %v314_v57 = vld [vmem:[%s2117_s28 + $0x1c8] sm:$0xf] }
  0x39   : > { %v316_v58 = vld [vmem:[%s2117_s28 + $0x1d0] sm:$0xf]  ;;  %313 = vst [vmem:[%s2121_s29 + $0xe0] sm:$0xf] %v312_v56  ;;  %315 = vst [vmem:[%s2121_s29 + $0xe4] sm:$0xf] %v314_v57 }
  0x3a   : > { %317 = vst [vmem:[%s2121_s29 + $0xe8] sm:$0xf] %v316_v58  ;;  %v318_v59 = vld [vmem:[%s2117_s28 + $0x1d8] sm:$0xf]  ;;  %v320_v60 = vld [vmem:[%s2117_s28 + $0x1e0] sm:$0xf] }
  0x3b   : > { %v322_v61 = vld [vmem:[%s2117_s28 + $0x1e8] sm:$0xf]  ;;  %319 = vst [vmem:[%s2121_s29 + $0xec] sm:$0xf] %v318_v59  ;;  %321 = vst [vmem:[%s2121_s29 + $0xf0] sm:$0xf] %v320_v60 }
  0x3c   : > { %323 = vst [vmem:[%s2121_s29 + $0xf4] sm:$0xf] %v322_v61  ;;  %v324_v62 = vld [vmem:[%s2117_s28 + $0x1f0] sm:$0xf]  ;;  %v326_v63 = vld [vmem:[%s2117_s28 + $0x1f8] sm:$0xf] }
  0x3d   : > { %v328_v0 = vld [vmem:[%s2117_s28 + $0x200] sm:$0xf]  ;;  %325 = vst [vmem:[%s2121_s29 + $0xf8] sm:$0xf] %v324_v62  ;;  %327 = vst [vmem:[%s2121_s29 + $0xfc] sm:$0xf] %v326_v63 }
  0x3e   : > { %329 = vst [vmem:[%s2121_s29 + $0x100] sm:$0xf] %v328_v0  ;;  %v330_v1 = vld [vmem:[%s2117_s28 + $0x208] sm:$0xf]  ;;  %v332_v2 = vld [vmem:[%s2117_s28 + $0x210] sm:$0xf] }
  0x3f   : > { %v334_v3 = vld [vmem:[%s2117_s28 + $0x218] sm:$0xf]  ;;  %331 = vst [vmem:[%s2121_s29 + $0x104] sm:$0xf] %v330_v1  ;;  %333 = vst [vmem:[%s2121_s29 + $0x108] sm:$0xf] %v332_v2 }
  0x40   : > { %335 = vst [vmem:[%s2121_s29 + $0x10c] sm:$0xf] %v334_v3  ;;  %v336_v4 = vld [vmem:[%s2117_s28 + $0x220] sm:$0xf]  ;;  %v338_v5 = vld [vmem:[%s2117_s28 + $0x228] sm:$0xf] }
  0x41   : > { %v340_v6 = vld [vmem:[%s2117_s28 + $0x230] sm:$0xf]  ;;  %337 = vst [vmem:[%s2121_s29 + $0x110] sm:$0xf] %v336_v4  ;;  %339 = vst [vmem:[%s2121_s29 + $0x114] sm:$0xf] %v338_v5 }
  0x42   : > { %341 = vst [vmem:[%s2121_s29 + $0x118] sm:$0xf] %v340_v6  ;;  %v342_v7 = vld [vmem:[%s2117_s28 + $0x238] sm:$0xf]  ;;  %v344_v8 = vld [vmem:[%s2117_s28 + $0x240] sm:$0xf] }
  0x43   : > { %v346_v9 = vld [vmem:[%s2117_s28 + $0x248] sm:$0xf]  ;;  %343 = vst [vmem:[%s2121_s29 + $0x11c] sm:$0xf] %v342_v7  ;;  %345 = vst [vmem:[%s2121_s29 + $0x120] sm:$0xf] %v344_v8 }
  0x44   : > { %347 = vst [vmem:[%s2121_s29 + $0x124] sm:$0xf] %v346_v9  ;;  %v348_v10 = vld [vmem:[%s2117_s28 + $0x250] sm:$0xf]  ;;  %v350_v11 = vld [vmem:[%s2117_s28 + $0x258] sm:$0xf] }
  0x45   : > { %v352_v12 = vld [vmem:[%s2117_s28 + $0x260] sm:$0xf]  ;;  %349 = vst [vmem:[%s2121_s29 + $0x128] sm:$0xf] %v348_v10  ;;  %351 = vst [vmem:[%s2121_s29 + $0x12c] sm:$0xf] %v350_v11 }
  0x46   : > { %353 = vst [vmem:[%s2121_s29 + $0x130] sm:$0xf] %v352_v12  ;;  %v354_v13 = vld [vmem:[%s2117_s28 + $0x268] sm:$0xf]  ;;  %v356_v14 = vld [vmem:[%s2117_s28 + $0x270] sm:$0xf] }
  0x47   : > { %v358_v15 = vld [vmem:[%s2117_s28 + $0x278] sm:$0xf]  ;;  %355 = vst [vmem:[%s2121_s29 + $0x134] sm:$0xf] %v354_v13  ;;  %357 = vst [vmem:[%s2121_s29 + $0x138] sm:$0xf] %v356_v14 }
  0x48   : > { %359 = vst [vmem:[%s2121_s29 + $0x13c] sm:$0xf] %v358_v15  ;;  %v360_v16 = vld [vmem:[%s2117_s28 + $0x280] sm:$0xf]  ;;  %v362_v17 = vld [vmem:[%s2117_s28 + $0x288] sm:$0xf] }
  0x49   : > { %v364_v18 = vld [vmem:[%s2117_s28 + $0x290] sm:$0xf]  ;;  %361 = vst [vmem:[%s2121_s29 + $0x140] sm:$0xf] %v360_v16  ;;  %363 = vst [vmem:[%s2121_s29 + $0x144] sm:$0xf] %v362_v17 }
  0x4a   : > { %365 = vst [vmem:[%s2121_s29 + $0x148] sm:$0xf] %v364_v18  ;;  %v366_v19 = vld [vmem:[%s2117_s28 + $0x298] sm:$0xf]  ;;  %v368_v20 = vld [vmem:[%s2117_s28 + $0x2a0] sm:$0xf] }
  0x4b   : > { %v370_v21 = vld [vmem:[%s2117_s28 + $0x2a8] sm:$0xf]  ;;  %367 = vst [vmem:[%s2121_s29 + $0x14c] sm:$0xf] %v366_v19  ;;  %369 = vst [vmem:[%s2121_s29 + $0x150] sm:$0xf] %v368_v20 }
  0x4c   : > { %371 = vst [vmem:[%s2121_s29 + $0x154] sm:$0xf] %v370_v21  ;;  %v372_v22 = vld [vmem:[%s2117_s28 + $0x2b0] sm:$0xf]  ;;  %v374_v23 = vld [vmem:[%s2117_s28 + $0x2b8] sm:$0xf] }
  0x4d   : > { %v376_v24 = vld [vmem:[%s2117_s28 + $0x2c0] sm:$0xf]  ;;  %373 = vst [vmem:[%s2121_s29 + $0x158] sm:$0xf] %v372_v22  ;;  %375 = vst [vmem:[%s2121_s29 + $0x15c] sm:$0xf] %v374_v23 }
  0x4e   : > { %377 = vst [vmem:[%s2121_s29 + $0x160] sm:$0xf] %v376_v24  ;;  %v378_v25 = vld [vmem:[%s2117_s28 + $0x2c8] sm:$0xf]  ;;  %v380_v26 = vld [vmem:[%s2117_s28 + $0x2d0] sm:$0xf] }
  0x4f   : > { %v382_v27 = vld [vmem:[%s2117_s28 + $0x2d8] sm:$0xf]  ;;  %379 = vst [vmem:[%s2121_s29 + $0x164] sm:$0xf] %v378_v25  ;;  %381 = vst [vmem:[%s2121_s29 + $0x168] sm:$0xf] %v380_v26 }
  0x50   : > { %383 = vst [vmem:[%s2121_s29 + $0x16c] sm:$0xf] %v382_v27  ;;  %v384_v28 = vld [vmem:[%s2117_s28 + $0x2e0] sm:$0xf]  ;;  %v386_v29 = vld [vmem:[%s2117_s28 + $0x2e8] sm:$0xf] }
  0x51   : > { %v388_v30 = vld [vmem:[%s2117_s28 + $0x2f0] sm:$0xf]  ;;  %385 = vst [vmem:[%s2121_s29 + $0x170] sm:$0xf] %v384_v28  ;;  %387 = vst [vmem:[%s2121_s29 + $0x174] sm:$0xf] %v386_v29 }
  0x52   : > { %389 = vst [vmem:[%s2121_s29 + $0x178] sm:$0xf] %v388_v30  ;;  %v390_v31 = vld [vmem:[%s2117_s28 + $0x2f8] sm:$0xf]  ;;  %v392_v32 = vld [vmem:[%s2117_s28 + $0x300] sm:$0xf] }
  0x53   : > { %v394_v33 = vld [vmem:[%s2117_s28 + $0x308] sm:$0xf]  ;;  %391 = vst [vmem:[%s2121_s29 + $0x17c] sm:$0xf] %v390_v31  ;;  %393 = vst [vmem:[%s2121_s29 + $0x180] sm:$0xf] %v392_v32 }
  0x54   : > { %395 = vst [vmem:[%s2121_s29 + $0x184] sm:$0xf] %v394_v33  ;;  %v396_v34 = vld [vmem:[%s2117_s28 + $0x310] sm:$0xf]  ;;  %v398_v35 = vld [vmem:[%s2117_s28 + $0x318] sm:$0xf] }
  0x55   : > { %v400_v36 = vld [vmem:[%s2117_s28 + $0x320] sm:$0xf]  ;;  %397 = vst [vmem:[%s2121_s29 + $0x188] sm:$0xf] %v396_v34  ;;  %399 = vst [vmem:[%s2121_s29 + $0x18c] sm:$0xf] %v398_v35 }
  0x56   : > { %401 = vst [vmem:[%s2121_s29 + $0x190] sm:$0xf] %v400_v36  ;;  %v402_v37 = vld [vmem:[%s2117_s28 + $0x328] sm:$0xf]  ;;  %v404_v38 = vld [vmem:[%s2117_s28 + $0x330] sm:$0xf] }
  0x57   : > { %v406_v39 = vld [vmem:[%s2117_s28 + $0x338] sm:$0xf]  ;;  %403 = vst [vmem:[%s2121_s29 + $0x194] sm:$0xf] %v402_v37  ;;  %405 = vst [vmem:[%s2121_s29 + $0x198] sm:$0xf] %v404_v38 }
  0x58   : > { %407 = vst [vmem:[%s2121_s29 + $0x19c] sm:$0xf] %v406_v39  ;;  %v408_v40 = vld [vmem:[%s2117_s28 + $0x340] sm:$0xf]  ;;  %v410_v41 = vld [vmem:[%s2117_s28 + $0x348] sm:$0xf] }
  0x59   : > { %v412_v42 = vld [vmem:[%s2117_s28 + $0x350] sm:$0xf]  ;;  %409 = vst [vmem:[%s2121_s29 + $0x1a0] sm:$0xf] %v408_v40  ;;  %411 = vst [vmem:[%s2121_s29 + $0x1a4] sm:$0xf] %v410_v41 }
  0x5a   : > { %413 = vst [vmem:[%s2121_s29 + $0x1a8] sm:$0xf] %v412_v42  ;;  %v414_v43 = vld [vmem:[%s2117_s28 + $0x358] sm:$0xf]  ;;  %v416_v44 = vld [vmem:[%s2117_s28 + $0x360] sm:$0xf] }
  0x5b   : > { %v418_v45 = vld [vmem:[%s2117_s28 + $0x368] sm:$0xf]  ;;  %415 = vst [vmem:[%s2121_s29 + $0x1ac] sm:$0xf] %v414_v43  ;;  %417 = vst [vmem:[%s2121_s29 + $0x1b0] sm:$0xf] %v416_v44 }
  0x5c   : > { %419 = vst [vmem:[%s2121_s29 + $0x1b4] sm:$0xf] %v418_v45  ;;  %v420_v46 = vld [vmem:[%s2117_s28 + $0x370] sm:$0xf]  ;;  %v422_v47 = vld [vmem:[%s2117_s28 + $0x378] sm:$0xf] }
  0x5d   : > { %v424_v48 = vld [vmem:[%s2117_s28 + $0x380] sm:$0xf]  ;;  %421 = vst [vmem:[%s2121_s29 + $0x1b8] sm:$0xf] %v420_v46  ;;  %423 = vst [vmem:[%s2121_s29 + $0x1bc] sm:$0xf] %v422_v47 }
  0x5e   : > { %425 = vst [vmem:[%s2121_s29 + $0x1c0] sm:$0xf] %v424_v48  ;;  %v426_v49 = vld [vmem:[%s2117_s28 + $0x388] sm:$0xf]  ;;  %v428_v50 = vld [vmem:[%s2117_s28 + $0x390] sm:$0xf] }
  0x5f   : > { %v430_v51 = vld [vmem:[%s2117_s28 + $0x398] sm:$0xf]  ;;  %427 = vst [vmem:[%s2121_s29 + $0x1c4] sm:$0xf] %v426_v49  ;;  %429 = vst [vmem:[%s2121_s29 + $0x1c8] sm:$0xf] %v428_v50 }
  0x60   : > { %431 = vst [vmem:[%s2121_s29 + $0x1cc] sm:$0xf] %v430_v51  ;;  %v432_v52 = vld [vmem:[%s2117_s28 + $0x3a0] sm:$0xf]  ;;  %v434_v53 = vld [vmem:[%s2117_s28 + $0x3a8] sm:$0xf] }
  0x61   : > { %v436_v54 = vld [vmem:[%s2117_s28 + $0x3b0] sm:$0xf]  ;;  %433 = vst [vmem:[%s2121_s29 + $0x1d0] sm:$0xf] %v432_v52  ;;  %435 = vst [vmem:[%s2121_s29 + $0x1d4] sm:$0xf] %v434_v53 }
  0x62   : > { %437 = vst [vmem:[%s2121_s29 + $0x1d8] sm:$0xf] %v436_v54  ;;  %v438_v55 = vld [vmem:[%s2117_s28 + $0x3b8] sm:$0xf]  ;;  %v440_v56 = vld [vmem:[%s2117_s28 + $0x3c0] sm:$0xf] }
  0x63   : > { %v442_v57 = vld [vmem:[%s2117_s28 + $0x3c8] sm:$0xf]  ;;  %439 = vst [vmem:[%s2121_s29 + $0x1dc] sm:$0xf] %v438_v55  ;;  %441 = vst [vmem:[%s2121_s29 + $0x1e0] sm:$0xf] %v440_v56 }
  0x64   : > { %443 = vst [vmem:[%s2121_s29 + $0x1e4] sm:$0xf] %v442_v57  ;;  %v444_v58 = vld [vmem:[%s2117_s28 + $0x3d0] sm:$0xf]  ;;  %v446_v59 = vld [vmem:[%s2117_s28 + $0x3d8] sm:$0xf] }
  0x65   : > { %v448_v60 = vld [vmem:[%s2117_s28 + $0x3e0] sm:$0xf]  ;;  %445 = vst [vmem:[%s2121_s29 + $0x1e8] sm:$0xf] %v444_v58  ;;  %447 = vst [vmem:[%s2121_s29 + $0x1ec] sm:$0xf] %v446_v59 }
  0x66   : > { %449 = vst [vmem:[%s2121_s29 + $0x1f0] sm:$0xf] %v448_v60  ;;  %v450_v61 = vld [vmem:[%s2117_s28 + $0x3e8] sm:$0xf]  ;;  %v452_v62 = vld [vmem:[%s2117_s28 + $0x3f0] sm:$0xf] }
  0x67   : > { %v454_v63 = vld [vmem:[%s2117_s28 + $0x3f8] sm:$0xf]  ;;  %451 = vst [vmem:[%s2121_s29 + $0x1f4] sm:$0xf] %v450_v61  ;;  %453 = vst [vmem:[%s2121_s29 + $0x1f8] sm:$0xf] %v452_v62 }
  0x68   : > { %455 = vst [vmem:[%s2121_s29 + $0x1fc] sm:$0xf] %v454_v63 }
  0x69 PF: > { %p1728_p8 = scmp.ge.s32.totalorder %s2047_s16, 1  ;;  %p740_p9 = scmp.lt.s32.totalorder %s2047_s16, 3 }
  0x6b   : > { %p741_p10 = pnand %p1728_p8, %p740_p9 }
  0x6c   : > { %s747_s30 = sand.u32 (!%p741_p10), 1, %s2031_s12   ;;  %p795_p11 = scmp.lt.s32.totalorder (!%p741_p10), %s2039_s14, 1 }
  0x6d   : > { %744 = sbr.rel (%p741_p10) target bundleno = 400 (0x190), region = 69  ;;  %s1729_s10 = sshll.u32 (!%p741_p10), %s747_s30, 9 }
  0x6e   : > { %s2406_s19 = scalar_lea.vmem (!%p741_p10), [#allocation3], %s1729_s10  ;;  %s1730_s8 = sshll.u32 (!%p741_p10), %s747_s30, 3 }
  0x6f   : > { %s781_s9 = scalar_lea.vmem (!%p741_p10), [#allocation4], %s1730_s8 }
  0x72   : > { %v2383_v0 = vld [vmem:[%s2532_s0] sm:$0xff]  ;;  %v2393_v2 = vld [vmem:[%s2532_s0 + $0x8] sm:$0xff]  ;;  %v1945_v6 = vld [vmem:[%s2406_s19 + $0x78] sm:$0xff]   ;;  %s796_s4 = scalar_select %p795_p11, %s2039_s14, 1 }
  0x73   : > { %v2388_v1 = vld [vmem:[%s2532_s0 + $0x20] sm:$0xff]  ;;  %v2402_v4 = vld [vmem:[%s2532_s0 + $0x28] sm:$0xff]  ;;  %v1946_v7 = vld [vmem:[%s2406_s19 + $0xf8] sm:$0xff]   ;;  %1817 = vmatprep.subr.bf16.mxu0 %v1945_v6  ;;  %s1807_s10 = sshll.u32 (%p2104_p6), %s2039_s14, 2 }
  0x74   : > { %v1732_v3 = vcombine.high %v2383_v0, %v2388_v1  ;;  %v1734_v5 = vcombine.high %v2393_v2, %v2402_v4  ;;  %v1947_v8 = vld [vmem:[%s2406_s19 + $0x38] sm:$0xff]   ;;  %1839 = vmatprep.subr.bf16.mxu1 %v1946_v7  ;;  %v1949_v10 = vld [vmem:[%s2406_s19 + $0x70] sm:$0xff]   ;;  %v1953_v14 = vld [vmem:[%s2406_s19 + $0x68] sm:$0xff]   ;;  %v1731_v42 = vcombine.low %v2383_v0, %v2388_v1  ;;  %v1733_v43 = vcombine.low %v2393_v2, %v2402_v4  ;;  %s797_s7 = scalar_lea.vmem %s2534_s2, %s796_s4 }
  0x75   : > { %v1948_v9 = vld [vmem:[%s2406_s19 + $0xb8] sm:$0xff]   ;;  %1818 = vmatpush3.bf16.msra.mxu0 %v1947_v8  ;;  %v1950_v11 = vld [vmem:[%s2406_s19 + $0xf0] sm:$0xff]   ;;  %v1954_v15 = vld [vmem:[%s2406_s19 + $0xe8] sm:$0xff]  }
  0x76   : > { %1400 = vmatprep.mubr.bf16.mxu0 %v1732_v3  ;;  %1441 = vmatprep.mubr.bf16.mxu1 %v1734_v5  ;;  %v1951_v12 = vld [vmem:[%s2406_s19 + $0x30] sm:$0xff]   ;;  %v1955_v16 = vld [vmem:[%s2406_s19 + $0x28] sm:$0xff]   ;;  %v1957_v18 = vld [vmem:[%s2406_s19 + $0x60] sm:$0xff]  }
  0x77   : > { %1840 = vmatpush3.bf16.msra.mxu1 %v1948_v9  ;;  %1819 = vmatprep.subr.bf16.mxu0 %v1949_v10  ;;  %v1952_v13 = vld [vmem:[%s2406_s19 + $0xb0] sm:$0xff]   ;;  %v1956_v17 = vld [vmem:[%s2406_s19 + $0xa8] sm:$0xff]   ;;  %v1958_v19 = vld [vmem:[%s2406_s19 + $0xe0] sm:$0xff]  }
  0x78   : > { %1841 = vmatprep.subr.bf16.mxu1 %v1950_v11  ;;  %v1959_v20 = vld [vmem:[%s2406_s19 + $0x20] sm:$0xff]   ;;  %v1961_v22 = vld [vmem:[%s2406_s19 + $0x58] sm:$0xff]   ;;  %v1965_v26 = vld [vmem:[%s2406_s19 + $0x50] sm:$0xff]  }
  0x79   : > { %1820 = vmatpush3.bf16.msra.mxu0 %v1951_v12  ;;  %v1960_v21 = vld [vmem:[%s2406_s19 + $0xa0] sm:$0xff]   ;;  %v1962_v23 = vld [vmem:[%s2406_s19 + $0xd8] sm:$0xff]   ;;  %v1966_v27 = vld [vmem:[%s2406_s19 + $0xd0] sm:$0xff]  }
  0x7a   : > { %1821 = vmatprep.subr.bf16.mxu0 %v1953_v14  ;;  %v1963_v24 = vld [vmem:[%s2406_s19 + $0x18] sm:$0xff]   ;;  %v1967_v28 = vld [vmem:[%s2406_s19 + $0x10] sm:$0xff]   ;;  %v1969_v30 = vld [vmem:[%s2406_s19 + $0x48] sm:$0xff]  }
  0x7b   : > { %1842 = vmatpush3.bf16.msra.mxu1 %v1952_v13  ;;  %v1964_v25 = vld [vmem:[%s2406_s19 + $0x98] sm:$0xff]   ;;  %v1968_v29 = vld [vmem:[%s2406_s19 + $0x90] sm:$0xff]   ;;  %v1970_v31 = vld [vmem:[%s2406_s19 + $0xc8] sm:$0xff]  }
  0x7c   : > { %1843 = vmatprep.subr.bf16.mxu1 %v1954_v15  ;;  %v1971_v32 = vld [vmem:[%s2406_s19 + $0x8] sm:$0xff]   ;;  %v1973_v34 = vld [vmem:[%s2406_s19 + $0x40] sm:$0xff]   ;;  %v2440_v35 = vld [vmem:[%s2532_s0 + $0x10] sm:$0xff] }
  0x7d   : > { %1822 = vmatpush3.bf16.msra.mxu0 %v1955_v16  ;;  %v1972_v33 = vld [vmem:[%s2406_s19 + $0x88] sm:$0xff]   ;;  %v2445_v36 = vld [vmem:[%s2532_s0 + $0x30] sm:$0xff]  ;;  %v1974_v37 = vld [vmem:[%s2406_s19 + $0xc0] sm:$0xff]  }
  0x7e   : > { %1823 = vmatprep.subr.bf16.mxu0 %v1957_v18  ;;  %v2451_v38 = vld [vmem:[%s2532_s0 + $0x18] sm:$0xff]  ;;  %v1975_v40 = vld [vmem:[%s2406_s19] sm:$0xff]   ;;  %v1736_v46 = vcombine.high %v2440_v35, %v2445_v36  ;;  %v1981_v50 = vld [vmem:[%s2406_s19 + $0x170] sm:$0xff]   ;;  %v1735_v14 = vcombine.low %v2440_v35, %v2445_v36 }
  0x7f   : > { %1844 = vmatpush3.bf16.msra.mxu1 %v1956_v17  ;;  %v2456_v39 = vld [vmem:[%s2532_s0 + $0x38] sm:$0xff]  ;;  %v1976_v41 = vld [vmem:[%s2406_s19 + $0x80] sm:$0xff]   ;;  %v1982_v51 = vld [vmem:[%s2406_s19 + $0x1f0] sm:$0xff]  }
  0x80   : > { %1845 = vmatprep.subr.bf16.mxu1 %v1958_v19  ;;  %v1977_v44 = vld [vmem:[%s2406_s19 + $0x178] sm:$0xff]   ;;  %v1738_v48 = vcombine.high %v2451_v38, %v2456_v39  ;;  %v1983_v52 = vld [vmem:[%s2406_s19 + $0x130] sm:$0xff]   ;;  %v1985_v54 = vld [vmem:[%s2406_s19 + $0x168] sm:$0xff]   ;;  %v1737_v15 = vcombine.low %v2451_v38, %v2456_v39 }
  0x81   : > { %1824 = vmatpush3.bf16.msra.mxu0 %v1959_v20  ;;  %v1978_v45 = vld [vmem:[%s2406_s19 + $0x1f8] sm:$0xff]   ;;  %v1984_v53 = vld [vmem:[%s2406_s19 + $0x1b0] sm:$0xff]   ;;  %v1986_v55 = vld [vmem:[%s2406_s19 + $0x1e8] sm:$0xff]  }
  0x82   : > { %1825 = vmatprep.subr.bf16.mxu0 %v1961_v22  ;;  %v1979_v47 = vld [vmem:[%s2406_s19 + $0x138] sm:$0xff]   ;;  %v1987_v56 = vld [vmem:[%s2406_s19 + $0x128] sm:$0xff]   ;;  %v1989_v58 = vld [vmem:[%s2406_s19 + $0x160] sm:$0xff]  }
  0x83   : > { %1846 = vmatpush3.bf16.msra.mxu1 %v1960_v21  ;;  %v1980_v49 = vld [vmem:[%s2406_s19 + $0x1b8] sm:$0xff]   ;;  %v1988_v57 = vld [vmem:[%s2406_s19 + $0x1a8] sm:$0xff]   ;;  %v1990_v59 = vld [vmem:[%s2406_s19 + $0x1e0] sm:$0xff]  }
  0x84   : > { %1847 = vmatprep.subr.bf16.mxu1 %v1962_v23  ;;  %v1991_v60 = vld [vmem:[%s2406_s19 + $0x120] sm:$0xff]   ;;  %v1993_v62 = vld [vmem:[%s2406_s19 + $0x158] sm:$0xff]   ;;  %v1997_v2 = vld [vmem:[%s2406_s19 + $0x150] sm:$0xff]  }
  0x85   : > { %1826 = vmatpush3.bf16.msra.mxu0 %v1963_v24  ;;  %v1992_v61 = vld [vmem:[%s2406_s19 + $0x1a0] sm:$0xff]   ;;  %v1994_v63 = vld [vmem:[%s2406_s19 + $0x1d8] sm:$0xff]   ;;  %v1998_v3 = vld [vmem:[%s2406_s19 + $0x1d0] sm:$0xff]  }
  0x86   : > { %1827 = vmatprep.subr.bf16.mxu0 %v1965_v26  ;;  %v1995_v0 = vld [vmem:[%s2406_s19 + $0x118] sm:$0xff]   ;;  %v1999_v4 = vld [vmem:[%s2406_s19 + $0x110] sm:$0xff]   ;;  %v2001_v6 = vld [vmem:[%s2406_s19 + $0x148] sm:$0xff]  }
  0x87   : > { %1848 = vmatpush3.bf16.msra.mxu1 %v1964_v25  ;;  %v1996_v1 = vld [vmem:[%s2406_s19 + $0x198] sm:$0xff]   ;;  %v2000_v5 = vld [vmem:[%s2406_s19 + $0x190] sm:$0xff]   ;;  %v2002_v7 = vld [vmem:[%s2406_s19 + $0x1c8] sm:$0xff]  }
  0x88   : > { %1849 = vmatprep.subr.bf16.mxu1 %v1966_v27  ;;  %v2003_v8 = vld [vmem:[%s2406_s19 + $0x108] sm:$0xff]   ;;  %v2005_v10 = vld [vmem:[%s2406_s19 + $0x140] sm:$0xff]  }
  0x89   : > { %1828 = vmatpush3.bf16.msra.mxu0 %v1967_v28  ;;  %v2004_v9 = vld [vmem:[%s2406_s19 + $0x188] sm:$0xff]   ;;  %v2006_v11 = vld [vmem:[%s2406_s19 + $0x1c0] sm:$0xff]  }
  0x8a   : > { %1829 = vmatprep.subr.bf16.mxu0 %v1969_v30  ;;  %v2007_v12 = vld [vmem:[%s2406_s19 + $0x100] sm:$0xff]  }
  0x8b   : > { %1850 = vmatpush3.bf16.msra.mxu1 %v1968_v29  ;;  %v2008_v13 = vld [vmem:[%s2406_s19 + $0x180] sm:$0xff]   ;;  %s1573_s19 = scalar_lea.vmem (%p2104_p6), %s2535_s3, %s1807_s10 }
  0x8c   : > { %1851 = vmatprep.subr.bf16.mxu1 %v1970_v31 }
  0x8d   : > { %1830 = vmatpush3.bf16.msra.mxu0 %v1971_v32 }
  0x8e   : > { %1831 = vmatprep.subr.bf16.mxu0 %v1973_v34 }
  0x8f   : > { %1852 = vmatpush3.bf16.msra.mxu1 %v1972_v33 }
  0x90   : > { %1853 = vmatprep.subr.bf16.mxu1 %v1974_v37 }
  0x91   : > { %1832 = vmatpush3.bf16.msra.mxu0 %v1975_v40 }
  0x92   : > { %1861 = vmatprep.subr.bf16.mxu0 %v1977_v44 }
  0x93   : > { %1854 = vmatpush3.bf16.msra.mxu1 %v1976_v41 }
  0x94   : > { %1401 = vmatmul.mubr.bf16.vlgmr.msra.gmra.mxu0 %v1731_v42  ;;  %1883 = vmatprep.subr.bf16.mxu1 %v1978_v45 }
  0x95   : > { %1862 = vmatpush3.bf16.msra.mxu0 %v1979_v47  ;;  %1482 = vmatprep.mubr.bf16.mxu0 %v1736_v46 }
  0x96   : > { %1442 = vmatmul.mubr.bf16.vlgmr.msra.gmra.mxu1 %v1733_v43  ;;  %1863 = vmatprep.subr.bf16.mxu0 %v1981_v50  ;;  %v1803_v43 = vld [vmem:[%s797_s7] ss:$0 sm:$0xff] }
  0x97   : > { %1884 = vmatpush3.bf16.msra.mxu1 %v1980_v49  ;;  %1523 = vmatprep.mubr.bf16.mxu1 %v1738_v48 }
  0x98   : > { %1885 = vmatprep.subr.bf16.mxu1 %v1982_v51 }
  0x99   : > { %1864 = vmatpush3.bf16.msra.mxu0 %v1983_v52 }
  0x9a   : > { %1865 = vmatprep.subr.bf16.mxu0 %v1985_v54 }
  0x9b   : > { %1886 = vmatpush3.bf16.msra.mxu1 %v1984_v53 }
  0x9c   : > { %1887 = vmatprep.subr.bf16.mxu1 %v1986_v55 }
  0x9d   : > { %1866 = vmatpush3.bf16.msra.mxu0 %v1987_v56 }
  0x9e   : > { %1867 = vmatprep.subr.bf16.mxu0 %v1989_v58 }
  0x9f   : > { %1888 = vmatpush3.bf16.msra.mxu1 %v1988_v57 }
  0xa0   : > { %1889 = vmatprep.subr.bf16.mxu1 %v1990_v59 }
  0xa1   : > { %1868 = vmatpush3.bf16.msra.mxu0 %v1991_v60 }
  0xa2   : > { %1869 = vmatprep.subr.bf16.mxu0 %v1993_v62 }
  0xa3   : > { %1890 = vmatpush3.bf16.msra.mxu1 %v1992_v61 }
  0xa4   : > { %1891 = vmatprep.subr.bf16.mxu1 %v1994_v63 }
  0xa5   : > { %1870 = vmatpush3.bf16.msra.mxu0 %v1995_v0 }
  0xa6   : > { %1871 = vmatprep.subr.bf16.mxu0 %v1997_v2 }
  0xa7   : > { %1892 = vmatpush3.bf16.msra.mxu1 %v1996_v1 }
  0xa8   : > { %1893 = vmatprep.subr.bf16.mxu1 %v1998_v3 }
  0xa9   : > { %1872 = vmatpush3.bf16.msra.mxu0 %v1999_v4 }
  0xaa   : > { %1873 = vmatprep.subr.bf16.mxu0 %v2001_v6 }
  0xab   : > { %1894 = vmatpush3.bf16.msra.mxu1 %v2000_v5 }
  0xac   : > { %1895 = vmatprep.subr.bf16.mxu1 %v2002_v7 }
  0xad   : > { %1874 = vmatpush3.bf16.msra.mxu0 %v2003_v8 }
  0xae   : > { %1875 = vmatprep.subr.bf16.mxu0 %v2005_v10 }
  0xaf   : > { %1896 = vmatpush3.bf16.msra.mxu1 %v2004_v9 }
  0xb0   : > { %1897 = vmatprep.subr.bf16.mxu1 %v2006_v11 }
  0xb1   : > { %1876 = vmatpush3.bf16.msra.mxu0 %v2007_v12 }
  0xb3   : > { %1898 = vmatpush3.bf16.msra.mxu1 %v2008_v13 }
  0xb4   : > { %1483 = vmatmul.mubr.bf16.vlgmr.msra.gmra.mxu0 %v1735_v14 }
  0xb6   : > { %1524 = vmatmul.mubr.bf16.vlgmr.msra.gmra.mxu1 %v1737_v15 }
 0x154   : > { %v1833_v16 = vpop.f32.mrf.mxu0 }
 0x156   : > { %v1855_v17 = vpop.f32.mrf.mxu1  ;;  %v1834_v18 = vpop.f32.mrf.mxu0 }
 0x157   : > { %v1835_v23 = vadd.f32 %v1834_v18, %v1833_v16 }
 0x158   : > { %v1856_v19 = vpop.f32.mrf.mxu1  ;;  %v1836_v20 = vpop.f32.mrf.mxu0 }
 0x159   : > { %v1857_v24 = vadd.f32 %v1856_v19, %v1855_v17 }
 0x15a   : > { %v1858_v21 = vpop.f32.mrf.mxu1  ;;  %v1837_v22 = vpop.f32.mrf.mxu0 }
 0x15b   : > { %v1444_v29 = vadd.f32 %v1857_v24, %v1835_v23  ;;  %v1838_v30 = vadd.f32 %v1837_v22, %v1836_v20 }
 0x15c   : > { %v1859_v25 = vpop.f32.mrf.mxu1 }
 0x15d   : > { %v1860_v31 = vadd.f32 %v1859_v25, %v1858_v21 }
 0x15f   : > { %v1447_v39 = vadd.f32 %v1860_v31, %v1838_v30 }
 0x174   : > { %v1877_v26 = vpop.f32.mrf.mxu0 }
 0x176   : > { %v1899_v27 = vpop.f32.mrf.mxu1  ;;  %v1878_v28 = vpop.f32.mrf.mxu0 }
 0x177   : > { %v1879_v32 = vadd.f32 %v1878_v28, %v1877_v26 }
 0x178   : > { %v1900_v33 = vpop.f32.mrf.mxu1  ;;  %v1880_v34 = vpop.f32.mrf.mxu0 }
 0x179   : > { %v1485_v35 = vadd.f32 %v1879_v32, %v1444_v29  ;;  %v1901_v36 = vadd.f32 %v1900_v33, %v1899_v27 }
 0x17a   : > { %v1902_v37 = vpop.f32.mrf.mxu1  ;;  %v1881_v38 = vpop.f32.mrf.mxu0 }
 0x17b   : > { %v1526_v40 = vadd.f32 %v1901_v36, %v1485_v35  ;;  %v1882_v41 = vadd.f32 %v1881_v38, %v1880_v34 }
 0x17c   : > { %v1903_v42 = vpop.f32.mrf.mxu1 }
 0x17d   : > { %v1488_v44 = vadd.f32 %v1882_v41, %v1447_v39  ;;  %v1904_v45 = vadd.f32 %v1903_v42, %v1902_v37  ;;  %v1548_v46 = vadd.f32 %v1803_v43, %v1526_v40 }
 0x17f   : > { %v1529_v47 = vadd.f32 %v1904_v45, %v1488_v44  ;;  %v1550_v49 = vmax.f32 %v1548_v46, 0.0 }
 0x181   : > { %v1549_v48 = vadd.f32 %v1803_v43, %v1529_v47 }
 0x183   : > { %v1551_v50 = vmax.f32 %v1549_v48, 0.0  ;;  %1568 = sbr.rel (!%p2104_p6) target bundleno = 400 (0x190), region = 85 }
 0x185   : > { %v1815_v51 = vpack.c.bf16 %v1551_v50, %v1550_v49 }
 0x187   : > { %1816 = vst [vmem:[%s781_s9] sm:$0xff] %v1815_v51  }
 0x18e   : > { %v1590_v52 = vld [vmem:[%s781_s9] sm:$0xf]  ;;  %v1592_v53 = vld [vmem:[%s781_s9 + $0x4] sm:$0xf] }
 0x18f   : > { %1591 = vst [vmem:[%s1573_s19] sm:$0xf] %v1590_v52  ;;  %1593 = vst [vmem:[%s1573_s19 + $0x8] sm:$0xf] %v1592_v53 }
 0x190 PF: > { %s13_s16 = sadd.s32 1, %s2047_s16   ;;  %s2537_s12 = smov %s2035_s13 }
 0x191   : > { %p10_p12 = scmp.ge.s32.totalorder %s13_s16, 4   ;;  %s2538_s13 = smov %s2109_s22 }
 0x192   : > { %s2539_s14 = smov %s2043_s15  ;;  %s2540_s15 = smov %s2542_s17 }
 0x193   :  { %12 = sbr.rel (!%p10_p12) target bundleno = 3 (0x3), region = 163 }

// kernel: forward.36
= control target key start
LH: loop header
LB: loop body
LE: loop exit
PB: predicated region body
PF: predicated region fallthrough
CT: control target
= control target key end

     0   :  { %s977_s12 = smov 0   ;;  %s979_s13 = smov 0   ;;  %s1150_s0 = inlined_call_operand.vmem [shape: bf16[16,256], index: 0, kind: input, shape index: {}]   ;;  %s1151_s1 = inlined_call_operand.vmem [shape: bf16[256,256], index: 1, kind: input, shape index: {}]   ;;  %s1152_s2 = inlined_call_operand.vmem [shape: f32[1,256], index: 2, kind: input, shape index: {}]   ;;  %s1153_s3 = inlined_call_operand.vmem [shape: bf16[16,256], index: 3, kind: output, shape index: {}]  }
   0x1   :  { %s981_s14 = smov 0   ;;  %s983_s15 = smov 0  }
   0x2   :  { %s985_s16 = smov 0  }
   0x3 LB: > { %s28_s17 = sadd.s32 1, %s951_s15  ;;  %s794_s18 = sadd.s32 4294967295, %s955_s16   ;;  %s955_s16 = sphi %s985_s16, %s13_s16   ;;  %s951_s15 = sphi %s983_s15, %s1158_s15   ;;  %s947_s14 = sphi %s981_s14, %s1157_s14   ;;  %s943_s13 = sphi %s979_s13, %s1156_s13   ;;  %s939_s12 = sphi %s977_s12, %s1155_s12  }
   0x4   : > { %p30_p0 = scmp.ge.s32.totalorder %s28_s17, 2  ;;  %p76_p1 = scmp.ne.s32.totalorder %s943_s13, %s939_s12 }
   0x5   : > { %p77_p2 = scmp.eq.s32.totalorder %s955_s16, 0  ;;  %p134_p4 = scmp.eq.s32.totalorder %s794_s18, 1 }
   0x6   : > { %s1160_s17 = smov (%p30_p0, %s28_s17), 0  ;;  %s69_s20 = sadd.s32 1, %s943_s13 }
   0x7   : > { %p78_p3 = por %p77_p2, %p76_p1  ;;  %s65_s19 = ssub.s32 %s951_s15, %s1160_s17 }
   0x8   : > { %p67_p5 = scmp.eq.s32.totalorder %s65_s19, 0  ;;  %p1012_p6 = por %p134_p4, %p76_p1 }
   0x9   : > { %p798_p7 = scmp.ge.s32.totalorder %s955_s16, 2 }
   0xa   : > { %s1017_s22 = scalar_select %p67_p5, %s943_s13, %s69_s20  }
   0xb   : > { %171 = sbr.rel (%p798_p7) target bundleno = 41 (0x29), region = 20 }
  0x10   : > { %174 = sbr.rel (!%p78_p3) target bundleno = 41 (0x29), region = 24  ;;  %s176_s23 = sand.u32 (%p78_p3), 1, %s943_s13  }
  0x11   : > { %s800_s24 = sshll.u32 (%p78_p3), %s951_s15, 2  ;;  %s799_s25 = sshll.u32 (%p78_p3), %s176_s23, 7 }
  0x12   : > { %s1025_s28 = scalar_lea.vmem (%p78_p3), %s1151_s1, %s800_s24  ;;  %s1029_s29 = scalar_lea.vmem (%p78_p3), [#allocation3], %s799_s25 }
  0x13   : > { %v200_v0 = vld [vmem:[%s1025_s28] sm:$0xf] (%p78_p3)  ;;  %v202_v1 = vld [vmem:[%s1025_s28 + $0x8] sm:$0xf] (%p78_p3)  ;;  %v204_v2 = vld [vmem:[%s1025_s28 + $0x10] sm:$0xf] (%p78_p3) }
  0x14   : > { %201 = vst [vmem:[%s1029_s29] sm:$0xf] (%p78_p3), %v200_v0  ;;  %203 = vst [vmem:[%s1029_s29 + $0x4] sm:$0xf] (%p78_p3), %v202_v1  ;;  %v206_v3 = vld [vmem:[%s1025_s28 + $0x18] sm:$0xf] (%p78_p3) }
  0x15   : > { %v208_v4 = vld [vmem:[%s1025_s28 + $0x20] sm:$0xf]  ;;  %205 = vst [vmem:[%s1029_s29 + $0x8] sm:$0xf] %v204_v2  ;;  %207 = vst [vmem:[%s1029_s29 + $0xc] sm:$0xf] %v206_v3 }
  0x16   : > { %209 = vst [vmem:[%s1029_s29 + $0x10] sm:$0xf] %v208_v4  ;;  %v210_v5 = vld [vmem:[%s1025_s28 + $0x28] sm:$0xf]  ;;  %v212_v6 = vld [vmem:[%s1025_s28 + $0x30] sm:$0xf] }
  0x17   : > { %v214_v7 = vld [vmem:[%s1025_s28 + $0x38] sm:$0xf]  ;;  %211 = vst [vmem:[%s1029_s29 + $0x14] sm:$0xf] %v210_v5  ;;  %213 = vst [vmem:[%s1029_s29 + $0x18] sm:$0xf] %v212_v6 }
  0x18   : > { %215 = vst [vmem:[%s1029_s29 + $0x1c] sm:$0xf] %v214_v7  ;;  %v216_v8 = vld [vmem:[%s1025_s28 + $0x40] sm:$0xf]  ;;  %v218_v9 = vld [vmem:[%s1025_s28 + $0x48] sm:$0xf] }
  0x19   : > { %v220_v10 = vld [vmem:[%s1025_s28 + $0x50] sm:$0xf]  ;;  %217 = vst [vmem:[%s1029_s29 + $0x20] sm:$0xf] %v216_v8  ;;  %219 = vst [vmem:[%s1029_s29 + $0x24] sm:$0xf] %v218_v9 }
  0x1a   : > { %221 = vst [vmem:[%s1029_s29 + $0x28] sm:$0xf] %v220_v10  ;;  %v222_v11 = vld [vmem:[%s1025_s28 + $0x58] sm:$0xf]  ;;  %v224_v12 = vld [vmem:[%s1025_s28 + $0x60] sm:$0xf] }
  0x1b   : > { %v226_v13 = vld [vmem:[%s1025_s28 + $0x68] sm:$0xf]  ;;  %223 = vst [vmem:[%s1029_s29 + $0x2c] sm:$0xf] %v222_v11  ;;  %225 = vst [vmem:[%s1029_s29 + $0x30] sm:$0xf] %v224_v12 }
  0x1c   : > { %227 = vst [vmem:[%s1029_s29 + $0x34] sm:$0xf] %v226_v13  ;;  %v228_v14 = vld [vmem:[%s1025_s28 + $0x70] sm:$0xf]  ;;  %v230_v15 = vld [vmem:[%s1025_s28 + $0x78] sm:$0xf] }
  0x1d   : > { %v232_v16 = vld [vmem:[%s1025_s28 + $0x80] sm:$0xf]  ;;  %229 = vst [vmem:[%s1029_s29 + $0x38] sm:$0xf] %v228_v14  ;;  %231 = vst [vmem:[%s1029_s29 + $0x3c] sm:$0xf] %v230_v15 }
  0x1e   : > { %233 = vst [vmem:[%s1029_s29 + $0x40] sm:$0xf] %v232_v16  ;;  %v234_v17 = vld [vmem:[%s1025_s28 + $0x88] sm:$0xf]  ;;  %v236_v18 = vld [vmem:[%s1025_s28 + $0x90] sm:$0xf] }
  0x1f   : > { %v238_v19 = vld [vmem:[%s1025_s28 + $0x98] sm:$0xf]  ;;  %235 = vst [vmem:[%s1029_s29 + $0x44] sm:$0xf] %v234_v17  ;;  %237 = vst [vmem:[%s1029_s29 + $0x48] sm:$0xf] %v236_v18 }
  0x20   : > { %239 = vst [vmem:[%s1029_s29 + $0x4c] sm:$0xf] %v238_v19  ;;  %v240_v20 = vld [vmem:[%s1025_s28 + $0xa0] sm:$0xf]  ;;  %v242_v21 = vld [vmem:[%s1025_s28 + $0xa8] sm:$0xf] }
  0x21   : > { %v244_v22 = vld [vmem:[%s1025_s28 + $0xb0] sm:$0xf]  ;;  %241 = vst [vmem:[%s1029_s29 + $0x50] sm:$0xf] %v240_v20  ;;  %243 = vst [vmem:[%s1029_s29 + $0x54] sm:$0xf] %v242_v21 }
  0x22   : > { %245 = vst [vmem:[%s1029_s29 + $0x58] sm:$0xf] %v244_v22  ;;  %v246_v23 = vld [vmem:[%s1025_s28 + $0xb8] sm:$0xf]  ;;  %v248_v24 = vld [vmem:[%s1025_s28 + $0xc0] sm:$0xf] }
  0x23   : > { %v250_v25 = vld [vmem:[%s1025_s28 + $0xc8] sm:$0xf]  ;;  %247 = vst [vmem:[%s1029_s29 + $0x5c] sm:$0xf] %v246_v23  ;;  %249 = vst [vmem:[%s1029_s29 + $0x60] sm:$0xf] %v248_v24 }
  0x24   : > { %251 = vst [vmem:[%s1029_s29 + $0x64] sm:$0xf] %v250_v25  ;;  %v252_v26 = vld [vmem:[%s1025_s28 + $0xd0] sm:$0xf]  ;;  %v254_v27 = vld [vmem:[%s1025_s28 + $0xd8] sm:$0xf] }
  0x25   : > { %v256_v28 = vld [vmem:[%s1025_s28 + $0xe0] sm:$0xf]  ;;  %253 = vst [vmem:[%s1029_s29 + $0x68] sm:$0xf] %v252_v26  ;;  %255 = vst [vmem:[%s1029_s29 + $0x6c] sm:$0xf] %v254_v27 }
  0x26   : > { %257 = vst [vmem:[%s1029_s29 + $0x70] sm:$0xf] %v256_v28  ;;  %v258_v29 = vld [vmem:[%s1025_s28 + $0xe8] sm:$0xf]  ;;  %v260_v30 = vld [vmem:[%s1025_s28 + $0xf0] sm:$0xf] }
  0x27   : > { %v262_v31 = vld [vmem:[%s1025_s28 + $0xf8] sm:$0xf]  ;;  %259 = vst [vmem:[%s1029_s29 + $0x74] sm:$0xf] %v258_v29  ;;  %261 = vst [vmem:[%s1029_s29 + $0x78] sm:$0xf] %v260_v30 }
  0x28   : > { %263 = vst [vmem:[%s1029_s29 + $0x7c] sm:$0xf] %v262_v31 }
  0x29 PF: > { %p801_p8 = scmp.ge.s32.totalorder %s955_s16, 1  ;;  %p356_p9 = scmp.lt.s32.totalorder %s955_s16, 3 }
  0x2b   : > { %p357_p10 = pnand %p801_p8, %p356_p9 }
  0x2c   : > { %s363_s30 = sand.u32 (!%p357_p10), 1, %s939_s12   ;;  %p411_p11 = scmp.lt.s32.totalorder (!%p357_p10), %s947_s14, 1 }
  0x2d   : > { %360 = sbr.rel (%p357_p10) target bundleno = 299 (0x12b), region = 69  ;;  %s802_s4 = sshll.u32 (!%p357_p10), %s363_s30, 7 }
  0x2e   : > { %s1101_s7 = scalar_lea.vmem (!%p357_p10), [#allocation3], %s802_s4  ;;  %s803_s20 = sshll.u32 (!%p357_p10), %s363_s30, 3 }
  0x2f   : > { %s397_s23 = scalar_lea.vmem (!%p357_p10), [#allocation4], %s803_s20 }
  0x32   : > { %v916_v32 = vld [vmem:[%s1150_s0 + $0x4] ss:$8 sps:$4 sm:$0xff]   ;;  %v898_v33 = vld [vmem:[%s1101_s7 + $0x78] sm:$0xff]   ;;  %v900_v35 = vld [vmem:[%s1101_s7 + $0x70] sm:$0xff]   ;;  %s412_s10 = scalar_select %p411_p11, %s947_s14, 1 }
  0x33   : > { %596 = vmatprep.mubr.bf16.mxu0 %v916_v32  ;;  %v899_v34 = vld [vmem:[%s1101_s7 + $0x38] sm:$0xff]   ;;  %836 = vmatprep.subr.bf16.mxu0 %v898_v33  ;;  %v901_v36 = vld [vmem:[%s1101_s7 + $0x30] sm:$0xff]   ;;  %v902_v37 = vld [vmem:[%s1101_s7 + $0x68] sm:$0xff]   ;;  %s826_s24 = sshll.u32 (%p1012_p6), %s947_s14, 2 }
  0x34   : > { %837 = vmatpush3.bf16.msra.mxu0 %v899_v34  ;;  %v903_v38 = vld [vmem:[%s1101_s7 + $0x28] sm:$0xff]   ;;  %v904_v39 = vld [vmem:[%s1101_s7 + $0x60] sm:$0xff]   ;;  %v906_v41 = vld [vmem:[%s1101_s7 + $0x58] sm:$0xff]   ;;  %s413_s19 = scalar_lea.vmem %s1152_s2, %s412_s10  ;;  %s646_s27 = scalar_lea.vmem (%p1012_p6), %s1153_s3, %s826_s24 }
  0x35   : > { %838 = vmatprep.subr.bf16.mxu0 %v900_v35  ;;  %v905_v40 = vld [vmem:[%s1101_s7 + $0x20] sm:$0xff]   ;;  %v907_v42 = vld [vmem:[%s1101_s7 + $0x18] sm:$0xff]   ;;  %v908_v43 = vld [vmem:[%s1101_s7 + $0x50] sm:$0xff]  }
  0x36   : > { %v909_v44 = vld [vmem:[%s1101_s7 + $0x10] sm:$0xff]   ;;  %v910_v45 = vld [vmem:[%s1101_s7 + $0x48] sm:$0xff]   ;;  %v912_v47 = vld [vmem:[%s1101_s7 + $0x40] sm:$0xff]  }
  0x37   : > { %v911_v46 = vld [vmem:[%s1101_s7 + $0x8] sm:$0xff]   ;;  %v913_v48 = vld [vmem:[%s1101_s7] sm:$0xff]  }
  0x38   : > { %839 = vmatpush3.bf16.msra.mxu0 %v901_v36  ;;  %v914_v49 = vld [vmem:[%s1150_s0] ss:$8 sps:$4 sm:$0xff]  }
  0x39   : > { %840 = vmatprep.subr.bf16.mxu0 %v902_v37  ;;  %v822_v53 = vld [vmem:[%s413_s19] ss:$0 sm:$0xff] }
  0x3c   : > { %841 = vmatpush3.bf16.msra.mxu0 %v903_v38 }
  0x3d   : > { %842 = vmatprep.subr.bf16.mxu0 %v904_v39 }
  0x40   : > { %843 = vmatpush3.bf16.msra.mxu0 %v905_v40 }
  0x41   : > { %844 = vmatprep.subr.bf16.mxu0 %v906_v41 }
  0x44   : > { %845 = vmatpush3.bf16.msra.mxu0 %v907_v42 }
  0x45   : > { %846 = vmatprep.subr.bf16.mxu0 %v908_v43 }
  0x48   : > { %847 = vmatpush3.bf16.msra.mxu0 %v909_v44 }
  0x49   : > { %848 = vmatprep.subr.bf16.mxu0 %v910_v45 }
  0x4c   : > { %849 = vmatpush3.bf16.msra.mxu0 %v911_v46 }
  0x4d   : > { %850 = vmatprep.subr.bf16.mxu0 %v912_v47 }
  0x50   : > { %851 = vmatpush3.bf16.msra.mxu0 %v913_v48 }
  0x53   : > { %597 = vmatmul.mubr.bf16.vlgmr.msra.gmra.mxu0 %v914_v49 }
 0x113   : > { %v852_v50 = vpop.f32.mrf.mxu0 }
 0x115   : > { %v853_v51 = vpop.f32.mrf.mxu0 }
 0x116   : > { %v854_v52 = vadd.f32 %v853_v51, %v852_v50 }
 0x117   : > { %v855_v54 = vpop.f32.mrf.mxu0 }
 0x118   : > { %v621_v56 = vadd.f32 %v854_v52, %v822_v53 }
 0x119   : > { %v856_v55 = vpop.f32.mrf.mxu0 }
 0x11a   : > { %v857_v57 = vadd.f32 %v856_v55, %v855_v54  ;;  %v623_v59 = vmax.f32 %v621_v56, 0.0 }
 0x11c   : > { %v622_v58 = vadd.f32 %v857_v57, %v822_v53 }
 0x11e   : > { %v624_v60 = vmax.f32 %v622_v58, 0.0  ;;  %641 = sbr.rel (!%p1012_p6) target bundleno = 299 (0x12b), region = 85 }
 0x120   : > { %v834_v61 = vpack.c.bf16 %v624_v60, %v623_v59 }
 0x122   : > { %835 = vst [vmem:[%s397_s23] sm:$0xff] %v834_v61  }
 0x129   : > { %v663_v62 = vld [vmem:[%s397_s23] sm:$0xf]  ;;  %v665_v63 = vld [vmem:[%s397_s23 + $0x4] sm:$0xf] }
 0x12a   : > { %664 = vst [vmem:[%s646_s27] sm:$0xf] %v663_v62  ;;  %666 = vst [vmem:[%s646_s27 + $0x8] sm:$0xf] %v665_v63 }
 0x12b PF: > { %s13_s16 = sadd.s32 1, %s955_s16   ;;  %s1155_s12 = smov %s943_s13 }
 0x12c   : > { %p10_p12 = scmp.ge.s32.totalorder %s13_s16, 4   ;;  %s1156_s13 = smov %s1017_s22 }
 0x12d   : > { %s1157_s14 = smov %s951_s15  ;;  %s1158_s15 = smov %s1160_s17 }
 0x12e   :  { %12 = sbr.rel (!%p10_p12) target bundleno = 3 (0x3), region = 163 }

// kernel: forward.37
= control target key start
LH: loop header
LB: loop body
LE: loop exit
PB: predicated region body
PF: predicated region fallthrough
CT: control target
= control target key end

     0   :  { %s371_s1 = inlined_call_operand.vmem [shape: bf16[256,128], index: 1, kind: input, shape index: {}]   ;;  %s372_s0 = inlined_call_operand.vmem [shape: bf16[16,256], index: 0, kind: input, shape index: {}]   ;;  %s373_s2 = inlined_call_operand.vmem [shape: f32[1,128], index: 2, kind: input, shape index: {}]   ;;  %s374_s3 = inlined_call_operand.vmem [shape: f32[16,128], index: 3, kind: output, shape index: {}]  }
   0x1   :  { %v269_v0 = vld [vmem:[%s371_s1 + $0x78] sm:$0xff]   ;;  %v271_v2 = vld [vmem:[%s371_s1 + $0x70] sm:$0xff]   ;;  %v273_v4 = vld [vmem:[%s371_s1 + $0x68] sm:$0xff]  }
   0x2   :  { %v270_v1 = vld [vmem:[%s371_s1 + $0x38] sm:$0xff]   ;;  %247 = vmatprep.subr.bf16.mxu0 %v269_v0  ;;  %v272_v3 = vld [vmem:[%s371_s1 + $0x30] sm:$0xff]   ;;  %v274_v5 = vld [vmem:[%s371_s1 + $0x28] sm:$0xff]  }
   0x3   :  { %248 = vmatpush3.bf16.msra.mxu0 %v270_v1  ;;  %v275_v6 = vld [vmem:[%s371_s1 + $0x60] sm:$0xff]   ;;  %v277_v8 = vld [vmem:[%s371_s1 + $0x58] sm:$0xff]   ;;  %v279_v10 = vld [vmem:[%s371_s1 + $0x50] sm:$0xff]  }
   0x4   :  { %249 = vmatprep.subr.bf16.mxu0 %v271_v2  ;;  %v276_v7 = vld [vmem:[%s371_s1 + $0x20] sm:$0xff]   ;;  %v278_v9 = vld [vmem:[%s371_s1 + $0x18] sm:$0xff]   ;;  %v280_v12 = vld [vmem:[%s371_s1 + $0x10] sm:$0xff]  }
   0x5   :  { %v287_v11 = vld [vmem:[%s372_s0 + $0x4] ss:$8 sps:$4 sm:$0xff]   ;;  %v285_v17 = vld [vmem:[%s372_s0] ss:$8 sps:$4 sm:$0xff]  }
   0x6   :  { %195 = vmatprep.mubr.bf16.mxu0 %v287_v11  ;;  %v281_v13 = vld [vmem:[%s371_s1 + $0x48] sm:$0xff]   ;;  %v283_v15 = vld [vmem:[%s371_s1 + $0x40] sm:$0xff]  }
   0x7   :  { %250 = vmatpush3.bf16.msra.mxu0 %v272_v3  ;;  %v282_v14 = vld [vmem:[%s371_s1 + $0x8] sm:$0xff]   ;;  %v284_v16 = vld [vmem:[%s371_s1] sm:$0xff]  }
   0x8   :  { %251 = vmatprep.subr.bf16.mxu0 %v273_v4  ;;  %v246_v20 = vld [vmem:[%s373_s2] ss:$0 sm:$0xff] }
   0xb   :  { %252 = vmatpush3.bf16.msra.mxu0 %v274_v5 }
   0xc   :  { %253 = vmatprep.subr.bf16.mxu0 %v275_v6 }
   0xf   :  { %254 = vmatpush3.bf16.msra.mxu0 %v276_v7 }
  0x10   :  { %255 = vmatprep.subr.bf16.mxu0 %v277_v8 }
  0x13   :  { %256 = vmatpush3.bf16.msra.mxu0 %v278_v9 }
  0x14   :  { %257 = vmatprep.subr.bf16.mxu0 %v279_v10 }
  0x17   :  { %258 = vmatpush3.bf16.msra.mxu0 %v280_v12 }
  0x18   :  { %259 = vmatprep.subr.bf16.mxu0 %v281_v13 }
  0x1b   :  { %260 = vmatpush3.bf16.msra.mxu0 %v282_v14 }
  0x1c   :  { %261 = vmatprep.subr.bf16.mxu0 %v283_v15 }
  0x1f   :  { %262 = vmatpush3.bf16.msra.mxu0 %v284_v16 }
  0x22   :  { %196 = vmatmul.mubr.bf16.vlgmr.msra.gmra.mxu0 %v285_v17 }
  0xe2   :  { %v263_v18 = vpop.f32.mrf.mxu0 }
  0xe4   :  { %v264_v19 = vpop.f32.mrf.mxu0 }
  0xe5   :  { %v265_v21 = vadd.f32 %v264_v19, %v263_v18 }
  0xe6   :  { %v266_v22 = vpop.f32.mrf.mxu0 }
  0xe7   :  { %v220_v23 = vadd.f32 %v265_v21, %v246_v20 }
  0xe8   :  { %v267_v24 = vpop.f32.mrf.mxu0 }
  0xe9   :  { %222 = vst [vmem:[%s374_s3] sm:$0xff] %v220_v23  ;;  %v268_v25 = vadd.f32 %v267_v24, %v266_v22 }
  0xeb   :  { %v221_v26 = vadd.f32 %v268_v25, %v246_v20 }
  0xed   :  { %223 = vst [vmem:[%s374_s3 + $0x8] sm:$0xff] %v221_v26 }

</bundles_post_ra>
